<compile_context>
chip_gen: v7x
topology: tpu7x:2x2x1
jax: 0.10.0
libtpu: 0.0.40
codegen_flags: <defaults>
</compile_context>

<pallas_src>
import functools

import jax
import jax.numpy as jnp
from jax import lax
from jax.experimental import pallas as pl
from jax.experimental.pallas import tpu as pltpu  # noqa: F401  (kept for TPU-specific tuning hooks)

NEG_SLOPE = 0.2     # GATConv default negative_slope
NEG_INF = -1e30


# ------------------------- fused two-layer GAT kernel ----------------------- #

def _gat_layer(h, adj, w_ref, att_src_ref, att_dst_ref, bias_ref, heads, out_ch):
    """One GATConv (concat=True) computed entirely in VMEM.

    h:   (N, F)   input node features (already loaded values)
    adj: (N, N)   dense adjacency, adj[i, j] = 1 iff edge j -> i
    returns (N, heads*out_ch) with heads concatenated on the lane axis.
    """
    xw = jnp.dot(h, w_ref[...], preferred_element_type=jnp.float32)      # (N, H*C)
    outs = []
    for hd in range(heads):
        lo = hd * out_ch
        xh = xw[:, lo:lo + out_ch]                       # (N, C)
        a_s = att_src_ref[hd:hd + 1, :]                  # (1, C)
        a_d = att_dst_ref[hd:hd + 1, :]                  # (1, C)
        # contract-last-with-last ("A @ B.T") gives column / row logits directly
        dst = lax.dot_general(xh, a_d, (((1,), (1,)), ((), ())),
                              preferred_element_type=jnp.float32)        # (N, 1)
        src = lax.dot_general(a_s, xh, (((1,), (1,)), ((), ())),
                              preferred_element_type=jnp.float32)        # (1, N)
        s = dst + src                                    # (N, N): a_dst[i] + a_src[j]
        s = jnp.where(s > 0, s, NEG_SLOPE * s)           # LeakyReLU(0.2)
        s = jnp.where(adj > 0, s, NEG_INF)               # single non-edge mask
        m = jnp.max(s, axis=-1, keepdims=True)
        p = jnp.exp(s - m)                               # masked entries underflow to 0
        p = p / jnp.sum(p, axis=-1, keepdims=True)       # softmax over incoming edges
        outs.append(jnp.dot(p, xh, preferred_element_type=jnp.float32))  # (N, C)
    # lane-dense concat of all heads + bias
    return jnp.concatenate(outs, axis=1) + bias_ref[...]                 # (N, H*C)


def _make_fused_kernel(heads, hidden, classes):
    def kernel(x_ref, adj_ref, w1_ref, as1_ref, ad1_ref, b1_ref,
               w2_ref, as2_ref, ad2_ref, b2_ref, o_ref):
        adj = adj_ref[...]
        # layer 1: GATConv(F_in, hidden, heads)   (dropout is identity in eval mode)
        h1 = _gat_layer(x_ref[...], adj, w1_ref, as1_ref, ad1_ref, b1_ref,
                        heads, hidden)
        # fused ELU
        h1 = jnp.where(h1 > 0, h1, jnp.exp(h1) - 1.0)
        # layer 2: GATConv(heads*hidden, classes, heads)
        o_ref[...] = _gat_layer(h1, adj, w2_ref, as2_ref, ad2_ref, b2_ref,
                                heads, classes)
    return kernel


@functools.partial(jax.jit, static_argnames=("heads", "hidden", "num_classes"))
def gcn_forward(x, adj, params, heads, hidden, num_classes):
    N, f_in = x.shape
    hc1 = heads * hidden
    hc2 = heads * num_classes

    def full(shape):
        return pl.BlockSpec(shape, lambda: (0,) * len(shape))

    # TODO(synk): at realistic N the dense f32 adjacency (N^2) must be tiled over
    # (dst_tile, src_tile) blocks (v7x 64 MiB VMEM) and the row/head axis split
    # across TensorCores; at N=64 a single VMEM-resident invocation is optimal.
    return pl.pallas_call(
        _make_fused_kernel(heads, hidden, num_classes),
        out_shape=jax.ShapeDtypeStruct((N, hc2), jnp.float32),
        in_specs=[
            full((N, f_in)),
            full((N, N)),
            full((f_in, hc1)), full((heads, hidden)), full((heads, hidden)),
            full((1, hc1)),
            full((hc1, hc2)), full((heads, num_classes)), full((heads, num_classes)),
            full((1, hc2)),
        ],
        out_specs=full((N, hc2)),
    )(x, adj,
      params["w1"], params["att_src1"], params["att_dst1"],
      params["b1"].reshape(1, hc1),
      params["w2"], params["att_src2"], params["att_dst2"],
      params["b2"].reshape(1, hc2))


# --------------------------- pure-JAX reference ----------------------------- #

_P_HIGH = jax.lax.Precision.HIGHEST


def gat_conv_ref(x, w, att_src, att_dst, bias, adj, heads, out_ch):
    N = x.shape[0]
    xh = jnp.dot(x, w, precision=_P_HIGH).reshape(N, heads, out_ch)
    a_src = jnp.einsum("nhc,hc->nh", xh, att_src, precision=_P_HIGH)
    a_dst = jnp.einsum("nhc,hc->nh", xh, att_dst, precision=_P_HIGH)
    s = a_dst.T[:, :, None] + a_src.T[:, None, :]          # [H, N, N]
    s = jnp.where(s > 0, s, NEG_SLOPE * s)
    s = jnp.where(adj[None] > 0, s, NEG_INF)
    m = jnp.max(s, axis=-1, keepdims=True)
    p = jnp.exp(s - m) * adj[None]
    p = p / jnp.sum(p, axis=-1, keepdims=True)
    out = jnp.einsum("hij,hjc->hic", p, xh.transpose(1, 0, 2), precision=_P_HIGH)
    return out.transpose(1, 0, 2).reshape(N, heads * out_ch) + bias


def gcn_forward_ref(x, adj, params, heads, hidden, num_classes):
    h = gat_conv_ref(x, params["w1"], params["att_src1"], params["att_dst1"],
                     params["b1"], adj, heads, hidden)
    h = jnp.where(h > 0, h, jnp.exp(h) - 1.0)
    return gat_conv_ref(h, params["w2"], params["att_src2"], params["att_dst2"],
                        params["b2"], adj, heads, num_classes)


# ---------------------------------- main ----------------------------------- #

if __name__ == "__main__":
    N = 64            # nodes
    F_IN = 16         # data.num_features
    HIDDEN = 8        # hidden_channels
    HEADS = 4         # heads
    CLASSES = 4       # data.num_classes

    key = jax.random.PRNGKey(0)
    k_x, k_adj, k1, k2, k3, k4, k5, k6, k7, k8 = jax.random.split(key, 10)

    # node features (data.x.float())
    x = jax.random.normal(k_x, (N, F_IN), dtype=jnp.float32)

    # synthetic edge_index -> dense adjacency with self-loops (add_self_loops=True)
    adj = (jax.random.uniform(k_adj, (N, N)) < 0.15).astype(jnp.float32)
    adj = jnp.maximum(adj, jnp.eye(N, dtype=jnp.float32))

    def init(k, shape):
        return 0.1 * jax.random.normal(k, shape, dtype=jnp.float32)

    params = {
        # conv1: GATConv(F_IN, HIDDEN, HEADS)
        "w1": init(k1, (F_IN, HEADS * HIDDEN)),
        "att_src1": init(k2, (HEADS, HIDDEN)),
        "att_dst1": init(k3, (HEADS, HIDDEN)),
        "b1": init(k4, (HEADS * HIDDEN,)),
        # conv2: GATConv(HEADS*HIDDEN, CLASSES, HEADS)
        "w2": init(k5, (HEADS * HIDDEN, HEADS * CLASSES)),
        "att_src2": init(k6, (HEADS, CLASSES)),
        "att_dst2": init(k7, (HEADS, CLASSES)),
        "b2": init(k8, (HEADS * CLASSES,)),
    }

    # TODO(synk): the `masking` train/val/test split utility is data prep, not part
    # of the forward compute, so it is not reproduced here.

    out = gcn_forward(x, adj, params, heads=HEADS, hidden=HIDDEN,
                      num_classes=CLASSES)
    out = jax.block_until_ready(out)
    assert out.shape == (N, HEADS * CLASSES), out.shape

    ref = gcn_forward_ref(x, adj, params, HEADS, HIDDEN, CLASSES)
    assert jnp.allclose(out, ref, rtol=1e-2, atol=1e-2), float(
        jnp.max(jnp.abs(out - ref)))

    print("KERNEL_OK")
</pallas_src>

<mosaic_0001>
module attributes {stable_mosaic.version = 11 : i64} {
  func.func @kernel(%arg0: memref<64x16xf32, #tpu.memory_space<vmem>>, %arg1: memref<64x64xf32, #tpu.memory_space<vmem>>, %arg2: memref<16x32xf32, #tpu.memory_space<vmem>>, %arg3: memref<4x8xf32, #tpu.memory_space<vmem>>, %arg4: memref<4x8xf32, #tpu.memory_space<vmem>>, %arg5: memref<1x32xf32, #tpu.memory_space<vmem>>, %arg6: memref<32x16xf32, #tpu.memory_space<vmem>>, %arg7: memref<4x4xf32, #tpu.memory_space<vmem>>, %arg8: memref<4x4xf32, #tpu.memory_space<vmem>>, %arg9: memref<1x16xf32, #tpu.memory_space<vmem>>, %arg10: memref<64x16xf32, #tpu.memory_space<vmem>>) attributes {dimension_semantics = [], scalar_prefetch = 0 : i64, scratch_operands = 0 : i64, tpu.core_type = #tpu.core_type<tc>} {
    %c0 = arith.constant 0 : index
    %c0_0 = arith.constant 0 : index
    %0 = vector.load %arg1[%c0, %c0_0] : memref<64x64xf32, #tpu.memory_space<vmem>>, vector<64x64xf32>
    %c0_1 = arith.constant 0 : index
    %c0_2 = arith.constant 0 : index
    %1 = vector.load %arg0[%c0_1, %c0_2] : memref<64x16xf32, #tpu.memory_space<vmem>>, vector<64x16xf32>
    %c0_3 = arith.constant 0 : index
    %c0_4 = arith.constant 0 : index
    %2 = vector.load %arg2[%c0_3, %c0_4] : memref<16x32xf32, #tpu.memory_space<vmem>>, vector<16x32xf32>
    %cst = arith.constant dense<0.000000e+00> : vector<64x32xf32>
    %3 = tpu.matmul %1, %2, %cst {dimension_numbers = #tpu.dot_dimension_numbers<[1], [0], [0], [1], [0, 0, 1, 1], [], []>} : vector<64x16xf32>, vector<16x32xf32>, vector<64x32xf32> -> vector<64x32xf32>
    %4 = vector.extract_strided_slice %3 {offsets = [0, 0], sizes = [64, 8], strides = [1, 1]} : vector<64x32xf32> to vector<64x8xf32>
    %c0_5 = arith.constant 0 : index
    %c0_6 = arith.constant 0 : index
    %5 = vector.load %arg3[%c0_5, %c0_6] : memref<4x8xf32, #tpu.memory_space<vmem>>, vector<1x8xf32>
    %c0_7 = arith.constant 0 : index
    %c0_8 = arith.constant 0 : index
    %6 = vector.load %arg4[%c0_7, %c0_8] : memref<4x8xf32, #tpu.memory_space<vmem>>, vector<1x8xf32>
    %cst_9 = arith.constant dense<0.000000e+00> : vector<64x1xf32>
    %7 = tpu.matmul %4, %6, %cst_9 {dimension_numbers = #tpu.dot_dimension_numbers<[1], [1], [0], [0], [0, 0, 1, 0], [], []>} : vector<64x8xf32>, vector<1x8xf32>, vector<64x1xf32> -> vector<64x1xf32>
    %cst_10 = arith.constant dense<0.000000e+00> : vector<1x64xf32>
    %8 = tpu.matmul %5, %4, %cst_10 {dimension_numbers = #tpu.dot_dimension_numbers<[1], [1], [0], [0], [0, 0, 1, 0], [], []>} : vector<1x8xf32>, vector<64x8xf32>, vector<1x64xf32> -> vector<1x64xf32>
    %9 = vector.broadcast %7 : vector<64x1xf32> to vector<64x64xf32>
    %10 = vector.broadcast %8 : vector<1x64xf32> to vector<64x64xf32>
    %11 = arith.addf %9, %10 : vector<64x64xf32>
    %cst_11 = arith.constant 0.000000e+00 : f32
    %12 = vector.broadcast %cst_11 : f32 to vector<64x64xf32>
    %13 = arith.cmpf ogt, %11, %12 : vector<64x64xf32>
    %cst_12 = arith.constant 2.000000e-01 : f32
    %14 = vector.broadcast %cst_12 : f32 to vector<64x64xf32>
    %15 = arith.mulf %14, %11 : vector<64x64xf32>
    %16 = arith.select %13, %11, %15 : vector<64x64xi1>, vector<64x64xf32>
    %cst_13 = arith.constant 0.000000e+00 : f32
    %17 = vector.broadcast %cst_13 : f32 to vector<64x64xf32>
    %18 = arith.cmpf ogt, %0, %17 : vector<64x64xf32>
    %cst_14 = arith.constant -1.000000e+30 : f32
    %19 = vector.broadcast %cst_14 : f32 to vector<64x64xf32>
    %20 = arith.select %18, %16, %19 : vector<64x64xi1>, vector<64x64xf32>
    %cst_15 = arith.constant dense<0xFF800000> : vector<64xf32>
    %21 = vector.multi_reduction <maximumf>, %20, %cst_15 [1] : vector<64x64xf32> to vector<64xf32>
    %22 = vector.shape_cast %21 : vector<64xf32> to vector<64x1xf32>
    %23 = vector.broadcast %22 : vector<64x1xf32> to vector<64x64xf32>
    %24 = arith.subf %20, %23 : vector<64x64xf32>
    %25 = math.exp %24 : vector<64x64xf32>
    %cst_16 = arith.constant dense<0.000000e+00> : vector<64xf32>
    %26 = vector.multi_reduction <add>, %25, %cst_16 [1] : vector<64x64xf32> to vector<64xf32>
    %27 = vector.shape_cast %26 : vector<64xf32> to vector<64x1xf32>
    %28 = vector.broadcast %27 : vector<64x1xf32> to vector<64x64xf32>
    %29 = arith.divf %25, %28 : vector<64x64xf32>
    %cst_17 = arith.constant dense<0.000000e+00> : vector<64x8xf32>
    %30 = tpu.matmul %29, %4, %cst_17 {dimension_numbers = #tpu.dot_dimension_numbers<[1], [0], [0], [1], [0, 0, 1, 1], [], []>} : vector<64x64xf32>, vector<64x8xf32>, vector<64x8xf32> -> vector<64x8xf32>
    %31 = vector.extract_strided_slice %3 {offsets = [0, 8], sizes = [64, 8], strides = [1, 1]} : vector<64x32xf32> to vector<64x8xf32>
    %c1 = arith.constant 1 : index
    %c0_18 = arith.constant 0 : index
    %32 = vector.load %arg3[%c1, %c0_18] : memref<4x8xf32, #tpu.memory_space<vmem>>, vector<1x8xf32>
    %c1_19 = arith.constant 1 : index
    %c0_20 = arith.constant 0 : index
    %33 = vector.load %arg4[%c1_19, %c0_20] : memref<4x8xf32, #tpu.memory_space<vmem>>, vector<1x8xf32>
    %cst_21 = arith.constant dense<0.000000e+00> : vector<64x1xf32>
    %34 = tpu.matmul %31, %33, %cst_21 {dimension_numbers = #tpu.dot_dimension_numbers<[1], [1], [0], [0], [0, 0, 1, 0], [], []>} : vector<64x8xf32>, vector<1x8xf32>, vector<64x1xf32> -> vector<64x1xf32>
    %cst_22 = arith.constant dense<0.000000e+00> : vector<1x64xf32>
    %35 = tpu.matmul %32, %31, %cst_22 {dimension_numbers = #tpu.dot_dimension_numbers<[1], [1], [0], [0], [0, 0, 1, 0], [], []>} : vector<1x8xf32>, vector<64x8xf32>, vector<1x64xf32> -> vector<1x64xf32>
    %36 = vector.broadcast %34 : vector<64x1xf32> to vector<64x64xf32>
    %37 = vector.broadcast %35 : vector<1x64xf32> to vector<64x64xf32>
    %38 = arith.addf %36, %37 : vector<64x64xf32>
    %cst_23 = arith.constant 0.000000e+00 : f32
    %39 = vector.broadcast %cst_23 : f32 to vector<64x64xf32>
    %40 = arith.cmpf ogt, %38, %39 : vector<64x64xf32>
    %cst_24 = arith.constant 2.000000e-01 : f32
    %41 = vector.broadcast %cst_24 : f32 to vector<64x64xf32>
    %42 = arith.mulf %41, %38 : vector<64x64xf32>
    %43 = arith.select %40, %38, %42 : vector<64x64xi1>, vector<64x64xf32>
    %cst_25 = arith.constant 0.000000e+00 : f32
    %44 = vector.broadcast %cst_25 : f32 to vector<64x64xf32>
    %45 = arith.cmpf ogt, %0, %44 : vector<64x64xf32>
    %cst_26 = arith.constant -1.000000e+30 : f32
    %46 = vector.broadcast %cst_26 : f32 to vector<64x64xf32>
    %47 = arith.select %45, %43, %46 : vector<64x64xi1>, vector<64x64xf32>
    %cst_27 = arith.constant dense<0xFF800000> : vector<64xf32>
    %48 = vector.multi_reduction <maximumf>, %47, %cst_27 [1] : vector<64x64xf32> to vector<64xf32>
    %49 = vector.shape_cast %48 : vector<64xf32> to vector<64x1xf32>
    %50 = vector.broadcast %49 : vector<64x1xf32> to vector<64x64xf32>
    %51 = arith.subf %47, %50 : vector<64x64xf32>
    %52 = math.exp %51 : vector<64x64xf32>
    %cst_28 = arith.constant dense<0.000000e+00> : vector<64xf32>
    %53 = vector.multi_reduction <add>, %52, %cst_28 [1] : vector<64x64xf32> to vector<64xf32>
    %54 = vector.shape_cast %53 : vector<64xf32> to vector<64x1xf32>
    %55 = vector.broadcast %54 : vector<64x1xf32> to vector<64x64xf32>
    %56 = arith.divf %52, %55 : vector<64x64xf32>
    %cst_29 = arith.constant dense<0.000000e+00> : vector<64x8xf32>
    %57 = tpu.matmul %56, %31, %cst_29 {dimension_numbers = #tpu.dot_dimension_numbers<[1], [0], [0], [1], [0, 0, 1, 1], [], []>} : vector<64x64xf32>, vector<64x8xf32>, vector<64x8xf32> -> vector<64x8xf32>
    %58 = vector.extract_strided_slice %3 {offsets = [0, 16], sizes = [64, 8], strides = [1, 1]} : vector<64x32xf32> to vector<64x8xf32>
    %c2 = arith.constant 2 : index
    %c0_30 = arith.constant 0 : index
    %59 = vector.load %arg3[%c2, %c0_30] : memref<4x8xf32, #tpu.memory_space<vmem>>, vector<1x8xf32>
    %c2_31 = arith.constant 2 : index
    %c0_32 = arith.constant 0 : index
    %60 = vector.load %arg4[%c2_31, %c0_32] : memref<4x8xf32, #tpu.memory_space<vmem>>, vector<1x8xf32>
    %cst_33 = arith.constant dense<0.000000e+00> : vector<64x1xf32>
    %61 = tpu.matmul %58, %60, %cst_33 {dimension_numbers = #tpu.dot_dimension_numbers<[1], [1], [0], [0], [0, 0, 1, 0], [], []>} : vector<64x8xf32>, vector<1x8xf32>, vector<64x1xf32> -> vector<64x1xf32>
    %cst_34 = arith.constant dense<0.000000e+00> : vector<1x64xf32>
    %62 = tpu.matmul %59, %58, %cst_34 {dimension_numbers = #tpu.dot_dimension_numbers<[1], [1], [0], [0], [0, 0, 1, 0], [], []>} : vector<1x8xf32>, vector<64x8xf32>, vector<1x64xf32> -> vector<1x64xf32>
    %63 = vector.broadcast %61 : vector<64x1xf32> to vector<64x64xf32>
    %64 = vector.broadcast %62 : vector<1x64xf32> to vector<64x64xf32>
    %65 = arith.addf %63, %64 : vector<64x64xf32>
    %cst_35 = arith.constant 0.000000e+00 : f32
    %66 = vector.broadcast %cst_35 : f32 to vector<64x64xf32>
    %67 = arith.cmpf ogt, %65, %66 : vector<64x64xf32>
    %cst_36 = arith.constant 2.000000e-01 : f32
    %68 = vector.broadcast %cst_36 : f32 to vector<64x64xf32>
    %69 = arith.mulf %68, %65 : vector<64x64xf32>
    %70 = arith.select %67, %65, %69 : vector<64x64xi1>, vector<64x64xf32>
    %cst_37 = arith.constant 0.000000e+00 : f32
    %71 = vector.broadcast %cst_37 : f32 to vector<64x64xf32>
    %72 = arith.cmpf ogt, %0, %71 : vector<64x64xf32>
    %cst_38 = arith.constant -1.000000e+30 : f32
    %73 = vector.broadcast %cst_38 : f32 to vector<64x64xf32>
    %74 = arith.select %72, %70, %73 : vector<64x64xi1>, vector<64x64xf32>
    %cst_39 = arith.constant dense<0xFF800000> : vector<64xf32>
    %75 = vector.multi_reduction <maximumf>, %74, %cst_39 [1] : vector<64x64xf32> to vector<64xf32>
    %76 = vector.shape_cast %75 : vector<64xf32> to vector<64x1xf32>
    %77 = vector.broadcast %76 : vector<64x1xf32> to vector<64x64xf32>
    %78 = arith.subf %74, %77 : vector<64x64xf32>
    %79 = math.exp %78 : vector<64x64xf32>
    %cst_40 = arith.constant dense<0.000000e+00> : vector<64xf32>
    %80 = vector.multi_reduction <add>, %79, %cst_40 [1] : vector<64x64xf32> to vector<64xf32>
    %81 = vector.shape_cast %80 : vector<64xf32> to vector<64x1xf32>
    %82 = vector.broadcast %81 : vector<64x1xf32> to vector<64x64xf32>
    %83 = arith.divf %79, %82 : vector<64x64xf32>
    %cst_41 = arith.constant dense<0.000000e+00> : vector<64x8xf32>
    %84 = tpu.matmul %83, %58, %cst_41 {dimension_numbers = #tpu.dot_dimension_numbers<[1], [0], [0], [1], [0, 0, 1, 1], [], []>} : vector<64x64xf32>, vector<64x8xf32>, vector<64x8xf32> -> vector<64x8xf32>
    %85 = vector.extract_strided_slice %3 {offsets = [0, 24], sizes = [64, 8], strides = [1, 1]} : vector<64x32xf32> to vector<64x8xf32>
    %c3 = arith.constant 3 : index
    %c0_42 = arith.constant 0 : index
    %86 = vector.load %arg3[%c3, %c0_42] : memref<4x8xf32, #tpu.memory_space<vmem>>, vector<1x8xf32>
    %c3_43 = arith.constant 3 : index
    %c0_44 = arith.constant 0 : index
    %87 = vector.load %arg4[%c3_43, %c0_44] : memref<4x8xf32, #tpu.memory_space<vmem>>, vector<1x8xf32>
    %cst_45 = arith.constant dense<0.000000e+00> : vector<64x1xf32>
    %88 = tpu.matmul %85, %87, %cst_45 {dimension_numbers = #tpu.dot_dimension_numbers<[1], [1], [0], [0], [0, 0, 1, 0], [], []>} : vector<64x8xf32>, vector<1x8xf32>, vector<64x1xf32> -> vector<64x1xf32>
    %cst_46 = arith.constant dense<0.000000e+00> : vector<1x64xf32>
    %89 = tpu.matmul %86, %85, %cst_46 {dimension_numbers = #tpu.dot_dimension_numbers<[1], [1], [0], [0], [0, 0, 1, 0], [], []>} : vector<1x8xf32>, vector<64x8xf32>, vector<1x64xf32> -> vector<1x64xf32>
    %90 = vector.broadcast %88 : vector<64x1xf32> to vector<64x64xf32>
    %91 = vector.broadcast %89 : vector<1x64xf32> to vector<64x64xf32>
    %92 = arith.addf %90, %91 : vector<64x64xf32>
    %cst_47 = arith.constant 0.000000e+00 : f32
    %93 = vector.broadcast %cst_47 : f32 to vector<64x64xf32>
    %94 = arith.cmpf ogt, %92, %93 : vector<64x64xf32>
    %cst_48 = arith.constant 2.000000e-01 : f32
    %95 = vector.broadcast %cst_48 : f32 to vector<64x64xf32>
    %96 = arith.mulf %95, %92 : vector<64x64xf32>
    %97 = arith.select %94, %92, %96 : vector<64x64xi1>, vector<64x64xf32>
    %cst_49 = arith.constant 0.000000e+00 : f32
    %98 = vector.broadcast %cst_49 : f32 to vector<64x64xf32>
    %99 = arith.cmpf ogt, %0, %98 : vector<64x64xf32>
    %cst_50 = arith.constant -1.000000e+30 : f32
    %100 = vector.broadcast %cst_50 : f32 to vector<64x64xf32>
    %101 = arith.select %99, %97, %100 : vector<64x64xi1>, vector<64x64xf32>
    %cst_51 = arith.constant dense<0xFF800000> : vector<64xf32>
    %102 = vector.multi_reduction <maximumf>, %101, %cst_51 [1] : vector<64x64xf32> to vector<64xf32>
    %103 = vector.shape_cast %102 : vector<64xf32> to vector<64x1xf32>
    %104 = vector.broadcast %103 : vector<64x1xf32> to vector<64x64xf32>
    %105 = arith.subf %101, %104 : vector<64x64xf32>
    %106 = math.exp %105 : vector<64x64xf32>
    %cst_52 = arith.constant dense<0.000000e+00> : vector<64xf32>
    %107 = vector.multi_reduction <add>, %106, %cst_52 [1] : vector<64x64xf32> to vector<64xf32>
    %108 = vector.shape_cast %107 : vector<64xf32> to vector<64x1xf32>
    %109 = vector.broadcast %108 : vector<64x1xf32> to vector<64x64xf32>
    %110 = arith.divf %106, %109 : vector<64x64xf32>
    %cst_53 = arith.constant dense<0.000000e+00> : vector<64x8xf32>
    %111 = tpu.matmul %110, %85, %cst_53 {dimension_numbers = #tpu.dot_dimension_numbers<[1], [0], [0], [1], [0, 0, 1, 1], [], []>} : vector<64x64xf32>, vector<64x8xf32>, vector<64x8xf32> -> vector<64x8xf32>
    %112 = tpu.concatenate %30, %57, %84, %111 in 1 : vector<64x8xf32>, vector<64x8xf32>, vector<64x8xf32>, vector<64x8xf32> -> vector<64x32xf32>
    %c0_54 = arith.constant 0 : index
    %c0_55 = arith.constant 0 : index
    %113 = vector.load %arg5[%c0_54, %c0_55] : memref<1x32xf32, #tpu.memory_space<vmem>>, vector<1x32xf32>
    %114 = vector.broadcast %113 : vector<1x32xf32> to vector<64x32xf32>
    %115 = arith.addf %112, %114 : vector<64x32xf32>
    %cst_56 = arith.constant 0.000000e+00 : f32
    %116 = vector.broadcast %cst_56 : f32 to vector<64x32xf32>
    %117 = arith.cmpf ogt, %115, %116 : vector<64x32xf32>
    %118 = math.exp %115 : vector<64x32xf32>
    %cst_57 = arith.constant 1.000000e+00 : f32
    %119 = vector.broadcast %cst_57 : f32 to vector<64x32xf32>
    %120 = arith.subf %118, %119 : vector<64x32xf32>
    %121 = arith.select %117, %115, %120 : vector<64x32xi1>, vector<64x32xf32>
    %c0_58 = arith.constant 0 : index
    %c0_59 = arith.constant 0 : index
    %122 = vector.load %arg6[%c0_58, %c0_59] : memref<32x16xf32, #tpu.memory_space<vmem>>, vector<32x16xf32>
    %cst_60 = arith.constant dense<0.000000e+00> : vector<64x16xf32>
    %123 = tpu.matmul %121, %122, %cst_60 {dimension_numbers = #tpu.dot_dimension_numbers<[1], [0], [0], [1], [0, 0, 1, 1], [], []>} : vector<64x32xf32>, vector<32x16xf32>, vector<64x16xf32> -> vector<64x16xf32>
    %124 = vector.extract_strided_slice %123 {offsets = [0, 0], sizes = [64, 4], strides = [1, 1]} : vector<64x16xf32> to vector<64x4xf32>
    %c0_61 = arith.constant 0 : index
    %c0_62 = arith.constant 0 : index
    %125 = vector.load %arg7[%c0_61, %c0_62] : memref<4x4xf32, #tpu.memory_space<vmem>>, vector<1x4xf32>
    %c0_63 = arith.constant 0 : index
    %c0_64 = arith.constant 0 : index
    %126 = vector.load %arg8[%c0_63, %c0_64] : memref<4x4xf32, #tpu.memory_space<vmem>>, vector<1x4xf32>
    %cst_65 = arith.constant dense<0.000000e+00> : vector<64x1xf32>
    %127 = tpu.matmul %124, %126, %cst_65 {dimension_numbers = #tpu.dot_dimension_numbers<[1], [1], [0], [0], [0, 0, 1, 0], [], []>} : vector<64x4xf32>, vector<1x4xf32>, vector<64x1xf32> -> vector<64x1xf32>
    %cst_66 = arith.constant dense<0.000000e+00> : vector<1x64xf32>
    %128 = tpu.matmul %125, %124, %cst_66 {dimension_numbers = #tpu.dot_dimension_numbers<[1], [1], [0], [0], [0, 0, 1, 0], [], []>} : vector<1x4xf32>, vector<64x4xf32>, vector<1x64xf32> -> vector<1x64xf32>
    %129 = vector.broadcast %127 : vector<64x1xf32> to vector<64x64xf32>
    %130 = vector.broadcast %128 : vector<1x64xf32> to vector<64x64xf32>
    %131 = arith.addf %129, %130 : vector<64x64xf32>
    %cst_67 = arith.constant 0.000000e+00 : f32
    %132 = vector.broadcast %cst_67 : f32 to vector<64x64xf32>
    %133 = arith.cmpf ogt, %131, %132 : vector<64x64xf32>
    %cst_68 = arith.constant 2.000000e-01 : f32
    %134 = vector.broadcast %cst_68 : f32 to vector<64x64xf32>
    %135 = arith.mulf %134, %131 : vector<64x64xf32>
    %136 = arith.select %133, %131, %135 : vector<64x64xi1>, vector<64x64xf32>
    %cst_69 = arith.constant 0.000000e+00 : f32
    %137 = vector.broadcast %cst_69 : f32 to vector<64x64xf32>
    %138 = arith.cmpf ogt, %0, %137 : vector<64x64xf32>
    %cst_70 = arith.constant -1.000000e+30 : f32
    %139 = vector.broadcast %cst_70 : f32 to vector<64x64xf32>
    %140 = arith.select %138, %136, %139 : vector<64x64xi1>, vector<64x64xf32>
    %cst_71 = arith.constant dense<0xFF800000> : vector<64xf32>
    %141 = vector.multi_reduction <maximumf>, %140, %cst_71 [1] : vector<64x64xf32> to vector<64xf32>
    %142 = vector.shape_cast %141 : vector<64xf32> to vector<64x1xf32>
    %143 = vector.broadcast %142 : vector<64x1xf32> to vector<64x64xf32>
    %144 = arith.subf %140, %143 : vector<64x64xf32>
    %145 = math.exp %144 : vector<64x64xf32>
    %cst_72 = arith.constant dense<0.000000e+00> : vector<64xf32>
    %146 = vector.multi_reduction <add>, %145, %cst_72 [1] : vector<64x64xf32> to vector<64xf32>
    %147 = vector.shape_cast %146 : vector<64xf32> to vector<64x1xf32>
    %148 = vector.broadcast %147 : vector<64x1xf32> to vector<64x64xf32>
    %149 = arith.divf %145, %148 : vector<64x64xf32>
    %cst_73 = arith.constant dense<0.000000e+00> : vector<64x4xf32>
    %150 = tpu.matmul %149, %124, %cst_73 {dimension_numbers = #tpu.dot_dimension_numbers<[1], [0], [0], [1], [0, 0, 1, 1], [], []>} : vector<64x64xf32>, vector<64x4xf32>, vector<64x4xf32> -> vector<64x4xf32>
    %151 = vector.extract_strided_slice %123 {offsets = [0, 4], sizes = [64, 4], strides = [1, 1]} : vector<64x16xf32> to vector<64x4xf32>
    %c1_74 = arith.constant 1 : index
    %c0_75 = arith.constant 0 : index
    %152 = vector.load %arg7[%c1_74, %c0_75] : memref<4x4xf32, #tpu.memory_space<vmem>>, vector<1x4xf32>
    %c1_76 = arith.constant 1 : index
    %c0_77 = arith.constant 0 : index
    %153 = vector.load %arg8[%c1_76, %c0_77] : memref<4x4xf32, #tpu.memory_space<vmem>>, vector<1x4xf32>
    %cst_78 = arith.constant dense<0.000000e+00> : vector<64x1xf32>
    %154 = tpu.matmul %151, %153, %cst_78 {dimension_numbers = #tpu.dot_dimension_numbers<[1], [1], [0], [0], [0, 0, 1, 0], [], []>} : vector<64x4xf32>, vector<1x4xf32>, vector<64x1xf32> -> vector<64x1xf32>
    %cst_79 = arith.constant dense<0.000000e+00> : vector<1x64xf32>
    %155 = tpu.matmul %152, %151, %cst_79 {dimension_numbers = #tpu.dot_dimension_numbers<[1], [1], [0], [0], [0, 0, 1, 0], [], []>} : vector<1x4xf32>, vector<64x4xf32>, vector<1x64xf32> -> vector<1x64xf32>
    %156 = vector.broadcast %154 : vector<64x1xf32> to vector<64x64xf32>
    %157 = vector.broadcast %155 : vector<1x64xf32> to vector<64x64xf32>
    %158 = arith.addf %156, %157 : vector<64x64xf32>
    %cst_80 = arith.constant 0.000000e+00 : f32
    %159 = vector.broadcast %cst_80 : f32 to vector<64x64xf32>
    %160 = arith.cmpf ogt, %158, %159 : vector<64x64xf32>
    %cst_81 = arith.constant 2.000000e-01 : f32
    %161 = vector.broadcast %cst_81 : f32 to vector<64x64xf32>
    %162 = arith.mulf %161, %158 : vector<64x64xf32>
    %163 = arith.select %160, %158, %162 : vector<64x64xi1>, vector<64x64xf32>
    %cst_82 = arith.constant 0.000000e+00 : f32
    %164 = vector.broadcast %cst_82 : f32 to vector<64x64xf32>
    %165 = arith.cmpf ogt, %0, %164 : vector<64x64xf32>
    %cst_83 = arith.constant -1.000000e+30 : f32
    %166 = vector.broadcast %cst_83 : f32 to vector<64x64xf32>
    %167 = arith.select %165, %163, %166 : vector<64x64xi1>, vector<64x64xf32>
    %cst_84 = arith.constant dense<0xFF800000> : vector<64xf32>
    %168 = vector.multi_reduction <maximumf>, %167, %cst_84 [1] : vector<64x64xf32> to vector<64xf32>
    %169 = vector.shape_cast %168 : vector<64xf32> to vector<64x1xf32>
    %170 = vector.broadcast %169 : vector<64x1xf32> to vector<64x64xf32>
    %171 = arith.subf %167, %170 : vector<64x64xf32>
    %172 = math.exp %171 : vector<64x64xf32>
    %cst_85 = arith.constant dense<0.000000e+00> : vector<64xf32>
    %173 = vector.multi_reduction <add>, %172, %cst_85 [1] : vector<64x64xf32> to vector<64xf32>
    %174 = vector.shape_cast %173 : vector<64xf32> to vector<64x1xf32>
    %175 = vector.broadcast %174 : vector<64x1xf32> to vector<64x64xf32>
    %176 = arith.divf %172, %175 : vector<64x64xf32>
    %cst_86 = arith.constant dense<0.000000e+00> : vector<64x4xf32>
    %177 = tpu.matmul %176, %151, %cst_86 {dimension_numbers = #tpu.dot_dimension_numbers<[1], [0], [0], [1], [0, 0, 1, 1], [], []>} : vector<64x64xf32>, vector<64x4xf32>, vector<64x4xf32> -> vector<64x4xf32>
    %178 = vector.extract_strided_slice %123 {offsets = [0, 8], sizes = [64, 4], strides = [1, 1]} : vector<64x16xf32> to vector<64x4xf32>
    %c2_87 = arith.constant 2 : index
    %c0_88 = arith.constant 0 : index
    %179 = vector.load %arg7[%c2_87, %c0_88] : memref<4x4xf32, #tpu.memory_space<vmem>>, vector<1x4xf32>
    %c2_89 = arith.constant 2 : index
    %c0_90 = arith.constant 0 : index
    %180 = vector.load %arg8[%c2_89, %c0_90] : memref<4x4xf32, #tpu.memory_space<vmem>>, vector<1x4xf32>
    %cst_91 = arith.constant dense<0.000000e+00> : vector<64x1xf32>
    %181 = tpu.matmul %178, %180, %cst_91 {dimension_numbers = #tpu.dot_dimension_numbers<[1], [1], [0], [0], [0, 0, 1, 0], [], []>} : vector<64x4xf32>, vector<1x4xf32>, vector<64x1xf32> -> vector<64x1xf32>
    %cst_92 = arith.constant dense<0.000000e+00> : vector<1x64xf32>
    %182 = tpu.matmul %179, %178, %cst_92 {dimension_numbers = #tpu.dot_dimension_numbers<[1], [1], [0], [0], [0, 0, 1, 0], [], []>} : vector<1x4xf32>, vector<64x4xf32>, vector<1x64xf32> -> vector<1x64xf32>
    %183 = vector.broadcast %181 : vector<64x1xf32> to vector<64x64xf32>
    %184 = vector.broadcast %182 : vector<1x64xf32> to vector<64x64xf32>
    %185 = arith.addf %183, %184 : vector<64x64xf32>
    %cst_93 = arith.constant 0.000000e+00 : f32
    %186 = vector.broadcast %cst_93 : f32 to vector<64x64xf32>
    %187 = arith.cmpf ogt, %185, %186 : vector<64x64xf32>
    %cst_94 = arith.constant 2.000000e-01 : f32
    %188 = vector.broadcast %cst_94 : f32 to vector<64x64xf32>
    %189 = arith.mulf %188, %185 : vector<64x64xf32>
    %190 = arith.select %187, %185, %189 : vector<64x64xi1>, vector<64x64xf32>
    %cst_95 = arith.constant 0.000000e+00 : f32
    %191 = vector.broadcast %cst_95 : f32 to vector<64x64xf32>
    %192 = arith.cmpf ogt, %0, %191 : vector<64x64xf32>
    %cst_96 = arith.constant -1.000000e+30 : f32
    %193 = vector.broadcast %cst_96 : f32 to vector<64x64xf32>
    %194 = arith.select %192, %190, %193 : vector<64x64xi1>, vector<64x64xf32>
    %cst_97 = arith.constant dense<0xFF800000> : vector<64xf32>
    %195 = vector.multi_reduction <maximumf>, %194, %cst_97 [1] : vector<64x64xf32> to vector<64xf32>
    %196 = vector.shape_cast %195 : vector<64xf32> to vector<64x1xf32>
    %197 = vector.broadcast %196 : vector<64x1xf32> to vector<64x64xf32>
    %198 = arith.subf %194, %197 : vector<64x64xf32>
    %199 = math.exp %198 : vector<64x64xf32>
    %cst_98 = arith.constant dense<0.000000e+00> : vector<64xf32>
    %200 = vector.multi_reduction <add>, %199, %cst_98 [1] : vector<64x64xf32> to vector<64xf32>
    %201 = vector.shape_cast %200 : vector<64xf32> to vector<64x1xf32>
    %202 = vector.broadcast %201 : vector<64x1xf32> to vector<64x64xf32>
    %203 = arith.divf %199, %202 : vector<64x64xf32>
    %cst_99 = arith.constant dense<0.000000e+00> : vector<64x4xf32>
    %204 = tpu.matmul %203, %178, %cst_99 {dimension_numbers = #tpu.dot_dimension_numbers<[1], [0], [0], [1], [0, 0, 1, 1], [], []>} : vector<64x64xf32>, vector<64x4xf32>, vector<64x4xf32> -> vector<64x4xf32>
    %205 = vector.extract_strided_slice %123 {offsets = [0, 12], sizes = [64, 4], strides = [1, 1]} : vector<64x16xf32> to vector<64x4xf32>
    %c3_100 = arith.constant 3 : index
    %c0_101 = arith.constant 0 : index
    %206 = vector.load %arg7[%c3_100, %c0_101] : memref<4x4xf32, #tpu.memory_space<vmem>>, vector<1x4xf32>
    %c3_102 = arith.constant 3 : index
    %c0_103 = arith.constant 0 : index
    %207 = vector.load %arg8[%c3_102, %c0_103] : memref<4x4xf32, #tpu.memory_space<vmem>>, vector<1x4xf32>
    %cst_104 = arith.constant dense<0.000000e+00> : vector<64x1xf32>
    %208 = tpu.matmul %205, %207, %cst_104 {dimension_numbers = #tpu.dot_dimension_numbers<[1], [1], [0], [0], [0, 0, 1, 0], [], []>} : vector<64x4xf32>, vector<1x4xf32>, vector<64x1xf32> -> vector<64x1xf32>
    %cst_105 = arith.constant dense<0.000000e+00> : vector<1x64xf32>
    %209 = tpu.matmul %206, %205, %cst_105 {dimension_numbers = #tpu.dot_dimension_numbers<[1], [1], [0], [0], [0, 0, 1, 0], [], []>} : vector<1x4xf32>, vector<64x4xf32>, vector<1x64xf32> -> vector<1x64xf32>
    %210 = vector.broadcast %208 : vector<64x1xf32> to vector<64x64xf32>
    %211 = vector.broadcast %209 : vector<1x64xf32> to vector<64x64xf32>
    %212 = arith.addf %210, %211 : vector<64x64xf32>
    %cst_106 = arith.constant 0.000000e+00 : f32
    %213 = vector.broadcast %cst_106 : f32 to vector<64x64xf32>
    %214 = arith.cmpf ogt, %212, %213 : vector<64x64xf32>
    %cst_107 = arith.constant 2.000000e-01 : f32
    %215 = vector.broadcast %cst_107 : f32 to vector<64x64xf32>
    %216 = arith.mulf %215, %212 : vector<64x64xf32>
    %217 = arith.select %214, %212, %216 : vector<64x64xi1>, vector<64x64xf32>
    %cst_108 = arith.constant 0.000000e+00 : f32
    %218 = vector.broadcast %cst_108 : f32 to vector<64x64xf32>
    %219 = arith.cmpf ogt, %0, %218 : vector<64x64xf32>
    %cst_109 = arith.constant -1.000000e+30 : f32
    %220 = vector.broadcast %cst_109 : f32 to vector<64x64xf32>
    %221 = arith.select %219, %217, %220 : vector<64x64xi1>, vector<64x64xf32>
    %cst_110 = arith.constant dense<0xFF800000> : vector<64xf32>
    %222 = vector.multi_reduction <maximumf>, %221, %cst_110 [1] : vector<64x64xf32> to vector<64xf32>
    %223 = vector.shape_cast %222 : vector<64xf32> to vector<64x1xf32>
    %224 = vector.broadcast %223 : vector<64x1xf32> to vector<64x64xf32>
    %225 = arith.subf %221, %224 : vector<64x64xf32>
    %226 = math.exp %225 : vector<64x64xf32>
    %cst_111 = arith.constant dense<0.000000e+00> : vector<64xf32>
    %227 = vector.multi_reduction <add>, %226, %cst_111 [1] : vector<64x64xf32> to vector<64xf32>
    %228 = vector.shape_cast %227 : vector<64xf32> to vector<64x1xf32>
    %229 = vector.broadcast %228 : vector<64x1xf32> to vector<64x64xf32>
    %230 = arith.divf %226, %229 : vector<64x64xf32>
    %cst_112 = arith.constant dense<0.000000e+00> : vector<64x4xf32>
    %231 = tpu.matmul %230, %205, %cst_112 {dimension_numbers = #tpu.dot_dimension_numbers<[1], [0], [0], [1], [0, 0, 1, 1], [], []>} : vector<64x64xf32>, vector<64x4xf32>, vector<64x4xf32> -> vector<64x4xf32>
    %232 = tpu.concatenate %150, %177, %204, %231 in 1 : vector<64x4xf32>, vector<64x4xf32>, vector<64x4xf32>, vector<64x4xf32> -> vector<64x16xf32>
    %c0_113 = arith.constant 0 : index
    %c0_114 = arith.constant 0 : index
    %233 = vector.load %arg9[%c0_113, %c0_114] : memref<1x16xf32, #tpu.memory_space<vmem>>, vector<1x16xf32>
    %234 = vector.broadcast %233 : vector<1x16xf32> to vector<64x16xf32>
    %235 = arith.addf %232, %234 : vector<64x16xf32>
    %c0_115 = arith.constant 0 : index
    %c0_116 = arith.constant 0 : index
    %236 = vector.load %arg10[%c0_115, %c0_116] : memref<64x16xf32, #tpu.memory_space<vmem>>, vector<64x16xf32>
    tpu.vector_store %arg10[%c0_115, %c0_116], %235 {strides = array<i32>} : memref<64x16xf32, #tpu.memory_space<vmem>>, vector<64x16xf32>,
    return
  }
}

</mosaic_0001>

<bundles_post_ra>
// kernel: gcn_forward.1
= control target key start
LH: loop header
LB: loop body
LE: loop exit
PB: predicated region body
PF: predicated region fallthrough
CT: control target
= control target key end

     0   :  { %vm7006_vm0 = vcmask 130048   ;;  %v5609_v11 = vmov 0.0|0.0   ;;  %vm7007_vm1 = vmmov 0   ;;  %v7011_v12 = vmov 0.0   ;;  %s5613_s12 = smov 8   ;;  %s5614_s14 = smov 112   ;;  %s6995_s2 = inlined_call_operand.vmem [shape: f32[16,32], index: 2, kind: input, shape index: {}]   ;;  %s6996_s0 = inlined_call_operand.vmem [shape: f32[64,16], index: 0, kind: input, shape index: {}]   ;;  %s6997_s4 = inlined_call_operand.vmem [shape: f32[4,8], index: 4, kind: input, shape index: {}]   ;;  %s6998_s3 = inlined_call_operand.vmem [shape: f32[4,8], index: 3, kind: input, shape index: {}]   ;;  %s6999_s1 = inlined_call_operand.vmem [shape: f32[64,64], index: 1, kind: input, shape index: {}]   ;;  %s7000_s6 = inlined_call_operand.vmem [shape: f32[32,16], index: 6, kind: input, shape index: {}]   ;;  %s7001_s5 = inlined_call_operand.vmem [shape: f32[1,32], index: 5, kind: input, shape index: {}]   ;;  %s7002_s8 = inlined_call_operand.vmem [shape: f32[4,4], index: 8, kind: input, shape index: {}]   ;;  %s7003_s7 = inlined_call_operand.vmem [shape: f32[4,4], index: 7, kind: input, shape index: {}]   ;;  %s7004_s9 = inlined_call_operand.vmem [shape: f32[1,16], index: 9, kind: input, shape index: {}]   ;;  %s7005_s10 = inlined_call_operand.vmem [shape: f32[64,16], index: 10, kind: output, shape index: {}]  }
   0x1   :  { %v51_v0 = vld [vmem:[%s6995_s2] sm:$0xff]  ;;  %v52_v1 = vld [vmem:[%s6995_s2 + $0x8] sm:$0xff]  ;;  %v45_v5 = vld [vmem:[%s6996_s0 + $0x10] sm:$0xff]  ;;  %4940 = vmatprep.subr.bf16.mxu1 %v5609_v11  ;;  %4556 = vmatprep.mubr.msk.f32.mxu1 %vm7007_vm1, %v7011_v12  ;;  %vm7009_vm2 = vcmask 64512   ;;  %v319_v50 = vlaneseq  ;;  %vm371_vm5 = vcmask 523264   ;;  %s5615_s17 = smov 16  }
   0x2   :  { %v43_v2 = vld [vmem:[%s6996_s0] sm:$0xff]  ;;  %v4936_v3 = vpack.c.bf16 %v52_v1, %v51_v0  ;;  %v44_v4 = vld [vmem:[%s6996_s0 + $0x8] sm:$0xff]  ;;  %v46_v6 = vld [vmem:[%s6996_s0 + $0x18] sm:$0xff]  ;;  %s5616_s20 = smov 104   ;;  %s5617_s2 = smov 24  }
   0x3   :  { %4528 = vmatprep.mubr.msk.f32.mxu0 %vm7006_vm0, %v43_v2  ;;  %v47_v7 = vld [vmem:[%s6996_s0 + $0x20] sm:$0xff]  ;;  %v48_v8 = vld [vmem:[%s6996_s0 + $0x28] sm:$0xff]  ;;  %v49_v9 = vld [vmem:[%s6996_s0 + $0x30] sm:$0xff]  ;;  %v320_v51 = vshrl.u32 %v319_v50, 7  ;;  %s5618_s15 = smov 124   ;;  %s5619_s18 = smov 4  }
   0x4   :  { %4937 = vmatprep.subr.bf16.mxu0 %v4936_v3  ;;  %v50_v10 = vld [vmem:[%s6996_s0 + $0x38] sm:$0xff]  ;;  %v4140_v13 = vld [vmem:[%s6997_s4] ss:$0 sm:$0xff]  ;;  %vm5727_vm3 = vmpackc.low %vm7009_vm2, %vm7009_vm2  ;;  %s5621_s24 = smov 12  }
   0x5   :  { %4939 = vmatpush3.bf16.msra.mxu0 %v4936_v3  ;;  %v183_v47 = vld [vmem:[%s6998_s3] sm:$0x1]  ;;  %v5799_v54 = vsub.s32 0, %v320_v51  ;;  %v5804_v55 = vld [vmem:[%s6999_s1 + $0x8] sm:$0xff]  ;;  %v5814_v59 = vld [vmem:[%s6999_s1 + $0x18] sm:$0xff] }
   0x6   :  { %v5809_v58 = vld [vmem:[%s6999_s1] sm:$0xff]  ;;  %v5819_v60 = vld [vmem:[%s6999_s1 + $0x10] sm:$0xff]  ;;  %vm7010_vm4 = vcmp.gt.f32.partialorder %v5804_v55, 0.0  ;;  %vm358_vm7 = vcmp.gt.f32.partialorder %v5814_v59, 0.0 }
   0x7   :  { %vm355_vm6 = vcmp.gt.f32.partialorder %v5809_v58, 0.0  ;;  %vm357_vm8 = vcmp.gt.f32.partialorder %v5819_v60, 0.0 }
   0x8   :  { %4529 = vmatmul.mubr.msk.f32.vlgmr.msra.gmra.mrb[0].mxu0 %vm7006_vm0, %v44_v4 }
   0x9   :  { %4531 = vmatprep.mubr.msk.f32.mxu0 %vm7006_vm0, %v45_v5 }
   0xc   :  { %4532 = vmatmul.mubr.msk.f32.gmra.mrb[2].mxu0 %vm7006_vm0, %v46_v6 }
   0xd   :  { %4534 = vmatprep.mubr.msk.f32.mxu0 %vm7006_vm0, %v47_v7 }
  0x10   :  { %4535 = vmatmul.mubr.msk.f32.gmra.mrb[4].mxu0 %vm7006_vm0, %v48_v8 }
  0x11   :  { %4537 = vmatprep.mubr.msk.f32.mxu0 %vm7006_vm0, %v49_v9 }
  0x14   :  { %4538 = vmatmul.mubr.msk.f32.gmra.mrb[6].mxu0 %vm7006_vm0, %v50_v10 }
  0xdb   :  { %v5721_v14 = vpop.f32.mrb[0].mxu0 }
  0xdc   :  { %v5723_v15 = vpop.f32.mrb[1].mxu0  ;;  %v190_v22 = vmul.f32 %v5721_v14, %v4140_v13 }
  0xdd   :  { %v4941_v17 = vpack.c.bf16 %v5721_v14, %v5723_v15  ;;  %v189_v18 = vmul.f32 %v4140_v13, %v5723_v15  ;;  %v5736_v19 = vpack.i.bf16 %v5721_v14, %v5723_v15 }
  0xde   :  { %v201_v28 = vsel %vm7009_vm2, %v190_v22, 0.0 }
  0xdf   :  { %v5738_v20 = vpop.f32.mrb[2].mxu0  ;;  %4943 = vmatpush3.bf16.xpose.msk.msra.mxu1 %vm5727_vm3, %v4941_v17  ;;  %4957 = vmatprep.subr.bf16.mxu0 %v4941_v17  ;;  %v198_v21 = vsel %vm7009_vm2, %v189_v18, 0.0 }
  0xe0   :  { %4959 = vmatpush3.bf16.msra.mxu0 %v4941_v17  ;;  %199 = vadd.xlane.f32.xlu0 %v198_v21  ;;  %v5744_v23 = vpop.f32.mrb[3].mxu0  ;;  %v192_v24 = vmul.f32 %v5738_v20, %v4140_v13 }
  0xe1   :  { %v191_v25 = vmul.f32 %v4140_v13, %v5744_v23  ;;  %v4945_v26 = vpack.c.bf16 %v5738_v20, %v5744_v23  ;;  %4944 = vmatprep.subr.bf16.mxu1 %v5609_v11  ;;  %v5753_v27 = vpack.i.bf16 %v5738_v20, %v5744_v23 }
  0xe2   :  { %v207_v31 = vsel %vm7009_vm2, %v192_v24, 0.0 }
  0xe3   :  { %v204_v29 = vsel %vm7009_vm2, %v191_v25, 0.0  ;;  %4961 = vmatprep.subr.bf16.mxu0 %v4945_v26  ;;  %v5757_v30 = vpop.f32.mrb[4].mxu0 }
  0xe4   :  { %202 = vadd.xlane.f32.xlu0 %v201_v28  ;;  %205 = vadd.xlane.f32.xlu1 %v204_v29  ;;  %v5760_v32 = vpop.f32.mrb[5].mxu0  ;;  %v194_v33 = vmul.f32 %v5757_v30, %v4140_v13 }
  0xe5   :  { %4963 = vmatpush3.bf16.msra.mxu0 %v4945_v26  ;;  %v4949_v34 = vpack.c.bf16 %v5757_v30, %v5760_v32  ;;  %v193_v35 = vmul.f32 %v4140_v13, %v5760_v32  ;;  %v5768_v36 = vpack.i.bf16 %v5757_v30, %v5760_v32 }
  0xe6   :  { %v213_v41 = vsel %vm7009_vm2, %v194_v33, 0.0  ;;  %v5838_v33 = vld [vmem:[%s6999_s1 + $0x20] sm:$0xff] }
  0xe7   :  { %4947 = vmatpush3.bf16.xpose.msk.msra.mxu1 %vm5727_vm3, %v4945_v26  ;;  %4965 = vmatprep.subr.bf16.mxu0 %v4949_v34  ;;  %v210_v37 = vsel %vm7009_vm2, %v193_v35, 0.0  ;;  %v5773_v38 = vpop.f32.mrb[6].mxu0 }
  0xe8   :  { %208 = vadd.xlane.f32.xlu1 %v207_v31  ;;  %4948 = vmatprep.subr.bf16.mxu1 %v5609_v11  ;;  %v5776_v39 = vpop.f32.mrb[7].mxu0  ;;  %v196_v40 = vmul.f32 %v5773_v38, %v4140_v13  ;;  %v5833_v31 = vld [vmem:[%s6999_s1 + $0x28] sm:$0xff] }
  0xe9   :  { %4967 = vmatpush3.bf16.msra.mxu0 %v4949_v34  ;;  %211 = vadd.xlane.f32.xlu0 %v210_v37  ;;  %v4953_v42 = vpack.c.bf16 %v5773_v38, %v5776_v39  ;;  %v195_v43 = vmul.f32 %v4140_v13, %v5776_v39  ;;  %v5785_v44 = vpack.i.bf16 %v5773_v38, %v5776_v39  ;;  %vm360_vm15 = vcmp.gt.f32.partialorder %v5833_v31, 0.0 }
  0xea   :  { %v219_v46 = vsel %vm7009_vm2, %v196_v40, 0.0 }
  0xeb   :  { %4969 = vmatprep.subr.bf16.mxu0 %v4953_v42  ;;  %v216_v45 = vsel %vm7009_vm2, %v195_v43, 0.0  ;;  %v5853_v43 = vld [vmem:[%s6999_s1 + $0x38] sm:$0xff] }
  0xec   :  { %214 = vadd.xlane.f32.xlu1 %v213_v41 }
  0xed   :  { %4971 = vmatpush3.bf16.msra.mxu0 %v4953_v42  ;;  %217 = vadd.xlane.f32.xlu0 %v216_v45  ;;  %v5858_v45 = vld [vmem:[%s6999_s1 + $0x30] sm:$0xff]  ;;  %s5612_s1 = smov 120  }
  0xee   :  { %4972 = vmatprep.subr.bf16.mxu0 %v5609_v11 }
  0xef   :  { %4951 = vmatpush3.bf16.xpose.msk.msra.mxu1 %vm5727_vm3, %v4949_v34 }
  0xf0   :  { %4952 = vmatprep.subr.bf16.mxu1 %v5609_v11  ;;  %220 = vadd.xlane.f32.xlu1 %v219_v46 }
  0xf7   :  { %4955 = vmatpush3.bf16.xpose.msk.msra.mxu1 %vm5727_vm3, %v4953_v42 }
  0xfe   :  { %4557 = vmatmul.mubr.msk.f32.vlgmr.msra.gmra.mrb[0].mxu1 %vm7009_vm2, %v183_v47 }
 0x16d   :  { %v200_v48 = vpop.xlane.xlu0 %199 }
 0x171   :  { %v206_v49 = vpop.xlane.xlu1 %205  ;;  %v203_v52 = vpop.xlane.xlu0 %202 }
 0x175   :  { %v209_v53 = vpop.xlane.xlu1 %208 }
 0x176   :  { %v212_v57 = vpop.xlane.xlu0 %211 }
 0x179   :  { %v215_v56 = vpop.xlane.xlu1 %214 }
 0x17a   :  { %v218_v1 = vpop.xlane.xlu0 %217 }
 0x17d   :  { %v221_v0 = vpop.xlane.xlu1 %220 }
 0x1d1   :  { %v315_v61 = vpop.f32.mrb[0].mxu1 }
 0x1d2   :  { %v322_v62 = vrot.slane %v315_v61, %v5799_v54  ;;  %v4558_v63 = vpop.f32.mrb[1].mxu1 }
 0x1d4   :  { %v324_v2 = vadd.f32 %v322_v62, %v203_v52  ;;  %v323_v3 = vadd.f32 %v322_v62, %v200_v48  ;;  %v326_v4 = vadd.f32 %v322_v62, %v209_v53  ;;  %v325_v5 = vadd.f32 %v322_v62, %v206_v49 }
 0x1d5   :  { %v328_v6 = vadd.f32 %v322_v62, %v215_v56  ;;  %v327_v7 = vadd.f32 %v322_v62, %v212_v57  ;;  %v330_v8 = vadd.f32 %v322_v62, %v221_v0  ;;  %v329_v9 = vadd.f32 %v322_v62, %v218_v1 }
 0x1d6   :  { %vm332_vm9 = vcmp.gt.f32.partialorder %v324_v2, 0.0  ;;  %v340_v10 = vmul.f32 0.2, %v324_v2  ;;  %vm331_vm10 = vcmp.gt.f32.partialorder %v323_v3, 0.0  ;;  %v339_v13 = vmul.f32 0.2, %v323_v3 }
 0x1d7   :  { %vm334_vm11 = vcmp.gt.f32.partialorder %v326_v4, 0.0  ;;  %v342_v17 = vmul.f32 0.2, %v326_v4  ;;  %vm333_vm12 = vcmp.gt.f32.partialorder %v325_v5, 0.0  ;;  %v341_v18 = vmul.f32 0.2, %v325_v5 }
 0x1d8   :  { %v348_v21 = vsel %vm332_vm9, %v324_v2, %v340_v10  ;;  %v347_v22 = vsel %vm331_vm10, %v323_v3, %v339_v13  ;;  %vm336_vm13 = vcmp.gt.f32.partialorder %v328_v6, 0.0  ;;  %v344_v24 = vmul.f32 0.2, %v328_v6 }
 0x1d9   :  { %v364_v25 = vsel %vm7010_vm4, %v348_v21, -1e+30  ;;  %v363_v26 = vsel %vm355_vm6, %v347_v22, -1e+30  ;;  %v350_v28 = vsel %vm334_vm11, %v326_v4, %v342_v17  ;;  %v349_v29 = vsel %vm333_vm12, %v325_v5, %v341_v18 }
 0x1da   :  { %v375_v34 = vsel %vm371_vm5, %v364_v25, -inf  ;;  %v372_v35 = vsel %vm371_vm5, %v363_v26, -inf  ;;  %v366_v37 = vsel %vm358_vm7, %v350_v28, -1e+30  ;;  %v5846_v40 = vsel %vm357_vm8, %v349_v29, -1e+30 }
 0x1db   :  { %376 = vmax.xlane.f32.xlu1 %v375_v34  ;;  %373 = vmax.xlane.f32.xlu0 %v372_v35  ;;  %vm335_vm14 = vcmp.gt.f32.partialorder %v327_v7, 0.0  ;;  %v352_v41 = vsel %vm336_vm13, %v328_v6, %v344_v24  ;;  %v343_v42 = vmul.f32 0.2, %v327_v7  ;;  %vm359_vm9 = vcmp.gt.f32.partialorder %v5838_v33, 0.0 }
 0x1dc   :  { %vm338_vm10 = vcmp.gt.f32.partialorder %v330_v8, 0.0  ;;  %v346_v46 = vmul.f32 0.2, %v330_v8  ;;  %vm337_vm11 = vcmp.gt.f32.partialorder %v329_v9, 0.0  ;;  %v345_v47 = vmul.f32 0.2, %v329_v9 }
 0x1dd   :  { %v381_v48 = vsel %vm371_vm5, %v366_v37, -inf  ;;  %v378_v49 = vsel %vm371_vm5, %v5846_v40, -inf  ;;  %v351_v50 = vsel %vm335_vm14, %v327_v7, %v343_v42  ;;  %v368_v51 = vsel %vm360_vm15, %v352_v41, -1e+30 }
 0x1de   :  { %v5867_v52 = vsel %vm359_vm9, %v351_v50, -1e+30  ;;  %v354_v53 = vsel %vm338_vm10, %v330_v8, %v346_v46  ;;  %vm362_vm12 = vcmp.gt.f32.partialorder %v5853_v43, 0.0  ;;  %v353_v56 = vsel %vm337_vm11, %v329_v9, %v345_v47 }
 0x1df   :  { %382 = vmax.xlane.f32.xlu1 %v381_v48  ;;  %379 = vmax.xlane.f32.xlu0 %v378_v49  ;;  %vm361_vm13 = vcmp.gt.f32.partialorder %v5858_v45, 0.0  ;;  %v387_v57 = vsel %vm371_vm5, %v368_v51, -inf  ;;  %v384_v61 = vsel %vm371_vm5, %v5867_v52, -inf  ;;  %v370_v62 = vsel %vm362_vm12, %v354_v53, -1e+30 }
 0x1e0   :  { %v369_v63 = vsel %vm361_vm13, %v353_v56, -1e+30  ;;  %v393_v0 = vsel %vm371_vm5, %v370_v62, -inf }
 0x1e1   :  { %v390_v1 = vsel %vm371_vm5, %v369_v63, -inf }
 0x1e3   :  { %388 = vmax.xlane.f32.xlu1 %v387_v57  ;;  %385 = vmax.xlane.f32.xlu0 %v384_v61 }
 0x1e7   :  { %394 = vmax.xlane.f32.xlu1 %v393_v0  ;;  %391 = vmax.xlane.f32.xlu0 %v390_v1 }
 0x1f8   :  { %5223 = vrot.lane.b32.xlu1 %v5753_v27, %s5612_s1 }
 0x268   :  { %v377_v2 = vpop.xlane.xlu1 %376  ;;  %v374_v3 = vpop.xlane.xlu0 %373 }
 0x269   :  { %v397_v4 = vsub.f32 %v364_v25, %v377_v2  ;;  %v396_v5 = vsub.f32 %v363_v26, %v374_v3 }
 0x26b   :  { %v406_v6 = vmul.f32 1.442695, %v397_v4  ;;  %v404_v7 = vmul.f32 1.442695, %v396_v5 }
 0x26c   :  { %v383_v8 = vpop.xlane.xlu1 %382  ;;  %v380_v9 = vpop.xlane.xlu0 %379 }
 0x26d   :  { %5337 = vpow2.f32 %v406_v6  ;;  %v399_v10 = vsub.f32 %v366_v37, %v383_v8  ;;  %v398_v57 = vsub.f32 %v5846_v40, %v380_v9  ;;  %v4158_v40 = vld [vmem:[%s6997_s4 + $0x1] ss:$0 sm:$0xff] }
 0x26e   :  { %5339 = vpow2.f32 %v404_v7 }
 0x26f   :  { %v410_v13 = vmul.f32 1.442695, %v399_v10  ;;  %v408_v61 = vmul.f32 1.442695, %v398_v57 }
 0x270   :  { %v389_v17 = vpop.xlane.xlu1 %388  ;;  %v386_v18 = vpop.xlane.xlu0 %385 }
 0x271   :  { %5341 = vpow2.f32 %v410_v13  ;;  %v401_v21 = vsub.f32 %v368_v51, %v389_v17 }
 0x273   :  { %v414_v22 = vmul.f32 1.442695, %v401_v21 }
 0x274   :  { %v395_v24 = vpop.xlane.xlu1 %394  ;;  %v392_v28 = vpop.xlane.xlu0 %391 }
 0x275   :  { %5343 = vpow2.f32 %v414_v22  ;;  %v403_v29 = vsub.f32 %v370_v62, %v395_v24  ;;  %v402_v34 = vsub.f32 %v369_v63, %v392_v28  ;;  %v400_v62 = vsub.f32 %v5867_v52, %v386_v18 }
 0x277   :  { %v5338_v25 = vpop.eup %5337  ;;  %v416_v26 = vmul.f32 1.442695, %v402_v34  ;;  %v418_v41 = vmul.f32 1.442695, %v403_v29  ;;  %v412_v63 = vmul.f32 1.442695, %v400_v62 }
 0x278   :  { %v5340_v35 = vpop.eup %5339  ;;  %v423_v42 = vsel %vm371_vm5, %v5338_v25, 0.0  ;;  %v5224_v52 = vpop.permute.xlu1 %5223 }
 0x279   :  { %424 = vadd.xlane.f32.xlu1 %v423_v42  ;;  %v420_v37 = vsel %vm371_vm5, %v5340_v35, 0.0  ;;  %5345 = vpow2.f32 %v416_v26  ;;  %v5226_v7 = vunpack.i.h.bf16 %v5224_v52  ;;  %v5225_v8 = vunpack.i.l.bf16 %v5224_v52 }
 0x27a   :  { %421 = vadd.xlane.f32.xlu0 %v420_v37  ;;  %5347 = vpow2.f32 %v418_v41 }
 0x27b   :  { %v5884_v46 = vpop.eup %5341  ;;  %5349 = vpow2.f32 %v408_v61  ;;  %v4977_v17 = vpack.c.bf16 %v5226_v7, %v5225_v8 }
 0x27c   :  { %v429_v47 = vsel %vm371_vm5, %v5884_v46, 0.0  ;;  %5351 = vpow2.f32 %v412_v63 }
 0x27d   :  { %430 = vadd.xlane.f32.xlu1 %v429_v47 }
 0x27f   :  { %v5888_v48 = vpop.eup %5343 }
 0x280   :  { %v435_v49 = vsel %vm371_vm5, %v5888_v48, 0.0 }
 0x281   :  { %436 = vadd.xlane.f32.xlu1 %v435_v49 }
 0x283   :  { %v5892_v50 = vpop.eup %5345 }
 0x284   :  { %v438_v51 = vsel %vm371_vm5, %v5892_v50, 0.0  ;;  %v5896_v53 = vpop.eup %5347 }
 0x285   :  { %439 = vadd.xlane.f32.xlu1 %v438_v51  ;;  %v441_v56 = vsel %vm371_vm5, %v5896_v53, 0.0  ;;  %v5350_v0 = vpop.eup %5349 }
 0x286   :  { %v426_v1 = vsel %vm371_vm5, %v5350_v0, 0.0  ;;  %v5907_v2 = vpop.eup %5351 }
 0x287   :  { %v432_v3 = vsel %vm371_vm5, %v5907_v2, 0.0 }
 0x289   :  { %442 = vadd.xlane.f32.xlu1 %v441_v56 }
 0x290   :  { %5218 = vrot.lane.b32.xlu0 %v5736_v19, %s5612_s1 }
 0x29a   :  { %5233 = vrot.lane.b32.xlu1 %v5785_v44, %s5612_s1 }
 0x2af   :  { %427 = vadd.xlane.f32.xlu0 %v426_v1 }
 0x2b3   :  { %433 = vadd.xlane.f32.xlu0 %v432_v3 }
 0x2c9   :  { %5228 = vrot.lane.b32.xlu0 %v5768_v36, %s5612_s1 }
 0x2cd   :  { %596 = vrot.lane.b32.xlu0 %v4158_v40, %s5613_s12 }
 0x306   :  { %v425_v4 = vpop.xlane.xlu1 %424 }
 0x307   :  { %5353 = vrcp.f32 %v425_v4  ;;  %v422_v5 = vpop.xlane.xlu0 %421 }
 0x308   :  { %5355 = vrcp.f32 %v422_v5 }
 0x30a   :  { %v431_v28 = vpop.xlane.xlu1 %430 }
 0x30b   :  { %v5219_v6 = vpop.permute.xlu0 %5218  ;;  %5357 = vrcp.f32 %v431_v28 }
 0x30c   :  { %v5221_v9 = vunpack.i.h.bf16 %v5219_v6  ;;  %v5220_v10 = vunpack.i.l.bf16 %v5219_v6 }
 0x30e   :  { %v4973_v13 = vpack.c.bf16 %v5221_v9, %v5220_v10  ;;  %v437_v29 = vpop.xlane.xlu1 %436 }
 0x310   :  { %4989 = vmatprep.subr.bf16.mxu1 %v4973_v13 }
 0x311   :  { %v5354_v18 = vpop.eup %5353  ;;  %4991 = vmatpush3.bf16.msra.mxu1 %v4973_v13 }
 0x312   :  { %v5356_v21 = vpop.eup %5355  ;;  %v447_v22 = vmul.f32 %v5354_v18, %v5338_v25  ;;  %4993 = vmatprep.subr.bf16.mxu1 %v4977_v17  ;;  %v440_v34 = vpop.xlane.xlu1 %439 }
 0x313   :  { %v445_v24 = vmul.f32 %v5356_v21, %v5340_v35 }
 0x315   :  { %4575 = vmatprep.mubr.msk.f32.mxu0 %vm371_vm5, %v445_v24  ;;  %4995 = vmatpush3.bf16.msra.mxu1 %v4977_v17  ;;  %v5358_v49 = vpop.eup %5357 }
 0x316   :  { %4576 = vmatmul.mubr.msk.f32.vlgmr.msra.gmra.mrb[8].mxu0 %vm371_vm5, %v447_v22  ;;  %v443_v26 = vpop.xlane.xlu1 %442  ;;  %v451_v3 = vmul.f32 %v5358_v49, %v5884_v46 }
 0x317   :  { %4975 = vmatpush3.bf16.xpose.msk.msra.mxu0 %vm5727_vm3, %v4973_v13 }
 0x318   :  { %4976 = vmatprep.subr.bf16.mxu0 %v5609_v11 }
 0x31a   :  { %v5234_v41 = vpop.permute.xlu1 %5233 }
 0x31b   :  { %v5236_v51 = vunpack.i.h.bf16 %v5234_v41  ;;  %v5235_v56 = vunpack.i.l.bf16 %v5234_v41 }
 0x31d   :  { %v4985_v5 = vpack.c.bf16 %v5236_v51, %v5235_v56 }
 0x31f   :  { %4979 = vmatpush3.bf16.xpose.msk.msra.mxu0 %vm5727_vm3, %v4977_v17 }
 0x320   :  { %4980 = vmatprep.subr.bf16.mxu0 %v5609_v11 }
 0x33c   :  { %v428_v25 = vpop.xlane.xlu0 %427 }
 0x33d   :  { %5359 = vrcp.f32 %v428_v25 }
 0x33e   :  { %5361 = vrcp.f32 %v437_v29 }
 0x33f   :  { %5363 = vrcp.f32 %v440_v34 }
 0x340   :  { %v434_v35 = vpop.xlane.xlu0 %433 }
 0x341   :  { %5365 = vrcp.f32 %v434_v35 }
 0x342   :  { %5367 = vrcp.f32 %v443_v26 }
 0x344   :  { %v5229_v42 = vpop.permute.xlu0 %5228 }
 0x345   :  { %v5231_v37 = vunpack.i.h.bf16 %v5229_v42  ;;  %v5230_v47 = vunpack.i.l.bf16 %v5229_v42 }
 0x347   :  { %v5360_v57 = vpop.eup %5359  ;;  %v4981_v61 = vpack.c.bf16 %v5231_v37, %v5230_v47 }
 0x348   :  { %v597_v62 = vpop.permute.xlu0 %596  ;;  %v449_v63 = vmul.f32 %v5360_v57, %v5350_v0  ;;  %v5362_v1 = vpop.eup %5361 }
 0x349   :  { %4983 = vmatpush3.bf16.xpose.msk.msra.mxu0 %vm5727_vm3, %v4981_v61  ;;  %4997 = vmatprep.subr.bf16.mxu1 %v4981_v61  ;;  %v600_v40 = vmul.f32 %v5721_v14, %v597_v62  ;;  %v599_v52 = vmul.f32 %v597_v62, %v5723_v15  ;;  %v5364_v4 = vpop.eup %5363  ;;  %v455_v46 = vmul.f32 %v5362_v1, %v5888_v48 }
 0x34a   :  { %4578 = vmatprep.mubr.msk.f32.mxu0 %vm371_vm5, %v449_v63  ;;  %4999 = vmatpush3.bf16.msra.mxu1 %v4981_v61  ;;  %v602_v7 = vmul.f32 %v5738_v20, %v597_v62  ;;  %v601_v9 = vmul.f32 %v597_v62, %v5744_v23  ;;  %v457_v10 = vmul.f32 %v5364_v4, %v5892_v50 }
 0x34b   :  { %v5366_v6 = vpop.eup %5365  ;;  %4579 = vmatmul.mubr.msk.f32.gmra.mrb[10].mxu0 %vm371_vm5, %v451_v3  ;;  %617 = vrot.lane.b32.xlu0 %v600_v40, %s5612_s1  ;;  %v603_v13 = vmul.f32 %v597_v62, %v5760_v32  ;;  %v606_v50 = vmul.f32 %v5773_v38, %v597_v62  ;;  %v605_v17 = vmul.f32 %v597_v62, %v5776_v39 }
 0x34c   :  { %615 = vrot.lane.b32.xlu1 %v599_v52, %s5612_s1  ;;  %5001 = vmatprep.subr.bf16.mxu1 %v4985_v5  ;;  %v453_v0 = vmul.f32 %v5366_v6, %v5907_v2  ;;  %v5368_v8 = vpop.eup %5367  ;;  %v604_v2 = vmul.f32 %v5757_v30, %v597_v62 }
 0x34d   :  { %4984 = vmatprep.subr.bf16.mxu0 %v5609_v11  ;;  %v459_v48 = vmul.f32 %v5368_v8, %v5896_v53  ;;  %v589_v53 = vld [vmem:[%s6998_s3 + $0x1] sm:$0x1] }
 0x34e   :  { %4581 = vmatprep.mubr.msk.f32.mxu0 %vm371_vm5, %v453_v0  ;;  %5003 = vmatpush3.bf16.msra.mxu1 %v4985_v5 }
 0x34f   :  { %4582 = vmatmul.mubr.msk.f32.gmra.mrb[12].mxu0 %vm371_vm5, %v455_v46  ;;  %621 = vrot.lane.b32.xlu0 %v602_v7, %s5612_s1 }
 0x350   :  { %619 = vrot.lane.b32.xlu1 %v601_v9, %s5612_s1  ;;  %4584 = vmatprep.mubr.msk.f32.mxu0 %vm371_vm5, %v457_v10 }
 0x351   :  { %4987 = vmatpush3.bf16.xpose.msk.msra.mxu0 %vm5727_vm3, %v4985_v5  ;;  %5004 = vmatprep.subr.bf16.mxu1 %v5609_v11 }
 0x353   :  { %4585 = vmatmul.mubr.msk.f32.gmra.mrb[14].mxu0 %vm371_vm5, %v459_v48  ;;  %625 = vrot.lane.b32.xlu0 %v604_v2, %s5612_s1 }
 0x354   :  { %623 = vrot.lane.b32.xlu1 %v603_v13, %s5612_s1  ;;  %4603 = vmatprep.mubr.msk.f32.mxu0 %vm7007_vm1, %v7011_v12 }
 0x357   :  { %629 = vrot.lane.b32.xlu0 %v606_v50, %s5612_s1 }
 0x358   :  { %627 = vrot.lane.b32.xlu1 %v605_v17, %s5612_s1  ;;  %4604 = vmatmul.mubr.msk.f32.vlgmr.msra.gmra.mrb[16].mxu0 %vm7009_vm2, %v589_v53 }
 0x3bd   :  { %v618_v18 = vpop.permute.xlu0 %617 }
 0x3be   :  { %v616_v21 = vpop.permute.xlu1 %615  ;;  %v642_v22 = vsel %vm7009_vm2, %v618_v18, 0.0 }
 0x3bf   :  { %643 = vadd.xlane.f32.xlu0 %v642_v22  ;;  %v639_v24 = vsel %vm7009_vm2, %v616_v21, 0.0 }
 0x3c0   :  { %640 = vadd.xlane.f32.xlu1 %v639_v24 }
 0x3c1   :  { %v622_v28 = vpop.permute.xlu0 %621 }
 0x3c2   :  { %v620_v29 = vpop.permute.xlu1 %619  ;;  %v648_v35 = vsel %vm7009_vm2, %v622_v28, 0.0 }
 0x3c3   :  { %v645_v34 = vsel %vm7009_vm2, %v620_v29, 0.0 }
 0x3c4   :  { %646 = vadd.xlane.f32.xlu0 %v645_v34 }
 0x3c5   :  { %v626_v25 = vpop.permute.xlu0 %625 }
 0x3c6   :  { %v624_v26 = vpop.permute.xlu1 %623  ;;  %v654_v37 = vsel %vm7009_vm2, %v626_v25, 0.0 }
 0x3c7   :  { %v651_v41 = vsel %vm7009_vm2, %v624_v26, 0.0 }
 0x3c8   :  { %649 = vadd.xlane.f32.xlu0 %v648_v35  ;;  %652 = vadd.xlane.f32.xlu1 %v651_v41 }
 0x3c9   :  { %v630_v49 = vpop.permute.xlu0 %629 }
 0x3ca   :  { %v628_v42 = vpop.permute.xlu1 %627  ;;  %v660_v51 = vsel %vm7009_vm2, %v630_v49, 0.0 }
 0x3cb   :  { %v657_v47 = vsel %vm7009_vm2, %v628_v42, 0.0 }
 0x3cc   :  { %655 = vadd.xlane.f32.xlu0 %v654_v37  ;;  %658 = vadd.xlane.f32.xlu1 %v657_v47 }
 0x3d0   :  { %661 = vadd.xlane.f32.xlu0 %v660_v51 }
 0x3e9   :  { %v5972_v56 = vpop.f32.mrb[8].mxu0 }
 0x3ea   :  { %v5974_v57 = vpop.f32.mrb[9].mxu0 }
 0x41e   :  { %v5976_v61 = vpop.f32.mrb[10].mxu0 }
 0x41f   :  { %v5978_v62 = vpop.f32.mrb[11].mxu0 }
 0x422   :  { %v5980_v63 = vpop.f32.mrb[12].mxu0 }
 0x423   :  { %v5982_v1 = vpop.f32.mrb[13].mxu0 }
 0x426   :  { %v5984_v3 = vpop.f32.mrb[14].mxu0 }
 0x427   :  { %v5986_v40 = vpop.f32.mrb[15].mxu0 }
 0x42b   :  { %v764_v52 = vpop.f32.mrb[16].mxu0 }
 0x42c   :  { %v4605_v4 = vpop.f32.mrb[17].mxu0  ;;  %v771_v5 = vrot.slane %v764_v52, %v5799_v54 }
 0x44c   :  { %v644_v6 = vpop.xlane.xlu0 %643 }
 0x44d   :  { %v773_v0 = vadd.f32 %v771_v5, %v644_v6  ;;  %v641_v46 = vpop.xlane.xlu1 %640 }
 0x44e   :  { %v772_v7 = vadd.f32 %v771_v5, %v641_v46 }
 0x44f   :  { %v789_v8 = vmul.f32 0.2, %v773_v0  ;;  %vm781_vm14 = vcmp.gt.f32.partialorder %v773_v0, 0.0 }
 0x450   :  { %v788_v9 = vmul.f32 0.2, %v772_v7  ;;  %vm780_vm10 = vcmp.gt.f32.partialorder %v772_v7, 0.0 }
 0x451   :  { %v647_v10 = vpop.xlane.xlu0 %646  ;;  %v797_v48 = vsel %vm781_vm14, %v773_v0, %v789_v8 }
 0x452   :  { %v774_v2 = vadd.f32 %v771_v5, %v647_v10  ;;  %v805_v13 = vsel %vm7010_vm4, %v797_v48, -1e+30  ;;  %v796_v50 = vsel %vm780_vm10, %v772_v7, %v788_v9 }
 0x453   :  { %v815_v53 = vsel %vm371_vm5, %v805_v13, -inf  ;;  %v804_v17 = vsel %vm355_vm6, %v796_v50, -1e+30 }
 0x454   :  { %v790_v18 = vmul.f32 0.2, %v774_v2  ;;  %816 = vmax.xlane.f32.xlu0 %v815_v53  ;;  %v812_v21 = vsel %vm371_vm5, %v804_v17, -inf  ;;  %vm782_vm11 = vcmp.gt.f32.partialorder %v774_v2, 0.0 }
 0x455   :  { %v650_v22 = vpop.xlane.xlu0 %649  ;;  %v653_v24 = vpop.xlane.xlu1 %652  ;;  %813 = vmax.xlane.f32.xlu1 %v812_v21 }
 0x456   :  { %v775_v28 = vadd.f32 %v771_v5, %v650_v22  ;;  %v776_v29 = vadd.f32 %v771_v5, %v653_v24  ;;  %v798_v34 = vsel %vm782_vm11, %v774_v2, %v790_v18 }
 0x457   :  { %v806_v25 = vsel %vm357_vm8, %v798_v34, -1e+30 }
 0x458   :  { %v791_v26 = vmul.f32 0.2, %v775_v28  ;;  %v792_v35 = vmul.f32 0.2, %v776_v29  ;;  %v818_v41 = vsel %vm371_vm5, %v806_v25, -inf  ;;  %vm783_vm14 = vcmp.gt.f32.partialorder %v775_v28, 0.0 }
 0x459   :  { %v656_v42 = vpop.xlane.xlu0 %655  ;;  %v659_v37 = vpop.xlane.xlu1 %658  ;;  %819 = vmax.xlane.f32.xlu1 %v818_v41  ;;  %vm784_vm10 = vcmp.gt.f32.partialorder %v776_v29, 0.0 }
 0x45a   :  { %v777_v47 = vadd.f32 %v771_v5, %v656_v42  ;;  %v778_v49 = vadd.f32 %v771_v5, %v659_v37  ;;  %v799_v51 = vsel %vm783_vm14, %v775_v28, %v791_v26  ;;  %v800_v52 = vsel %vm784_vm10, %v776_v29, %v792_v35 }
 0x45b   :  { %v807_v4 = vsel %vm358_vm7, %v799_v51, -1e+30  ;;  %v808_v6 = vsel %vm359_vm9, %v800_v52, -1e+30 }
 0x45c   :  { %v793_v0 = vmul.f32 0.2, %v777_v47  ;;  %v794_v46 = vmul.f32 0.2, %v778_v49  ;;  %v821_v7 = vsel %vm371_vm5, %v807_v4, -inf  ;;  %v824_v8 = vsel %vm371_vm5, %v808_v6, -inf }
 0x45d   :  { %v662_v9 = vpop.xlane.xlu0 %661  ;;  %822 = vmax.xlane.f32.xlu0 %v821_v7  ;;  %825 = vmax.xlane.f32.xlu1 %v824_v8  ;;  %vm785_vm11 = vcmp.gt.f32.partialorder %v777_v47, 0.0  ;;  %vm786_vm0 = vcmp.gt.f32.partialorder %v778_v49, 0.0 }
 0x45e   :  { %v779_v10 = vadd.f32 %v771_v5, %v662_v9  ;;  %v801_v48 = vsel %vm785_vm11, %v777_v47, %v793_v0  ;;  %v802_v2 = vsel %vm786_vm0, %v778_v49, %v794_v46 }
 0x45f   :  { %v809_v50 = vsel %vm360_vm15, %v801_v48, -1e+30  ;;  %v810_v53 = vsel %vm361_vm13, %v802_v2, -1e+30 }
 0x460   :  { %v795_v18 = vmul.f32 0.2, %v779_v10  ;;  %v827_v21 = vsel %vm371_vm5, %v809_v50, -inf  ;;  %v830_v22 = vsel %vm371_vm5, %v810_v53, -inf  ;;  %vm787_vm14 = vcmp.gt.f32.partialorder %v779_v10, 0.0 }
 0x461   :  { %828 = vmax.xlane.f32.xlu0 %v827_v21  ;;  %831 = vmax.xlane.f32.xlu1 %v830_v22 }
 0x462   :  { %v803_v24 = vsel %vm787_vm14, %v779_v10, %v795_v18 }
 0x463   :  { %v811_v5 = vsel %vm362_vm12, %v803_v24, -1e+30 }
 0x464   :  { %v833_v28 = vsel %vm371_vm5, %v811_v5, -inf }
 0x465   :  { %834 = vmax.xlane.f32.xlu0 %v833_v28 }
 0x472   :  { %5238 = vrot.lane.b32.xlu1 %v5736_v19, %s5614_s14 }
 0x4e1   :  { %v817_v29 = vpop.xlane.xlu0 %816 }
 0x4e2   :  { %v837_v34 = vsub.f32 %v805_v13, %v817_v29  ;;  %v814_v26 = vpop.xlane.xlu1 %813 }
 0x4e3   :  { %v836_v35 = vsub.f32 %v804_v17, %v814_v26 }
 0x4e4   :  { %v846_v41 = vmul.f32 1.442695, %v837_v34 }
 0x4e5   :  { %v844_v42 = vmul.f32 1.442695, %v836_v35 }
 0x4e6   :  { %5369 = vpow2.f32 %v846_v41  ;;  %v820_v37 = vpop.xlane.xlu1 %819 }
 0x4e7   :  { %5371 = vpow2.f32 %v844_v42  ;;  %v838_v47 = vsub.f32 %v806_v25, %v820_v37 }
 0x4e9   :  { %v848_v49 = vmul.f32 1.442695, %v838_v47 }
 0x4ea   :  { %v823_v51 = vpop.xlane.xlu0 %822  ;;  %v826_v52 = vpop.xlane.xlu1 %825 }
 0x4eb   :  { %5373 = vpow2.f32 %v848_v49  ;;  %v839_v0 = vsub.f32 %v807_v4, %v823_v51  ;;  %v840_v46 = vsub.f32 %v808_v6, %v826_v52 }
 0x4ed   :  { %v850_v7 = vmul.f32 1.442695, %v839_v0  ;;  %v852_v8 = vmul.f32 1.442695, %v840_v46  ;;  %v4176_v46 = vld [vmem:[%s6997_s4 + $0x2] ss:$0 sm:$0xff] }
 0x4ee   :  { %v829_v9 = vpop.xlane.xlu0 %828  ;;  %v832_v10 = vpop.xlane.xlu1 %831 }
 0x4ef   :  { %5375 = vpow2.f32 %v850_v7  ;;  %v841_v13 = vsub.f32 %v809_v50, %v829_v9  ;;  %v842_v48 = vsub.f32 %v810_v53, %v832_v10 }
 0x4f0   :  { %v5370_v17 = vpop.eup %5369  ;;  %5377 = vpow2.f32 %v852_v8 }
 0x4f1   :  { %v5372_v2 = vpop.eup %5371  ;;  %v854_v18 = vmul.f32 1.442695, %v841_v13  ;;  %v856_v21 = vmul.f32 1.442695, %v842_v48  ;;  %v863_v25 = vsel %vm371_vm5, %v5370_v17, 0.0 }
 0x4f2   :  { %v835_v22 = vpop.xlane.xlu0 %834  ;;  %v5239_v24 = vpop.permute.xlu1 %5238  ;;  %864 = vadd.xlane.f32.xlu0 %v863_v25  ;;  %v860_v4 = vsel %vm371_vm5, %v5372_v2, 0.0 }
 0x4f3   :  { %5379 = vpow2.f32 %v854_v18  ;;  %v843_v6 = vsub.f32 %v811_v5, %v835_v22  ;;  %v5241_v28 = vunpack.i.h.bf16 %v5239_v24  ;;  %v5240_v29 = vunpack.i.l.bf16 %v5239_v24  ;;  %861 = vadd.xlane.f32.xlu1 %v860_v4 }
 0x4f4   :  { %5381 = vpow2.f32 %v856_v21 }
 0x4f5   :  { %v5374_v34 = vpop.eup %5373  ;;  %v858_v50 = vmul.f32 1.442695, %v843_v6  ;;  %v5005_v53 = vpack.c.bf16 %v5241_v28, %v5240_v29 }
 0x4f6   :  { %v866_v26 = vsel %vm371_vm5, %v5374_v34, 0.0 }
 0x4f7   :  { %867 = vadd.xlane.f32.xlu1 %v866_v26  ;;  %5021 = vmatprep.subr.bf16.mxu0 %v5005_v53  ;;  %5383 = vpow2.f32 %v858_v50 }
 0x4f8   :  { %5023 = vmatpush3.bf16.msra.mxu0 %v5005_v53 }
 0x4f9   :  { %v5376_v35 = vpop.eup %5375 }
 0x4fa   :  { %v5378_v41 = vpop.eup %5377  ;;  %v869_v42 = vsel %vm371_vm5, %v5376_v35, 0.0 }
 0x4fb   :  { %870 = vadd.xlane.f32.xlu0 %v869_v42  ;;  %v872_v5 = vsel %vm371_vm5, %v5378_v41, 0.0 }
 0x4fc   :  { %873 = vadd.xlane.f32.xlu1 %v872_v5 }
 0x4fd   :  { %v5380_v37 = vpop.eup %5379 }
 0x4fe   :  { %v875_v47 = vsel %vm371_vm5, %v5380_v37, 0.0  ;;  %v6021_v49 = vpop.eup %5381 }
 0x4ff   :  { %876 = vadd.xlane.f32.xlu0 %v875_v47  ;;  %v878_v51 = vsel %vm371_vm5, %v6021_v49, 0.0 }
 0x501   :  { %v6025_v52 = vpop.eup %5383 }
 0x502   :  { %v881_v0 = vsel %vm371_vm5, %v6025_v52, 0.0 }
 0x503   :  { %879 = vadd.xlane.f32.xlu0 %v878_v51 }
 0x507   :  { %882 = vadd.xlane.f32.xlu0 %v881_v0 }
 0x50d   :  { %5248 = vrot.lane.b32.xlu1 %v5768_v36, %s5614_s14 }
 0x511   :  { %5253 = vrot.lane.b32.xlu1 %v5785_v44, %s5614_s14 }
 0x515   :  { %1044 = vrot.lane.b32.xlu1 %v4176_v46, %s5615_s17 }
 0x51d   :  { %5243 = vrot.lane.b32.xlu0 %v5753_v27, %s5614_s14 }
 0x57f   :  { %v865_v7 = vpop.xlane.xlu0 %864 }
 0x580   :  { %5385 = vrcp.f32 %v865_v7  ;;  %v862_v8 = vpop.xlane.xlu1 %861 }
 0x581   :  { %5387 = vrcp.f32 %v862_v8 }
 0x584   :  { %v868_v9 = vpop.xlane.xlu1 %867 }
 0x585   :  { %5389 = vrcp.f32 %v868_v9 }
 0x588   :  { %v871_v10 = vpop.xlane.xlu0 %870 }
 0x589   :  { %5391 = vrcp.f32 %v871_v10  ;;  %v874_v13 = vpop.xlane.xlu1 %873 }
 0x58a   :  { %v5386_v48 = vpop.eup %5385  ;;  %5393 = vrcp.f32 %v874_v13 }
 0x58b   :  { %v5388_v18 = vpop.eup %5387  ;;  %v887_v21 = vmul.f32 %v5386_v48, %v5370_v17 }
 0x58c   :  { %v877_v25 = vpop.xlane.xlu0 %876  ;;  %v885_v22 = vmul.f32 %v5388_v18, %v5372_v2 }
 0x58d   :  { %5395 = vrcp.f32 %v877_v25  ;;  %v5249_v24 = vpop.permute.xlu1 %5248 }
 0x58e   :  { %4622 = vmatprep.mubr.msk.f32.mxu1 %vm371_vm5, %v885_v22  ;;  %v5251_v46 = vunpack.i.h.bf16 %v5249_v24 }
 0x58f   :  { %v5390_v4 = vpop.eup %5389  ;;  %4623 = vmatmul.mubr.msk.f32.vlgmr.msra.gmra.mrb[2].mxu1 %vm371_vm5, %v887_v21 }
 0x590   :  { %5007 = vmatpush3.bf16.xpose.msk.msra.mxu1 %vm5727_vm3, %v5005_v53  ;;  %v880_v6 = vpop.xlane.xlu0 %879  ;;  %v889_v28 = vmul.f32 %v5390_v4, %v5374_v34 }
 0x591   :  { %5397 = vrcp.f32 %v880_v6  ;;  %v5254_v29 = vpop.permute.xlu1 %5253  ;;  %5008 = vmatprep.subr.bf16.mxu1 %v5609_v11 }
 0x592   :  { %4625 = vmatprep.mubr.msk.f32.mxu1 %vm371_vm5, %v889_v28  ;;  %v5256_v18 = vunpack.i.h.bf16 %v5254_v29 }
 0x593   :  { %v5392_v17 = vpop.eup %5391 }
 0x594   :  { %v5394_v2 = vpop.eup %5393  ;;  %v883_v50 = vpop.xlane.xlu0 %882  ;;  %v891_v26 = vmul.f32 %v5392_v17, %v5376_v35  ;;  %v5250_v35 = vunpack.i.l.bf16 %v5249_v24 }
 0x595   :  { %5399 = vrcp.f32 %v883_v50  ;;  %v1045_v42 = vpop.permute.xlu1 %1044  ;;  %v893_v5 = vmul.f32 %v5394_v2, %v5378_v41 }
 0x596   :  { %4626 = vmatmul.mubr.msk.f32.gmra.mrb[4].mxu1 %vm371_vm5, %v891_v26  ;;  %v1049_v47 = vmul.f32 %v1045_v42, %v5744_v23  ;;  %v1047_v53 = vmul.f32 %v1045_v42, %v5723_v15  ;;  %v1051_v41 = vmul.f32 %v1045_v42, %v5760_v32  ;;  %v1048_v9 = vmul.f32 %v5721_v14, %v1045_v42 }
 0x597   :  { %v5396_v34 = vpop.eup %5395  ;;  %4628 = vmatprep.mubr.msk.f32.mxu1 %vm371_vm5, %v893_v5  ;;  %v5013_v21 = vpack.c.bf16 %v5251_v46, %v5250_v35  ;;  %v1053_v25 = vmul.f32 %v1045_v42, %v5776_v39  ;;  %v1050_v22 = vmul.f32 %v5738_v20, %v1045_v42  ;;  %v1052_v6 = vmul.f32 %v5757_v30, %v1045_v42 }
 0x598   :  { %1067 = vrot.lane.b32.xlu0 %v1049_v47, %s5614_s14  ;;  %1063 = vrot.lane.b32.xlu1 %v1047_v53, %s5614_s14  ;;  %v5244_v51 = vpop.permute.xlu0 %5243  ;;  %v895_v0 = vmul.f32 %v5396_v34, %v5380_v37  ;;  %v5255_v37 = vunpack.i.l.bf16 %v5254_v29  ;;  %v1054_v28 = vmul.f32 %v5773_v38, %v1045_v42 }
 0x599   :  { %v5246_v7 = vunpack.i.h.bf16 %v5244_v51  ;;  %v5245_v8 = vunpack.i.l.bf16 %v5244_v51 }
 0x59a   :  { %4629 = vmatmul.mubr.msk.f32.gmra.mrb[6].mxu1 %vm371_vm5, %v895_v0  ;;  %v5017_v4 = vpack.c.bf16 %v5256_v18, %v5255_v37 }
 0x59b   :  { %v5398_v10 = vpop.eup %5397  ;;  %v5009_v13 = vpack.c.bf16 %v5246_v7, %v5245_v8 }
 0x59c   :  { %1071 = vrot.lane.b32.xlu0 %v1051_v41, %s5614_s14  ;;  %1065 = vrot.lane.b32.xlu1 %v1048_v9, %s5614_s14  ;;  %v897_v48 = vmul.f32 %v5398_v10, %v6021_v49 }
 0x59d   :  { %5011 = vmatpush3.bf16.xpose.msk.msra.mxu1 %vm5727_vm3, %v5009_v13  ;;  %5025 = vmatprep.subr.bf16.mxu0 %v5009_v13 }
 0x59e   :  { %4631 = vmatprep.mubr.msk.f32.mxu1 %vm371_vm5, %v897_v48  ;;  %5027 = vmatpush3.bf16.msra.mxu0 %v5009_v13 }
 0x59f   :  { %v5400_v24 = vpop.eup %5399  ;;  %5029 = vmatprep.subr.bf16.mxu0 %v5013_v21  ;;  %5012 = vmatprep.subr.bf16.mxu1 %v5609_v11 }
 0x5a0   :  { %1075 = vrot.lane.b32.xlu0 %v1053_v25, %s5614_s14  ;;  %1069 = vrot.lane.b32.xlu1 %v1050_v22, %s5614_s14  ;;  %v899_v49 = vmul.f32 %v5400_v24, %v6025_v52  ;;  %v1037_v52 = vld [vmem:[%s6998_s3 + $0x2] sm:$0x1] }
 0x5a2   :  { %4632 = vmatmul.mubr.msk.f32.gmra.mrb[8].mxu1 %vm371_vm5, %v899_v49  ;;  %5031 = vmatpush3.bf16.msra.mxu0 %v5013_v21 }
 0x5a3   :  { %5033 = vmatprep.subr.bf16.mxu0 %v5017_v4  ;;  %4650 = vmatprep.mubr.msk.f32.mxu1 %vm7007_vm1, %v7011_v12 }
 0x5a4   :  { %1073 = vrot.lane.b32.xlu1 %v1052_v6, %s5614_s14 }
 0x5a5   :  { %5015 = vmatpush3.bf16.xpose.msk.msra.mxu1 %vm5727_vm3, %v5013_v21 }
 0x5a6   :  { %5035 = vmatpush3.bf16.msra.mxu0 %v5017_v4  ;;  %5016 = vmatprep.subr.bf16.mxu1 %v5609_v11 }
 0x5a7   :  { %5036 = vmatprep.subr.bf16.mxu0 %v5609_v11 }
 0x5a8   :  { %1077 = vrot.lane.b32.xlu1 %v1054_v28, %s5614_s14 }
 0x5ad   :  { %5019 = vmatpush3.bf16.xpose.msk.msra.mxu1 %vm5727_vm3, %v5017_v4 }
 0x5b4   :  { %4651 = vmatmul.mubr.msk.f32.vlgmr.msra.gmra.mrb[10].mxu1 %vm7009_vm2, %v1037_v52 }
 0x60a   :  { %v1064_v29 = vpop.permute.xlu1 %1063  ;;  %v1068_v2 = vpop.permute.xlu0 %1067 }
 0x60b   :  { %v1087_v17 = vsel %vm7009_vm2, %v1064_v29, 0.0  ;;  %v1093_v26 = vsel %vm7009_vm2, %v1068_v2, 0.0 }
 0x60c   :  { %1088 = vadd.xlane.f32.xlu0 %v1087_v17 }
 0x60e   :  { %v1066_v50 = vpop.permute.xlu1 %1065  ;;  %v1072_v5 = vpop.permute.xlu0 %1071 }
 0x60f   :  { %v1090_v42 = vsel %vm7009_vm2, %v1066_v50, 0.0  ;;  %v1099_v51 = vsel %vm7009_vm2, %v1072_v5, 0.0 }
 0x610   :  { %1094 = vadd.xlane.f32.xlu0 %v1093_v26  ;;  %1091 = vadd.xlane.f32.xlu1 %v1090_v42 }
 0x612   :  { %v1070_v47 = vpop.permute.xlu1 %1069  ;;  %v1076_v46 = vpop.permute.xlu0 %1075 }
 0x613   :  { %v1096_v53 = vsel %vm7009_vm2, %v1070_v47, 0.0  ;;  %v1105_v7 = vsel %vm7009_vm2, %v1076_v46, 0.0 }
 0x614   :  { %1097 = vadd.xlane.f32.xlu0 %v1096_v53 }
 0x616   :  { %v1074_v34 = vpop.permute.xlu1 %1073 }
 0x617   :  { %v1102_v0 = vsel %vm7009_vm2, %v1074_v34, 0.0 }
 0x618   :  { %1100 = vadd.xlane.f32.xlu0 %v1099_v51  ;;  %1103 = vadd.xlane.f32.xlu1 %v1102_v0 }
 0x61a   :  { %v1078_v35 = vpop.permute.xlu1 %1077 }
 0x61b   :  { %v1108_v8 = vsel %vm7009_vm2, %v1078_v35, 0.0 }
 0x61c   :  { %1106 = vadd.xlane.f32.xlu0 %v1105_v7  ;;  %1109 = vadd.xlane.f32.xlu1 %v1108_v8 }
 0x662   :  { %v6091_v41 = vpop.f32.mrb[2].mxu1 }
 0x663   :  { %v6093_v9 = vpop.f32.mrb[3].mxu1 }
 0x669   :  { %v6095_v10 = vpop.f32.mrb[4].mxu1 }
 0x66a   :  { %v6097_v13 = vpop.f32.mrb[5].mxu1 }
 0x66d   :  { %v6099_v48 = vpop.f32.mrb[6].mxu1 }
 0x66e   :  { %v6101_v18 = vpop.f32.mrb[7].mxu1 }
 0x675   :  { %v6103_v37 = vpop.f32.mrb[8].mxu1 }
 0x676   :  { %v6105_v21 = vpop.f32.mrb[9].mxu1 }
 0x687   :  { %v1212_v25 = vpop.f32.mrb[10].mxu1 }
 0x688   :  { %v4652_v22 = vpop.f32.mrb[11].mxu1  ;;  %v1219_v24 = vrot.slane %v1212_v25, %v5799_v54 }
 0x699   :  { %v1089_v49 = vpop.xlane.xlu0 %1088 }
 0x69a   :  { %v1220_v4 = vadd.f32 %v1219_v24, %v1089_v49 }
 0x69c   :  { %v1236_v6 = vmul.f32 0.2, %v1220_v4  ;;  %vm1228_vm0 = vcmp.gt.f32.partialorder %v1220_v4, 0.0 }
 0x69d   :  { %v1095_v28 = vpop.xlane.xlu0 %1094  ;;  %v1092_v52 = vpop.xlane.xlu1 %1091 }
 0x69e   :  { %v1222_v29 = vadd.f32 %v1219_v24, %v1095_v28  ;;  %v1221_v17 = vadd.f32 %v1219_v24, %v1092_v52  ;;  %v1244_v2 = vsel %vm1228_vm0, %v1220_v4, %v1236_v6 }
 0x69f   :  { %v1252_v50 = vsel %vm355_vm6, %v1244_v2, -1e+30 }
 0x6a0   :  { %v1238_v26 = vmul.f32 0.2, %v1222_v29  ;;  %v1237_v42 = vmul.f32 0.2, %v1221_v17  ;;  %v1260_v5 = vsel %vm371_vm5, %v1252_v50, -inf  ;;  %vm1229_vm10 = vcmp.gt.f32.partialorder %v1221_v17, 0.0 }
 0x6a1   :  { %v1098_v47 = vpop.xlane.xlu0 %1097  ;;  %1261 = vmax.xlane.f32.xlu0 %v1260_v5  ;;  %vm1230_vm11 = vcmp.gt.f32.partialorder %v1222_v29, 0.0 }
 0x6a2   :  { %v1223_v53 = vadd.f32 %v1219_v24, %v1098_v47  ;;  %v1245_v34 = vsel %vm1229_vm10, %v1221_v17, %v1237_v42  ;;  %v1246_v51 = vsel %vm1230_vm11, %v1222_v29, %v1238_v26 }
 0x6a3   :  { %v1253_v0 = vsel %vm7010_vm4, %v1245_v34, -1e+30  ;;  %v6115_v46 = vsel %vm357_vm8, %v1246_v51, -1e+30 }
 0x6a4   :  { %v1239_v35 = vmul.f32 0.2, %v1223_v53  ;;  %v1263_v7 = vsel %vm371_vm5, %v1253_v0, -inf  ;;  %v1266_v8 = vsel %vm371_vm5, %v6115_v46, -inf  ;;  %vm1231_vm14 = vcmp.gt.f32.partialorder %v1223_v53, 0.0 }
 0x6a5   :  { %v1101_v25 = vpop.xlane.xlu0 %1100  ;;  %v1104_v22 = vpop.xlane.xlu1 %1103  ;;  %1264 = vmax.xlane.f32.xlu1 %v1263_v7  ;;  %1267 = vmax.xlane.f32.xlu0 %v1266_v8 }
 0x6a6   :  { %v1224_v49 = vadd.f32 %v1219_v24, %v1101_v25  ;;  %v1225_v4 = vadd.f32 %v1219_v24, %v1104_v22  ;;  %v1247_v6 = vsel %vm1231_vm14, %v1223_v53, %v1239_v35 }
 0x6a7   :  { %v1255_v28 = vsel %vm358_vm7, %v1247_v6, -1e+30 }
 0x6a8   :  { %v1240_v52 = vmul.f32 0.2, %v1224_v49  ;;  %v1241_v29 = vmul.f32 0.2, %v1225_v4  ;;  %v1269_v17 = vsel %vm371_vm5, %v1255_v28, -inf  ;;  %vm1233_vm0 = vcmp.gt.f32.partialorder %v1225_v4, 0.0 }
 0x6a9   :  { %v1107_v2 = vpop.xlane.xlu0 %1106  ;;  %v1110_v26 = vpop.xlane.xlu1 %1109  ;;  %1270 = vmax.xlane.f32.xlu1 %v1269_v17  ;;  %vm1232_vm10 = vcmp.gt.f32.partialorder %v1224_v49, 0.0 }
 0x6aa   :  { %v1226_v42 = vadd.f32 %v1219_v24, %v1107_v2  ;;  %v1227_v5 = vadd.f32 %v1219_v24, %v1110_v26  ;;  %v1249_v47 = vsel %vm1233_vm0, %v1225_v4, %v1241_v29  ;;  %v1248_v34 = vsel %vm1232_vm10, %v1224_v49, %v1240_v52 }
 0x6ab   :  { %v1257_v51 = vsel %vm360_vm15, %v1249_v47, -1e+30  ;;  %v6127_v53 = vsel %vm359_vm9, %v1248_v34, -1e+30 }
 0x6ac   :  { %v1242_v35 = vmul.f32 0.2, %v1226_v42  ;;  %v1243_v7 = vmul.f32 0.2, %v1227_v5  ;;  %v1275_v8 = vsel %vm371_vm5, %v1257_v51, -inf  ;;  %v1272_v25 = vsel %vm371_vm5, %v6127_v53, -inf }
 0x6ad   :  { %1276 = vmax.xlane.f32.xlu1 %v1275_v8  ;;  %1273 = vmax.xlane.f32.xlu0 %v1272_v25  ;;  %vm1235_vm11 = vcmp.gt.f32.partialorder %v1227_v5, 0.0  ;;  %vm1234_vm14 = vcmp.gt.f32.partialorder %v1226_v42, 0.0 }
 0x6ae   :  { %v1251_v24 = vsel %vm1235_vm11, %v1227_v5, %v1243_v7  ;;  %v1250_v22 = vsel %vm1234_vm14, %v1226_v42, %v1242_v35 }
 0x6af   :  { %v1259_v49 = vsel %vm362_vm12, %v1251_v24, -1e+30  ;;  %v1258_v4 = vsel %vm361_vm13, %v1250_v22, -1e+30 }
 0x6b0   :  { %v1281_v6 = vsel %vm371_vm5, %v1259_v49, -inf  ;;  %v1278_v52 = vsel %vm371_vm5, %v1258_v4, -inf }
 0x6b1   :  { %1282 = vmax.xlane.f32.xlu1 %v1281_v6  ;;  %1279 = vmax.xlane.f32.xlu0 %v1278_v52 }
 0x6c2   :  { %5263 = vrot.lane.b32.xlu1 %v5753_v27, %s5616_s20 }
 0x72e   :  { %v1262_v29 = vpop.xlane.xlu0 %1261 }
 0x72f   :  { %v1284_v17 = vsub.f32 %v1252_v50, %v1262_v29 }
 0x731   :  { %v1292_v2 = vmul.f32 1.442695, %v1284_v17 }
 0x732   :  { %v1265_v26 = vpop.xlane.xlu1 %1264  ;;  %v1268_v47 = vpop.xlane.xlu0 %1267 }
 0x733   :  { %5401 = vpow2.f32 %v1292_v2  ;;  %v1285_v42 = vsub.f32 %v1253_v0, %v1265_v26 }
 0x735   :  { %v1294_v5 = vmul.f32 1.442695, %v1285_v42 }
 0x736   :  { %v1271_v34 = vpop.xlane.xlu1 %1270 }
 0x737   :  { %5403 = vpow2.f32 %v1294_v5  ;;  %v1287_v35 = vsub.f32 %v1255_v28, %v1271_v34 }
 0x739   :  { %v1298_v7 = vmul.f32 1.442695, %v1287_v35 }
 0x73a   :  { %v1277_v8 = vpop.xlane.xlu1 %1276  ;;  %v1274_v25 = vpop.xlane.xlu0 %1273 }
 0x73b   :  { %5405 = vpow2.f32 %v1298_v7  ;;  %v1289_v24 = vsub.f32 %v1257_v51, %v1277_v8  ;;  %v1286_v8 = vsub.f32 %v6115_v46, %v1268_v47 }
 0x73d   :  { %v5402_v22 = vpop.eup %5401  ;;  %v1302_v6 = vmul.f32 1.442695, %v1289_v24  ;;  %v1296_v24 = vmul.f32 1.442695, %v1286_v8 }
 0x73e   :  { %v1283_v52 = vpop.xlane.xlu1 %1282  ;;  %v1280_v27 = vpop.xlane.xlu0 %1279  ;;  %v1308_v50 = vsel %vm371_vm5, %v5402_v22, 0.0 }
 0x73f   :  { %5407 = vpow2.f32 %v1302_v6  ;;  %v1291_v29 = vsub.f32 %v1259_v49, %v1283_v52  ;;  %v1290_v17 = vsub.f32 %v1258_v4, %v1280_v27  ;;  %1309 = vadd.xlane.f32.xlu0 %v1308_v50  ;;  %v1288_v6 = vsub.f32 %v6127_v53, %v1274_v25 }
 0x741   :  { %v5404_v0 = vpop.eup %5403  ;;  %v1304_v2 = vmul.f32 1.442695, %v1290_v17  ;;  %v1306_v26 = vmul.f32 1.442695, %v1291_v29  ;;  %v1300_v52 = vmul.f32 1.442695, %v1288_v6 }
 0x742   :  { %v1311_v28 = vsel %vm371_vm5, %v5404_v0, 0.0  ;;  %v5264_v46 = vpop.permute.xlu1 %5263 }
 0x743   :  { %1312 = vadd.xlane.f32.xlu1 %v1311_v28  ;;  %5409 = vpow2.f32 %v1304_v2  ;;  %v5266_v47 = vunpack.i.h.bf16 %v5264_v46  ;;  %v5265_v2 = vunpack.i.l.bf16 %v5264_v46 }
 0x744   :  { %5411 = vpow2.f32 %v1306_v26 }
 0x745   :  { %v6142_v42 = vpop.eup %5405  ;;  %5413 = vpow2.f32 %v1296_v24 }
 0x746   :  { %v1317_v51 = vsel %vm371_vm5, %v6142_v42, 0.0  ;;  %5415 = vpow2.f32 %v1300_v52 }
 0x747   :  { %1318 = vadd.xlane.f32.xlu1 %v1317_v51 }
 0x749   :  { %v6146_v5 = vpop.eup %5407 }
 0x74a   :  { %v1323_v49 = vsel %vm371_vm5, %v6146_v5, 0.0 }
 0x74b   :  { %1324 = vadd.xlane.f32.xlu1 %v1323_v49 }
 0x74d   :  { %v6150_v4 = vpop.eup %5409 }
 0x74e   :  { %v1326_v34 = vsel %vm371_vm5, %v6150_v4, 0.0  ;;  %v6154_v35 = vpop.eup %5411 }
 0x74f   :  { %1327 = vadd.xlane.f32.xlu1 %v1326_v34  ;;  %v1329_v7 = vsel %vm371_vm5, %v6154_v35, 0.0  ;;  %v5414_v27 = vpop.eup %5413 }
 0x750   :  { %v1314_v50 = vsel %vm371_vm5, %v5414_v27, 0.0  ;;  %v6165_v29 = vpop.eup %5415 }
 0x753   :  { %1330 = vadd.xlane.f32.xlu1 %v1329_v7 }
 0x755   :  { %5258 = vrot.lane.b32.xlu0 %v5736_v19, %s5616_s20  ;;  %v1320_v19 = vsel %vm371_vm5, %v6165_v29, 0.0 }
 0x764   :  { %5273 = vrot.lane.b32.xlu1 %v5785_v44, %s5616_s20  ;;  %v4194_v44 = vld [vmem:[%s6997_s4 + $0x3] ss:$0 sm:$0xff] }
 0x774   :  { %1315 = vadd.xlane.f32.xlu0 %v1314_v50 }
 0x778   :  { %1321 = vadd.xlane.f32.xlu0 %v1320_v19 }
 0x78e   :  { %5268 = vrot.lane.b32.xlu0 %v5768_v36, %s5616_s20  ;;  %v5041_v36 = vpack.c.bf16 %v5266_v47, %v5265_v2 }
 0x792   :  { %1492 = vrot.lane.b32.xlu0 %v4194_v44, %s5617_s2 }
 0x7cc   :  { %v1310_v53 = vpop.xlane.xlu0 %1309 }
 0x7cd   :  { %5417 = vrcp.f32 %v1310_v53 }
 0x7d0   :  { %v1313_v25 = vpop.xlane.xlu1 %1312  ;;  %v5259_v17 = vpop.permute.xlu0 %5258 }
 0x7d1   :  { %5419 = vrcp.f32 %v1313_v25  ;;  %v5261_v26 = vunpack.i.h.bf16 %v5259_v17  ;;  %v5260_v28 = vunpack.i.l.bf16 %v5259_v17 }
 0x7d3   :  { %v5037_v51 = vpack.c.bf16 %v5261_v26, %v5260_v28 }
 0x7d4   :  { %v1319_v24 = vpop.xlane.xlu1 %1318 }
 0x7d5   :  { %5053 = vmatprep.subr.bf16.mxu1 %v5037_v51  ;;  %5421 = vrcp.f32 %v1319_v24 }
 0x7d6   :  { %5055 = vmatpush3.bf16.msra.mxu1 %v5037_v51 }
 0x7d7   :  { %v5418_v49 = vpop.eup %5417  ;;  %5057 = vmatprep.subr.bf16.mxu1 %v5041_v36 }
 0x7d8   :  { %v1333_v34 = vmul.f32 %v5418_v49, %v5402_v22  ;;  %v1325_v6 = vpop.xlane.xlu1 %1324 }
 0x7da   :  { %4669 = vmatprep.mubr.msk.f32.mxu0 %vm371_vm5, %v1333_v34  ;;  %5059 = vmatpush3.bf16.msra.mxu1 %v5041_v36 }
 0x7db   :  { %v5420_v7 = vpop.eup %5419 }
 0x7dc   :  { %v1335_v8 = vmul.f32 %v5420_v7, %v5404_v0  ;;  %v1328_v22 = vpop.xlane.xlu1 %1327 }
 0x7de   :  { %4670 = vmatmul.mubr.msk.f32.vlgmr.msra.gmra.mrb[18].mxu0 %vm371_vm5, %v1335_v8 }
 0x7df   :  { %5039 = vmatpush3.bf16.xpose.msk.msra.mxu0 %vm5727_vm3, %v5037_v51  ;;  %v5422_v47 = vpop.eup %5421 }
 0x7e0   :  { %5040 = vmatprep.subr.bf16.mxu0 %v5609_v11  ;;  %v1331_v50 = vpop.xlane.xlu1 %1330  ;;  %v1339_v49 = vmul.f32 %v5422_v47, %v6142_v42 }
 0x7e4   :  { %v5274_v19 = vpop.permute.xlu1 %5273 }
 0x7e5   :  { %v5276_v25 = vunpack.i.h.bf16 %v5274_v19  ;;  %v5275_v17 = vunpack.i.l.bf16 %v5274_v19 }
 0x7e7   :  { %5043 = vmatpush3.bf16.xpose.msk.msra.mxu0 %vm5727_vm3, %v5041_v36  ;;  %v5049_v24 = vpack.c.bf16 %v5276_v25, %v5275_v17 }
 0x7e8   :  { %5044 = vmatprep.subr.bf16.mxu0 %v5609_v11 }
 0x801   :  { %v1316_v52 = vpop.xlane.xlu0 %1315 }
 0x802   :  { %5423 = vrcp.f32 %v1316_v52 }
 0x803   :  { %5425 = vrcp.f32 %v1325_v6 }
 0x804   :  { %5427 = vrcp.f32 %v1328_v22 }
 0x805   :  { %v1322_v0 = vpop.xlane.xlu0 %1321 }
 0x806   :  { %5429 = vrcp.f32 %v1322_v0 }
 0x807   :  { %5431 = vrcp.f32 %v1331_v50 }
 0x809   :  { %v5269_v44 = vpop.permute.xlu0 %5268 }
 0x80a   :  { %v5271_v46 = vunpack.i.h.bf16 %v5269_v44  ;;  %v5270_v53 = vunpack.i.l.bf16 %v5269_v44 }
 0x80c   :  { %v5424_v2 = vpop.eup %5423  ;;  %v5045_v26 = vpack.c.bf16 %v5271_v46, %v5270_v53 }
 0x80d   :  { %v1493_v28 = vpop.permute.xlu0 %1492  ;;  %v1337_v51 = vmul.f32 %v5424_v2, %v5414_v27  ;;  %v5426_v36 = vpop.eup %5425 }
 0x80e   :  { %5047 = vmatpush3.bf16.xpose.msk.msra.mxu0 %vm5727_vm3, %v5045_v26  ;;  %5061 = vmatprep.subr.bf16.mxu1 %v5045_v26  ;;  %v1496_v34 = vmul.f32 %v5721_v14, %v1493_v28  ;;  %v1495_v7 = vmul.f32 %v1493_v28, %v5723_v15  ;;  %v5428_v8 = vpop.eup %5427  ;;  %v1343_v42 = vmul.f32 %v5426_v36, %v6146_v5 }
 0x80f   :  { %4672 = vmatprep.mubr.msk.f32.mxu0 %vm371_vm5, %v1337_v51  ;;  %5063 = vmatpush3.bf16.msra.mxu1 %v5045_v26  ;;  %v1498_v14 = vmul.f32 %v5738_v20, %v1493_v28  ;;  %v1497_v22 = vmul.f32 %v1493_v28, %v5744_v23  ;;  %v1345_v52 = vmul.f32 %v5428_v8, %v6150_v4  ;;  %v1485_v4 = vld [vmem:[%s6998_s3 + $0x3] sm:$0x1] }
 0x810   :  { %v5430_v6 = vpop.eup %5429  ;;  %4673 = vmatmul.mubr.msk.f32.gmra.mrb[20].mxu0 %vm371_vm5, %v1339_v49  ;;  %1513 = vrot.lane.b32.xlu0 %v1496_v34, %s5616_s20  ;;  %v1500_v5 = vmul.f32 %v5757_v30, %v1493_v28  ;;  %v1499_v23 = vmul.f32 %v1493_v28, %v5760_v32  ;;  %v1502_v16 = vmul.f32 %v5773_v38, %v1493_v28 }
 0x811   :  { %1511 = vrot.lane.b32.xlu1 %v1495_v7, %s5616_s20  ;;  %5065 = vmatprep.subr.bf16.mxu1 %v5049_v24  ;;  %v1341_v27 = vmul.f32 %v5430_v6, %v6165_v29  ;;  %v5432_v15 = vpop.eup %5431  ;;  %v1501_v30 = vmul.f32 %v1493_v28, %v5776_v39 }
 0x812   :  { %5048 = vmatprep.subr.bf16.mxu0 %v5609_v11  ;;  %v1347_v20 = vmul.f32 %v5432_v15, %v6154_v35 }
 0x813   :  { %4675 = vmatprep.mubr.msk.f32.mxu0 %vm371_vm5, %v1341_v27  ;;  %5067 = vmatpush3.bf16.msra.mxu1 %v5049_v24 }
 0x814   :  { %4676 = vmatmul.mubr.msk.f32.gmra.mrb[22].mxu0 %vm371_vm5, %v1343_v42  ;;  %1517 = vrot.lane.b32.xlu0 %v1498_v14, %s5616_s20 }
 0x815   :  { %1515 = vrot.lane.b32.xlu1 %v1497_v22, %s5616_s20  ;;  %4678 = vmatprep.mubr.msk.f32.mxu0 %vm371_vm5, %v1345_v52 }
 0x816   :  { %5051 = vmatpush3.bf16.xpose.msk.msra.mxu0 %vm5727_vm3, %v5049_v24  ;;  %5076 = vmatprep.subr.bf16.mxu1 %v5609_v11 }
 0x818   :  { %4679 = vmatmul.mubr.msk.f32.gmra.mrb[24].mxu0 %vm371_vm5, %v1347_v20  ;;  %1521 = vrot.lane.b32.xlu0 %v1500_v5, %s5616_s20 }
 0x819   :  { %1519 = vrot.lane.b32.xlu1 %v1499_v23, %s5616_s20  ;;  %4697 = vmatprep.mubr.msk.f32.mxu0 %vm7007_vm1, %v7011_v12 }
 0x81c   :  { %1525 = vrot.lane.b32.xlu0 %v1502_v16, %s5616_s20 }
 0x81d   :  { %1523 = vrot.lane.b32.xlu1 %v1501_v30, %s5616_s20  ;;  %4698 = vmatmul.mubr.msk.f32.vlgmr.msra.gmra.mrb[26].mxu0 %vm7009_vm2, %v1485_v4 }
 0x882   :  { %v1514_v32 = vpop.permute.xlu0 %1513 }
 0x883   :  { %v1512_v35 = vpop.permute.xlu1 %1511  ;;  %v1538_v29 = vsel %vm7009_vm2, %v1514_v32, 0.0 }
 0x884   :  { %1539 = vadd.xlane.f32.xlu0 %v1538_v29  ;;  %v1535_v50 = vsel %vm7009_vm2, %v1512_v35, 0.0 }
 0x885   :  { %1536 = vadd.xlane.f32.xlu1 %v1535_v50 }
 0x886   :  { %v1518_v38 = vpop.permute.xlu0 %1517 }
 0x887   :  { %v1516_v0 = vpop.permute.xlu1 %1515  ;;  %v1544_v46 = vsel %vm7009_vm2, %v1518_v38, 0.0 }
 0x888   :  { %v1541_v19 = vsel %vm7009_vm2, %v1516_v0, 0.0 }
 0x889   :  { %1542 = vadd.xlane.f32.xlu0 %v1541_v19 }
 0x88a   :  { %v1522_v39 = vpop.permute.xlu0 %1521 }
 0x88b   :  { %v1520_v44 = vpop.permute.xlu1 %1519  ;;  %v1550_v25 = vsel %vm7009_vm2, %v1522_v39, 0.0 }
 0x88c   :  { %v1547_v53 = vsel %vm7009_vm2, %v1520_v44, 0.0 }
 0x88d   :  { %1545 = vadd.xlane.f32.xlu0 %v1544_v46  ;;  %1548 = vadd.xlane.f32.xlu1 %v1547_v53 }
 0x88e   :  { %v1526_v2 = vpop.permute.xlu0 %1525 }
 0x88f   :  { %v1524_v47 = vpop.permute.xlu1 %1523  ;;  %v1556_v26 = vsel %vm7009_vm2, %v1526_v2, 0.0 }
 0x890   :  { %v1553_v17 = vsel %vm7009_vm2, %v1524_v47, 0.0 }
 0x891   :  { %1551 = vadd.xlane.f32.xlu0 %v1550_v25  ;;  %1554 = vadd.xlane.f32.xlu1 %v1553_v17 }
 0x895   :  { %1557 = vadd.xlane.f32.xlu0 %v1556_v26 }
 0x8b1   :  { %v6230_v28 = vpop.f32.mrb[18].mxu0 }
 0x8b2   :  { %v6232_v51 = vpop.f32.mrb[19].mxu0 }
 0x8e3   :  { %v6234_v36 = vpop.f32.mrb[20].mxu0 }
 0x8e4   :  { %v6236_v49 = vpop.f32.mrb[21].mxu0 }
 0x8e7   :  { %v6238_v34 = vpop.f32.mrb[22].mxu0 }
 0x8e8   :  { %v6240_v7 = vpop.f32.mrb[23].mxu0 }
 0x8eb   :  { %v6242_v8 = vpop.f32.mrb[24].mxu0 }
 0x8ec   :  { %v6244_v24 = vpop.f32.mrb[25].mxu0 }
 0x8f0   :  { %v1660_v6 = vpop.f32.mrb[26].mxu0 }
 0x8f1   :  { %v4699_v27 = vpop.f32.mrb[27].mxu0  ;;  %v1667_v42 = vrot.slane %v1660_v6, %v5799_v54 }
 0x911   :  { %v1540_v14 = vpop.xlane.xlu0 %1539 }
 0x912   :  { %v1669_v15 = vadd.f32 %v1667_v42, %v1540_v14  ;;  %v1537_v22 = vpop.xlane.xlu1 %1536 }
 0x913   :  { %v1668_v52 = vadd.f32 %v1667_v42, %v1537_v22 }
 0x914   :  { %v1685_v20 = vmul.f32 0.2, %v1669_v15  ;;  %vm1677_vm3 = vcmp.gt.f32.partialorder %v1669_v15, 0.0 }
 0x915   :  { %v1684_v5 = vmul.f32 0.2, %v1668_v52  ;;  %vm1676_vm0 = vcmp.gt.f32.partialorder %v1668_v52, 0.0 }
 0x916   :  { %v1543_v23 = vpop.xlane.xlu0 %1542  ;;  %v1693_v16 = vsel %vm1677_vm3, %v1669_v15, %v1685_v20 }
 0x917   :  { %v1670_v4 = vadd.f32 %v1667_v42, %v1543_v23  ;;  %v1701_v30 = vsel %vm7010_vm4, %v1693_v16, -1e+30  ;;  %v1692_v32 = vsel %vm1676_vm0, %v1668_v52, %v1684_v5 }
 0x918   :  { %v1711_v35 = vsel %vm371_vm5, %v1701_v30, -inf  ;;  %v1700_v29 = vsel %vm355_vm6, %v1692_v32, -1e+30 }
 0x919   :  { %v1686_v50 = vmul.f32 0.2, %v1670_v4  ;;  %1712 = vmax.xlane.f32.xlu0 %v1711_v35  ;;  %v1708_v38 = vsel %vm371_vm5, %v1700_v29, -inf  ;;  %vm1678_vm10 = vcmp.gt.f32.partialorder %v1670_v4, 0.0 }
 0x91a   :  { %v1546_v0 = vpop.xlane.xlu0 %1545  ;;  %v1549_v19 = vpop.xlane.xlu1 %1548  ;;  %1709 = vmax.xlane.f32.xlu1 %v1708_v38 }
 0x91b   :  { %v1671_v39 = vadd.f32 %v1667_v42, %v1546_v0  ;;  %v1672_v44 = vadd.f32 %v1667_v42, %v1549_v19  ;;  %v1694_v46 = vsel %vm1678_vm10, %v1670_v4, %v1686_v50 }
 0x91c   :  { %v1702_v53 = vsel %vm357_vm8, %v1694_v46, -1e+30 }
 0x91d   :  { %v1687_v47 = vmul.f32 0.2, %v1671_v39  ;;  %v1688_v25 = vmul.f32 0.2, %v1672_v44  ;;  %v1714_v17 = vsel %vm371_vm5, %v1702_v53, -inf  ;;  %vm1679_vm11 = vcmp.gt.f32.partialorder %v1671_v39, 0.0 }
 0x91e   :  { %v1552_v2 = vpop.xlane.xlu0 %1551  ;;  %v1555_v26 = vpop.xlane.xlu1 %1554  ;;  %1715 = vmax.xlane.f32.xlu1 %v1714_v17  ;;  %vm1680_vm14 = vcmp.gt.f32.partialorder %v1672_v44, 0.0 }
 0x91f   :  { %v1673_v6 = vadd.f32 %v1667_v42, %v1552_v2  ;;  %v1674_v27 = vadd.f32 %v1667_v42, %v1555_v26  ;;  %v1695_v14 = vsel %vm1679_vm11, %v1671_v39, %v1687_v47  ;;  %v1696_v15 = vsel %vm1680_vm14, %v1672_v44, %v1688_v25 }
 0x920   :  { %v1703_v22 = vsel %vm358_vm7, %v1695_v14, -1e+30  ;;  %v1704_v52 = vsel %vm359_vm9, %v1696_v15, -1e+30  ;;  %vm2045_vm11 = vcmask 195584   ;;  %vm7014_vm14 = vcmask 130048  }
 0x921   :  { %v1689_v20 = vmul.f32 0.2, %v1673_v6  ;;  %v1690_v5 = vmul.f32 0.2, %v1674_v27  ;;  %v1717_v23 = vsel %vm371_vm5, %v1703_v22, -inf  ;;  %v1720_v16 = vsel %vm371_vm5, %v1704_v52, -inf }
 0x922   :  { %v1558_v4 = vpop.xlane.xlu0 %1557  ;;  %1718 = vmax.xlane.f32.xlu0 %v1717_v23  ;;  %1721 = vmax.xlane.f32.xlu1 %v1720_v16  ;;  %vm1681_vm3 = vcmp.gt.f32.partialorder %v1673_v6, 0.0  ;;  %vm1682_vm0 = vcmp.gt.f32.partialorder %v1674_v27, 0.0 }
 0x923   :  { %v1675_v32 = vadd.f32 %v1667_v42, %v1558_v4  ;;  %v1697_v35 = vsel %vm1681_vm3, %v1673_v6, %v1689_v20  ;;  %v1698_v50 = vsel %vm1682_vm0, %v1674_v27, %v1690_v5  ;;  %vm7015_vm3 = vmmov %vm7014_vm14 }
 0x924   :  { %v1705_v38 = vsel %vm360_vm15, %v1697_v35, -1e+30  ;;  %v1706_v0 = vsel %vm361_vm13, %v1698_v50, -1e+30  ;;  %vm7016_vm0 = vmmov %vm7015_vm3 }
 0x925   :  { %v1691_v19 = vmul.f32 0.2, %v1675_v32  ;;  %v1723_v39 = vsel %vm371_vm5, %v1705_v38, -inf  ;;  %v1726_v44 = vsel %vm371_vm5, %v1706_v0, -inf  ;;  %vm1683_vm10 = vcmp.gt.f32.partialorder %v1675_v32, 0.0 }
 0x926   :  { %1724 = vmax.xlane.f32.xlu0 %v1723_v39  ;;  %1727 = vmax.xlane.f32.xlu1 %v1726_v44 }
 0x927   :  { %v1699_v46 = vsel %vm1683_vm10, %v1675_v32, %v1691_v19  ;;  %vm7017_vm10 = vmmov %vm7016_vm0 }
 0x928   :  { %v1707_v42 = vsel %vm362_vm12, %v1699_v46, -1e+30 }
 0x929   :  { %v1729_v47 = vsel %vm371_vm5, %v1707_v42, -inf }
 0x92a   :  { %1730 = vmax.xlane.f32.xlu0 %v1729_v47 }
 0x9a6   :  { %v1713_v25 = vpop.xlane.xlu0 %1712 }
 0x9a7   :  { %v1733_v17 = vsub.f32 %v1701_v30, %v1713_v25  ;;  %v1710_v2 = vpop.xlane.xlu1 %1709 }
 0x9a8   :  { %v1732_v26 = vsub.f32 %v1700_v29, %v1710_v2 }
 0x9a9   :  { %v1742_v6 = vmul.f32 1.442695, %v1733_v17 }
 0x9aa   :  { %v1740_v27 = vmul.f32 1.442695, %v1732_v26 }
 0x9ab   :  { %5433 = vpow2.f32 %v1742_v6  ;;  %v1716_v14 = vpop.xlane.xlu1 %1715 }
 0x9ac   :  { %5435 = vpow2.f32 %v1740_v27  ;;  %v1734_v15 = vsub.f32 %v1702_v53, %v1716_v14 }
 0x9ae   :  { %v1744_v20 = vmul.f32 1.442695, %v1734_v15 }
 0x9af   :  { %v1719_v5 = vpop.xlane.xlu0 %1718  ;;  %v1722_v23 = vpop.xlane.xlu1 %1721 }
 0x9b0   :  { %5437 = vpow2.f32 %v1744_v20  ;;  %v1735_v16 = vsub.f32 %v1703_v22, %v1719_v5  ;;  %v1736_v4 = vsub.f32 %v1704_v52, %v1722_v23 }
 0x9b2   :  { %v1746_v32 = vmul.f32 1.442695, %v1735_v16  ;;  %v1748_v35 = vmul.f32 1.442695, %v1736_v4 }
 0x9b3   :  { %v1725_v50 = vpop.xlane.xlu0 %1724  ;;  %v1728_v19 = vpop.xlane.xlu1 %1727 }
 0x9b4   :  { %5439 = vpow2.f32 %v1746_v32  ;;  %v1737_v30 = vsub.f32 %v1705_v38, %v1725_v50  ;;  %v1738_v39 = vsub.f32 %v1706_v0, %v1728_v19 }
 0x9b5   :  { %v5434_v29 = vpop.eup %5433  ;;  %5441 = vpow2.f32 %v1748_v35 }
 0x9b6   :  { %v5436_v44 = vpop.eup %5435  ;;  %v1750_v46 = vmul.f32 1.442695, %v1737_v30  ;;  %v1752_v47 = vmul.f32 1.442695, %v1738_v39  ;;  %v1759_v53 = vsel %vm371_vm5, %v5434_v29, 0.0 }
 0x9b7   :  { %v1731_v25 = vpop.xlane.xlu0 %1730  ;;  %1760 = vadd.xlane.f32.xlu0 %v1759_v53  ;;  %v1756_v17 = vsel %vm371_vm5, %v5436_v44, 0.0 }
 0x9b8   :  { %5443 = vpow2.f32 %v1750_v46  ;;  %v1739_v22 = vsub.f32 %v1707_v42, %v1731_v25  ;;  %1757 = vadd.xlane.f32.xlu1 %v1756_v17 }
 0x9b9   :  { %5445 = vpow2.f32 %v1752_v47 }
 0x9ba   :  { %v5438_v52 = vpop.eup %5437  ;;  %v1754_v2 = vmul.f32 1.442695, %v1739_v22 }
 0x9bb   :  { %v1762_v38 = vsel %vm371_vm5, %v5438_v52, 0.0 }
 0x9bc   :  { %5447 = vpow2.f32 %v1754_v2  ;;  %1763 = vadd.xlane.f32.xlu1 %v1762_v38  ;;  %v2110_v2 = vld [vmem:[%s7000_s6 + $0x8] sm:$0xff] }
 0x9be   :  { %v5440_v0 = vpop.eup %5439 }
 0x9bf   :  { %v5442_v26 = vpop.eup %5441  ;;  %v1765_v6 = vsel %vm371_vm5, %v5440_v0, 0.0 }
 0x9c0   :  { %1766 = vadd.xlane.f32.xlu0 %v1765_v6  ;;  %v1768_v27 = vsel %vm371_vm5, %v5442_v26, 0.0 }
 0x9c1   :  { %1769 = vadd.xlane.f32.xlu1 %v1768_v27 }
 0x9c2   :  { %v5444_v14 = vpop.eup %5443 }
 0x9c3   :  { %v5446_v15 = vpop.eup %5445  ;;  %v1771_v42 = vsel %vm371_vm5, %v5444_v14, 0.0 }
 0x9c4   :  { %1772 = vadd.xlane.f32.xlu0 %v1771_v42  ;;  %v1774_v20 = vsel %vm371_vm5, %v5446_v15, 0.0 }
 0x9c5   :  { %1775 = vadd.xlane.f32.xlu1 %v1774_v20 }
 0x9c6   :  { %v5448_v5 = vpop.eup %5447 }
 0x9c7   :  { %v1777_v23 = vsel %vm371_vm5, %v5448_v5, 0.0 }
 0x9c8   :  { %1778 = vadd.xlane.f32.xlu0 %v1777_v23 }
 0x9d6   :  { %1941 = vrot.lane.b32.xlu1 %v6093_v9, %s5613_s12 }
 0x9da   :  { %1973 = vrot.lane.b32.xlu1 %v6232_v51, %s5615_s17 }
 0x9de   :  { %1975 = vrot.lane.b32.xlu1 %v6230_v28, %s5615_s17  ;;  %1943 = vrot.lane.b32.xlu0 %v6091_v41, %s5613_s12 }
 0x9e2   :  { %1945 = vrot.lane.b32.xlu1 %v6097_v13, %s5613_s12  ;;  %1947 = vrot.lane.b32.xlu0 %v6095_v10, %s5613_s12 }
 0x9e6   :  { %1977 = vrot.lane.b32.xlu1 %v6236_v49, %s5615_s17  ;;  %1979 = vrot.lane.b32.xlu0 %v6234_v36, %s5615_s17 }
 0x9ea   :  { %1949 = vrot.lane.b32.xlu1 %v6101_v18, %s5613_s12  ;;  %1951 = vrot.lane.b32.xlu0 %v6099_v48, %s5613_s12 }
 0xa44   :  { %v1761_v9 = vpop.xlane.xlu0 %1760 }
 0xa45   :  { %5449 = vrcp.f32 %v1761_v9  ;;  %v1758_v41 = vpop.xlane.xlu1 %1757 }
 0xa46   :  { %5451 = vrcp.f32 %v1758_v41 }
 0xa49   :  { %v1764_v13 = vpop.xlane.xlu1 %1763 }
 0xa4a   :  { %5453 = vrcp.f32 %v1764_v13 }
 0xa4d   :  { %v1767_v28 = vpop.xlane.xlu0 %1766 }
 0xa4e   :  { %5455 = vrcp.f32 %v1767_v28  ;;  %v1770_v10 = vpop.xlane.xlu1 %1769 }
 0xa4f   :  { %v5450_v51 = vpop.eup %5449  ;;  %5457 = vrcp.f32 %v1770_v10 }
 0xa50   :  { %v5452_v49 = vpop.eup %5451  ;;  %v1783_v16 = vmul.f32 %v5450_v51, %v5434_v29 }
 0xa51   :  { %v1773_v36 = vpop.xlane.xlu0 %1772  ;;  %v1781_v4 = vmul.f32 %v5452_v49, %v5436_v44 }
 0xa52   :  { %5459 = vrcp.f32 %v1773_v36  ;;  %v1776_v18 = vpop.xlane.xlu1 %1775 }
 0xa53   :  { %5461 = vrcp.f32 %v1776_v18  ;;  %4716 = vmatprep.mubr.msk.f32.mxu1 %vm371_vm5, %v1781_v4 }
 0xa54   :  { %v5454_v48 = vpop.eup %5453  ;;  %4717 = vmatmul.mubr.msk.f32.vlgmr.msra.gmra.mrb[12].mxu1 %vm371_vm5, %v1783_v16 }
 0xa55   :  { %v1779_v32 = vpop.xlane.xlu0 %1778  ;;  %v1785_v35 = vmul.f32 %v5454_v48, %v5438_v52  ;;  %v2109_v52 = vld [vmem:[%s7000_s6] sm:$0xff] }
 0xa56   :  { %5463 = vrcp.f32 %v1779_v32  ;;  %v5068_v38 = vpack.c.bf16 %v2110_v2, %v2109_v52 }
 0xa57   :  { %4719 = vmatprep.mubr.msk.f32.mxu1 %vm371_vm5, %v1785_v35 }
 0xa58   :  { %v5456_v50 = vpop.eup %5455  ;;  %5069 = vmatprep.subr.bf16.mxu0 %v5068_v38 }
 0xa59   :  { %v5458_v19 = vpop.eup %5457  ;;  %v1787_v30 = vmul.f32 %v5456_v50, %v5440_v0  ;;  %5071 = vmatpush3.bf16.msra.mxu0 %v5068_v38  ;;  %v2111_v0 = vld [vmem:[%s7000_s6 + $0x10] sm:$0xff] }
 0xa5a   :  { %v1789_v39 = vmul.f32 %v5458_v19, %v5442_v26  ;;  %v2112_v26 = vld [vmem:[%s7000_s6 + $0x18] sm:$0xff] }
 0xa5b   :  { %4720 = vmatmul.mubr.msk.f32.gmra.mrb[14].mxu1 %vm371_vm5, %v1787_v30  ;;  %v5072_v6 = vpack.c.bf16 %v2112_v26, %v2111_v0 }
 0xa5c   :  { %v5460_v29 = vpop.eup %5459  ;;  %4722 = vmatprep.mubr.msk.f32.mxu1 %vm371_vm5, %v1789_v39 }
 0xa5d   :  { %v5462_v44 = vpop.eup %5461  ;;  %v1791_v46 = vmul.f32 %v5460_v29, %v5444_v14  ;;  %5073 = vmatprep.subr.bf16.mxu0 %v5072_v6 }
 0xa5e   :  { %v1793_v47 = vmul.f32 %v5462_v44, %v5446_v15  ;;  %5075 = vmatpush3.bf16.msra.mxu0 %v5072_v6 }
 0xa5f   :  { %4723 = vmatmul.mubr.msk.f32.gmra.mrb[16].mxu1 %vm371_vm5, %v1791_v46 }
 0xa60   :  { %v5464_v53 = vpop.eup %5463  ;;  %4725 = vmatprep.mubr.msk.f32.mxu1 %vm371_vm5, %v1793_v47 }
 0xa61   :  { %v1795_v25 = vmul.f32 %v5464_v53, %v5448_v5  ;;  %v1944_v5 = vpop.permute.xlu0 %1943 }
 0xa63   :  { %4726 = vmatmul.mubr.msk.f32.gmra.mrb[18].mxu1 %vm371_vm5, %v1795_v25 }
 0xa64   :  { %4764 = vmatprep.mubr.msk.f32.mxu1 %vm7007_vm1, %v7011_v12 }
 0xa65   :  { %v1948_v23 = vpop.permute.xlu0 %1947 }
 0xa69   :  { %v1980_v41 = vpop.permute.xlu0 %1979 }
 0xa6d   :  { %v1952_v28 = vpop.permute.xlu0 %1951 }
 0xb27   :  { %v4718_v17 = vpop.f32.mrb[12].mxu1 }
 0xb28   :  { %2007 = vrot.lane.b32.xlu0 %v4718_v17, %s5617_s2  ;;  %v1894_v22 = vpop.f32.mrb[13].mxu1 }
 0xb29   :  { %2005 = vrot.lane.b32.xlu1 %v1894_v22, %s5617_s2 }
 0xb2c   :  { %1983 = vrot.lane.b32.xlu0 %v6238_v34, %s5615_s17 }
 0xb2d   :  { %1981 = vrot.lane.b32.xlu1 %v6240_v7, %s5615_s17 }
 0xb2e   :  { %v4721_v27 = vpop.f32.mrb[14].mxu1 }
 0xb2f   :  { %v1904_v14 = vpop.f32.mrb[15].mxu1 }
 0xb30   :  { %2011 = vrot.lane.b32.xlu0 %v4721_v27, %s5617_s2 }
 0xb31   :  { %2009 = vrot.lane.b32.xlu1 %v1904_v14, %s5617_s2 }
 0xb32   :  { %v4724_v34 = vpop.f32.mrb[16].mxu1 }
 0xb33   :  { %v1914_v15 = vpop.f32.mrb[17].mxu1 }
 0xb34   :  { %1955 = vrot.lane.b32.xlu0 %v6103_v37, %s5613_s12  ;;  %v1942_v37 = vpop.permute.xlu1 %1941 }
 0xb35   :  { %1953 = vrot.lane.b32.xlu1 %v6105_v21, %s5613_s12  ;;  %v2029_v51 = vsel %vm7009_vm2, %v5974_v57, %v1942_v37  ;;  %v2032_v57 = vsel %vm7009_vm2, %v5976_v61, %v1948_v23 }
 0xb36   :  { %v4727_v42 = vpop.f32.mrb[18].mxu1  ;;  %v2040_v39 = vsel %vm7016_vm0, %v2032_v57, %v1980_v41 }
 0xb37   :  { %v1924_v20 = vpop.f32.mrb[19].mxu1 }
 0xb38   :  { %2015 = vrot.lane.b32.xlu0 %v4724_v34, %s5617_s2  ;;  %v1974_v7 = vpop.permute.xlu1 %1973 }
 0xb39   :  { %2013 = vrot.lane.b32.xlu1 %v1914_v15, %s5617_s2  ;;  %v2037_v36 = vsel %vm7015_vm3, %v2029_v51, %v1974_v7  ;;  %vm7019_vm3 = vmmov %vm7016_vm0 }
 0xb3c   :  { %1987 = vrot.lane.b32.xlu0 %v6242_v8, %s5615_s17  ;;  %v1976_v21 = vpop.permute.xlu1 %1975  ;;  %v2030_v8 = vsel %vm7009_vm2, %v5972_v56, %v1944_v5 }
 0xb3d   :  { %1985 = vrot.lane.b32.xlu1 %v6244_v24, %s5615_s17  ;;  %v6346_v24 = vld [vmem:[%s7001_s5] ss:$0 sm:$0xff]  ;;  %v2038_v49 = vsel %vm7014_vm14, %v2030_v8, %v1976_v21  ;;  %vm7018_vm14 = vmmov %vm7016_vm0  ;;  %vm2113_vm0 = vcmask 261120  }
 0xb40   :  { %2019 = vrot.lane.b32.xlu0 %v4727_v42, %s5617_s2  ;;  %v1946_v9 = vpop.permute.xlu1 %1945 }
 0xb41   :  { %2017 = vrot.lane.b32.xlu1 %v1924_v20, %s5617_s2  ;;  %v2031_v29 = vsel %vm7009_vm2, %v5978_v62, %v1946_v9  ;;  %v2034_v62 = vsel %vm7009_vm2, %v5980_v63, %v1952_v28 }
 0xb44   :  { %v1978_v13 = vpop.permute.xlu1 %1977 }
 0xb45   :  { %v2039_v46 = vsel %vm7017_vm10, %v2031_v29, %v1978_v13 }
 0xb48   :  { %v1950_v10 = vpop.permute.xlu1 %1949 }
 0xb49   :  { %v2033_v26 = vsel %vm7009_vm2, %v5982_v1, %v1950_v10 }
 0xb9a   :  { %v2008_v16 = vpop.permute.xlu0 %2007 }
 0xb9b   :  { %v2047_v4 = vsel %vm2045_vm11, %v2038_v49, %v2008_v16  ;;  %v2006_v18 = vpop.permute.xlu1 %2005 }
 0xb9c   :  { %v2062_v48 = vadd.f32 %v6346_v24, %v2047_v4  ;;  %v2046_v56 = vsel %vm2045_vm11, %v2037_v36, %v2006_v18 }
 0xb9d   :  { %v2061_v32 = vadd.f32 %v6346_v24, %v2046_v56 }
 0xb9e   :  { %v2079_v35 = vmul.f32 1.442695, %v2062_v48  ;;  %v1984_v50 = vpop.permute.xlu0 %1983  ;;  %vm2070_vm1 = vcmp.gt.f32.partialorder %v2062_v48, 0.0 }
 0xb9f   :  { %v2077_v19 = vmul.f32 1.442695, %v2061_v32  ;;  %v1982_v30 = vpop.permute.xlu1 %1981  ;;  %v2042_v6 = vsel %vm7018_vm14, %v2034_v62, %v1984_v50  ;;  %vm2069_vm10 = vcmp.gt.f32.partialorder %v2061_v32, 0.0  ;;  %vm7020_vm14 = vmmov %vm7019_vm3 }
 0xba0   :  { %5465 = vpow2.f32 %v2079_v35  ;;  %v2041_v34 = vsel %vm7019_vm3, %v2033_v26, %v1982_v30 }
 0xba1   :  { %5467 = vpow2.f32 %v2077_v19 }
 0xba2   :  { %v2012_v44 = vpop.permute.xlu0 %2011 }
 0xba3   :  { %v2049_v47 = vsel %vm2045_vm11, %v2040_v39, %v2012_v44  ;;  %v2010_v53 = vpop.permute.xlu1 %2009 }
 0xba4   :  { %v2064_v25 = vadd.f32 %v6346_v24, %v2049_v47  ;;  %v2048_v17 = vsel %vm2045_vm11, %v2039_v46, %v2010_v53 }
 0xba5   :  { %v2063_v22 = vadd.f32 %v6346_v24, %v2048_v17 }
 0xba6   :  { %v2083_v52 = vmul.f32 1.442695, %v2064_v25  ;;  %v1956_v61 = vpop.permute.xlu0 %1955 }
 0xba7   :  { %v2081_v2 = vmul.f32 1.442695, %v2063_v22  ;;  %v1954_v38 = vpop.permute.xlu1 %1953  ;;  %v2036_v28 = vsel %vm7009_vm2, %v5984_v3, %v1956_v61  ;;  %v4229_v61 = vld [vmem:[%s7002_s8] ss:$0 sm:$0xff] }
 0xba8   :  { %5469 = vpow2.f32 %v2083_v52  ;;  %v2035_v8 = vsel %vm7009_vm2, %v5986_v40, %v1954_v38 }
 0xba9   :  { %5471 = vpow2.f32 %v2081_v2 }
 0xbaa   :  { %v5466_v0 = vpop.eup %5465  ;;  %v2016_v27 = vpop.permute.xlu0 %2015 }
 0xbab   :  { %v5468_v14 = vpop.eup %5467  ;;  %v2051_v15 = vsel %vm2045_vm11, %v2042_v6, %v2016_v27  ;;  %v2014_v42 = vpop.permute.xlu1 %2013  ;;  %v4214_v20 = vadd.f32 -1.0, %v5466_v0 }
 0xbac   :  { %v2066_v37 = vadd.f32 %v6346_v24, %v2051_v15  ;;  %v2050_v7 = vsel %vm2045_vm11, %v2041_v34, %v2014_v42  ;;  %v4213_v63 = vadd.f32 -1.0, %v5468_v14 }
 0xbad   :  { %v2065_v5 = vadd.f32 %v6346_v24, %v2050_v7  ;;  %v2102_v13 = vsel %vm2070_vm1, %v2062_v48, %v4214_v20  ;;  %vm2071_vm1 = vcmp.gt.f32.partialorder %v2063_v22, 0.0 }
 0xbae   :  { %v2087_v1 = vmul.f32 1.442695, %v2066_v37  ;;  %v1988_v21 = vpop.permute.xlu0 %1987  ;;  %v2101_v23 = vsel %vm2069_vm10, %v2061_v32, %v4213_v63  ;;  %vm2072_vm10 = vcmp.gt.f32.partialorder %v2064_v25, 0.0 }
 0xbaf   :  { %v2085_v9 = vmul.f32 1.442695, %v2065_v5  ;;  %4736 = vmatprep.mubr.msk.f32.mxu0 %vm2113_vm0, %v2101_v23  ;;  %v1986_v41 = vpop.permute.xlu1 %1985  ;;  %v2044_v51 = vsel %vm7020_vm14, %v2036_v28, %v1988_v21  ;;  %vm2074_vm14 = vcmp.gt.f32.partialorder %v2066_v37, 0.0 }
 0xbb0   :  { %5473 = vpow2.f32 %v2087_v1  ;;  %4737 = vmatmul.mubr.msk.f32.vlgmr.msra.gmra.mrb[28].mxu0 %vm2113_vm0, %v2102_v13  ;;  %v2043_v36 = vsel %vm7019_vm3, %v2035_v8, %v1986_v41 }
 0xbb1   :  { %5475 = vpow2.f32 %v2085_v9 }
 0xbb2   :  { %v5470_v10 = vpop.eup %5469  ;;  %v2020_v49 = vpop.permute.xlu0 %2019 }
 0xbb3   :  { %v5472_v16 = vpop.eup %5471  ;;  %v2053_v4 = vsel %vm2045_vm11, %v2044_v51, %v2020_v49  ;;  %v2018_v18 = vpop.permute.xlu1 %2017  ;;  %v4216_v48 = vadd.f32 -1.0, %v5470_v10 }
 0xbb4   :  { %v2068_v56 = vadd.f32 %v6346_v24, %v2053_v4  ;;  %v2052_v32 = vsel %vm2045_vm11, %v2043_v36, %v2018_v18  ;;  %v4215_v3 = vadd.f32 -1.0, %v5472_v16  ;;  %vm2073_vm11 = vcmp.gt.f32.partialorder %v2065_v5, 0.0 }
 0xbb5   :  { %v2067_v35 = vadd.f32 %v6346_v24, %v2052_v32  ;;  %v2104_v30 = vsel %vm2072_vm10, %v2064_v25, %v4216_v48  ;;  %vm2257_vm10 = vcmask 31744   ;;  %v2243_v32 = vld [vmem:[%s7003_s7] sm:$0x1] }
 0xbb6   :  { %v2091_v50 = vmul.f32 1.442695, %v2068_v56  ;;  %v2103_v40 = vsel %vm2071_vm1, %v2063_v22, %v4215_v3  ;;  %vm2076_vm1 = vcmp.gt.f32.partialorder %v2068_v56, 0.0 }
 0xbb7   :  { %v2089_v19 = vmul.f32 1.442695, %v2067_v35  ;;  %4739 = vmatprep.mubr.msk.f32.mxu0 %vm2113_vm0, %v2103_v40  ;;  %vm2075_vm3 = vcmp.gt.f32.partialorder %v2067_v35, 0.0 }
 0xbb8   :  { %5477 = vpow2.f32 %v2091_v50  ;;  %4740 = vmatmul.mubr.msk.f32.gmra.mrb[30].mxu0 %vm2113_vm0, %v2104_v30 }
 0xbb9   :  { %5479 = vpow2.f32 %v2089_v19 }
 0xbba   :  { %v5474_v57 = vpop.eup %5473 }
 0xbbb   :  { %v5476_v39 = vpop.eup %5475  ;;  %v4218_v29 = vadd.f32 -1.0, %v5474_v57 }
 0xbbc   :  { %v4217_v44 = vadd.f32 -1.0, %v5476_v39 }
 0xbbd   :  { %v2106_v24 = vsel %vm2074_vm14, %v2066_v37, %v4218_v29 }
 0xbbe   :  { %v2105_v46 = vsel %vm2073_vm11, %v2065_v5, %v4217_v44  ;;  %vm6404_vm11 = vmpackc.low %vm2257_vm10, %vm2257_vm10 }
 0xbbf   :  { %4742 = vmatprep.mubr.msk.f32.mxu0 %vm2113_vm0, %v2105_v46 }
 0xbc0   :  { %4743 = vmatmul.mubr.msk.f32.gmra.mrb[32].mxu0 %vm2113_vm0, %v2106_v24 }
 0xbc2   :  { %v5478_v47 = vpop.eup %5477 }
 0xbc3   :  { %v5480_v53 = vpop.eup %5479  ;;  %v4220_v17 = vadd.f32 -1.0, %v5478_v47 }
 0xbc4   :  { %v4219_v25 = vadd.f32 -1.0, %v5480_v53 }
 0xbc5   :  { %v2108_v52 = vsel %vm2076_vm1, %v2068_v56, %v4220_v17 }
 0xbc6   :  { %v2107_v22 = vsel %vm2075_vm3, %v2067_v35, %v4219_v25 }
 0xbc7   :  { %4745 = vmatprep.mubr.msk.f32.mxu0 %vm2113_vm0, %v2107_v22 }
 0xbc8   :  { %4746 = vmatmul.mubr.msk.f32.gmra.mrb[34].mxu0 %vm2113_vm0, %v2108_v52 }
 0xc83   :  { %v6397_v2 = vpop.f32.mrb[28].mxu0 }
 0xc84   :  { %v6399_v38 = vpop.f32.mrb[29].mxu0  ;;  %v2250_v62 = vmul.f32 %v6397_v2, %v4229_v61 }
 0xc85   :  { %v5077_v26 = vpack.c.bf16 %v6397_v2, %v6399_v38  ;;  %v2249_v6 = vmul.f32 %v4229_v61, %v6399_v38  ;;  %v6413_v27 = vpack.i.bf16 %v6397_v2, %v6399_v38 }
 0xc86   :  { %v2261_v14 = vsel %vm2257_vm10, %v2250_v62, 0.0 }
 0xc87   :  { %2262 = vadd.xlane.f32.xlu0 %v2261_v14  ;;  %5079 = vmatpush3.bf16.xpose.msk.msra.mxu1 %vm6404_vm11, %v5077_v26  ;;  %v2258_v34 = vsel %vm2257_vm10, %v2249_v6, 0.0 }
 0xc88   :  { %5093 = vmatprep.subr.bf16.mxu0 %v5077_v26  ;;  %2259 = vadd.xlane.f32.xlu1 %v2258_v34 }
 0xc89   :  { %5095 = vmatpush3.bf16.msra.mxu0 %v5077_v26  ;;  %5080 = vmatprep.subr.bf16.mxu1 %v5609_v11 }
 0xc8b   :  { %v6420_v15 = vpop.f32.mrb[30].mxu0 }
 0xc8c   :  { %v6422_v42 = vpop.f32.mrb[31].mxu0  ;;  %v2252_v5 = vmul.f32 %v6420_v15, %v4229_v61 }
 0xc8d   :  { %v5081_v20 = vpack.c.bf16 %v6420_v15, %v6422_v42  ;;  %v2251_v37 = vmul.f32 %v4229_v61, %v6422_v42  ;;  %v6429_v7 = vpack.i.bf16 %v6420_v15, %v6422_v42 }
 0xc8e   :  { %v2267_v21 = vsel %vm2257_vm10, %v2252_v5, 0.0 }
 0xc8f   :  { %5083 = vmatpush3.bf16.xpose.msk.msra.mxu1 %vm6404_vm11, %v5081_v20  ;;  %5097 = vmatprep.subr.bf16.mxu0 %v5081_v20  ;;  %v2264_v63 = vsel %vm2257_vm10, %v2251_v37, 0.0 }
 0xc90   :  { %5099 = vmatpush3.bf16.msra.mxu0 %v5081_v20  ;;  %2265 = vadd.xlane.f32.xlu0 %v2264_v63 }
 0xc91   :  { %5084 = vmatprep.subr.bf16.mxu1 %v5609_v11 }
 0xc93   :  { %v6436_v1 = vpop.f32.mrb[32].mxu0 }
 0xc94   :  { %2268 = vadd.xlane.f32.xlu0 %v2267_v21  ;;  %v6439_v23 = vpop.f32.mrb[33].mxu0  ;;  %v2254_v9 = vmul.f32 %v6436_v1, %v4229_v61 }
 0xc95   :  { %v5085_v41 = vpack.c.bf16 %v6436_v1, %v6439_v23  ;;  %v2253_v13 = vmul.f32 %v4229_v61, %v6439_v23  ;;  %v6447_v28 = vpack.i.bf16 %v6436_v1, %v6439_v23 }
 0xc96   :  { %v2273_v10 = vsel %vm2257_vm10, %v2254_v9, 0.0 }
 0xc97   :  { %5087 = vmatpush3.bf16.xpose.msk.msra.mxu1 %vm6404_vm11, %v5085_v41  ;;  %5101 = vmatprep.subr.bf16.mxu0 %v5085_v41  ;;  %v2270_v8 = vsel %vm2257_vm10, %v2253_v13, 0.0 }
 0xc98   :  { %2274 = vadd.xlane.f32.xlu0 %v2273_v10  ;;  %5103 = vmatpush3.bf16.msra.mxu0 %v5085_v41 }
 0xc99   :  { %2271 = vadd.xlane.f32.xlu1 %v2270_v8  ;;  %5088 = vmatprep.subr.bf16.mxu1 %v5609_v11 }
 0xc9b   :  { %v6454_v51 = vpop.f32.mrb[34].mxu0 }
 0xc9c   :  { %v6456_v49 = vpop.f32.mrb[35].mxu0  ;;  %v2256_v16 = vmul.f32 %v6454_v51, %v4229_v61 }
 0xc9d   :  { %v5089_v36 = vpack.c.bf16 %v6454_v51, %v6456_v49  ;;  %v2255_v4 = vmul.f32 %v4229_v61, %v6456_v49  ;;  %v6464_v18 = vpack.i.bf16 %v6454_v51, %v6456_v49 }
 0xc9e   :  { %v2279_v48 = vsel %vm2257_vm10, %v2256_v16, 0.0 }
 0xc9f   :  { %2280 = vadd.xlane.f32.xlu0 %v2279_v48  ;;  %5091 = vmatpush3.bf16.xpose.msk.msra.mxu1 %vm6404_vm11, %v5089_v36  ;;  %v2276_v56 = vsel %vm2257_vm10, %v2255_v4, 0.0 }
 0xca0   :  { %5105 = vmatprep.subr.bf16.mxu0 %v5089_v36  ;;  %2277 = vadd.xlane.f32.xlu1 %v2276_v56 }
 0xca1   :  { %5107 = vmatpush3.bf16.msra.mxu0 %v5089_v36 }
 0xca2   :  { %5108 = vmatprep.subr.bf16.mxu0 %v5609_v11 }
 0xca6   :  { %4765 = vmatmul.mubr.msk.f32.vlgmr.msra.gmra.mrb[20].mxu1 %vm2257_vm10, %v2243_v32 }
 0xd14   :  { %v2263_v3 = vpop.xlane.xlu0 %2262 }
 0xd15   :  { %v2260_v40 = vpop.xlane.xlu1 %2259 }
 0xd1d   :  { %v2266_v35 = vpop.xlane.xlu0 %2265 }
 0xd21   :  { %v2269_v50 = vpop.xlane.xlu0 %2268 }
 0xd25   :  { %v2275_v19 = vpop.xlane.xlu0 %2274 }
 0xd26   :  { %v2272_v30 = vpop.xlane.xlu1 %2271 }
 0xd2c   :  { %v2281_v44 = vpop.xlane.xlu0 %2280 }
 0xd2d   :  { %v2278_v46 = vpop.xlane.xlu1 %2277 }
 0xd79   :  { %v2375_v57 = vpop.f32.mrb[20].mxu1 }
 0xd7a   :  { %v2382_v39 = vrot.slane %v2375_v57, %v5799_v54  ;;  %v4766_v29 = vpop.f32.mrb[21].mxu1 }
 0xd7c   :  { %v2384_v24 = vadd.f32 %v2382_v39, %v2263_v3  ;;  %v2383_v47 = vadd.f32 %v2382_v39, %v2260_v40  ;;  %v2386_v53 = vadd.f32 %v2382_v39, %v2269_v50  ;;  %v2385_v17 = vadd.f32 %v2382_v39, %v2266_v35 }
 0xd7d   :  { %v2388_v25 = vadd.f32 %v2382_v39, %v2275_v19  ;;  %v2387_v22 = vadd.f32 %v2382_v39, %v2272_v30  ;;  %v2390_v52 = vadd.f32 %v2382_v39, %v2281_v44  ;;  %v2389_v61 = vadd.f32 %v2382_v39, %v2278_v46 }
 0xd7e   :  { %vm2392_vm0 = vcmp.gt.f32.partialorder %v2384_v24, 0.0  ;;  %v2400_v62 = vmul.f32 0.2, %v2384_v24  ;;  %vm2391_vm14 = vcmp.gt.f32.partialorder %v2383_v47, 0.0  ;;  %v2399_v26 = vmul.f32 0.2, %v2383_v47 }
 0xd7f   :  { %vm2394_vm3 = vcmp.gt.f32.partialorder %v2386_v53, 0.0  ;;  %v2402_v6 = vmul.f32 0.2, %v2386_v53  ;;  %vm2393_vm1 = vcmp.gt.f32.partialorder %v2385_v17, 0.0  ;;  %v2401_v14 = vmul.f32 0.2, %v2385_v17 }
 0xd80   :  { %v2408_v34 = vsel %vm2392_vm0, %v2384_v24, %v2400_v62  ;;  %v2407_v20 = vsel %vm2391_vm14, %v2383_v47, %v2399_v26  ;;  %vm2396_vm2 = vcmp.gt.f32.partialorder %v2388_v25, 0.0  ;;  %v2404_v37 = vmul.f32 0.2, %v2388_v25 }
 0xd81   :  { %v2416_v63 = vsel %vm7010_vm4, %v2408_v34, -1e+30  ;;  %v2415_v5 = vsel %vm355_vm6, %v2407_v20, -1e+30  ;;  %v2410_v21 = vsel %vm2394_vm3, %v2386_v53, %v2402_v6  ;;  %v2409_v9 = vsel %vm2393_vm1, %v2385_v17, %v2401_v14 }
 0xd82   :  { %v2426_v41 = vsel %vm371_vm5, %v2416_v63, -inf  ;;  %v2423_v13 = vsel %vm371_vm5, %v2415_v5, -inf  ;;  %v2418_v10 = vsel %vm358_vm7, %v2410_v21, -1e+30  ;;  %v2417_v8 = vsel %vm357_vm8, %v2409_v9, -1e+30 }
 0xd83   :  { %2427 = vmax.xlane.f32.xlu0 %v2426_v41  ;;  %2424 = vmax.xlane.f32.xlu1 %v2423_v13  ;;  %vm2395_vm0 = vcmp.gt.f32.partialorder %v2387_v22, 0.0  ;;  %v2412_v16 = vsel %vm2396_vm2, %v2388_v25, %v2404_v37  ;;  %v2403_v36 = vmul.f32 0.2, %v2387_v22  ;;  %vm2398_vm14 = vcmp.gt.f32.partialorder %v2390_v52, 0.0 }
 0xd84   :  { %v2406_v4 = vmul.f32 0.2, %v2390_v52  ;;  %vm2397_vm4 = vcmp.gt.f32.partialorder %v2389_v61, 0.0  ;;  %v2405_v48 = vmul.f32 0.2, %v2389_v61  ;;  %v2432_v56 = vsel %vm371_vm5, %v2418_v10, -inf }
 0xd85   :  { %v2429_v32 = vsel %vm371_vm5, %v2417_v8, -inf  ;;  %v2411_v3 = vsel %vm2395_vm0, %v2387_v22, %v2403_v36  ;;  %v2420_v35 = vsel %vm360_vm15, %v2412_v16, -1e+30  ;;  %vm7023_vm2 = vmmov 0  }
 0xd86   :  { %v2419_v50 = vsel %vm359_vm9, %v2411_v3, -1e+30  ;;  %v2414_v40 = vsel %vm2398_vm14, %v2390_v52, %v2406_v4  ;;  %v2413_v19 = vsel %vm2397_vm4, %v2389_v61, %v2405_v48  ;;  %v2438_v30 = vsel %vm371_vm5, %v2420_v35, -inf }
 0xd87   :  { %2433 = vmax.xlane.f32.xlu0 %v2432_v56  ;;  %2430 = vmax.xlane.f32.xlu1 %v2429_v32  ;;  %v2435_v57 = vsel %vm371_vm5, %v2419_v50, -inf  ;;  %v2422_v39 = vsel %vm362_vm12, %v2414_v40, -1e+30  ;;  %v2421_v29 = vsel %vm361_vm13, %v2413_v19, -1e+30  ;;  %vm7024_vm0 = vcmp.gt.f32.partialorder %v5804_v55, 0.0 }
 0xd88   :  { %v2444_v44 = vsel %vm371_vm5, %v2422_v39, -inf  ;;  %v2441_v46 = vsel %vm371_vm5, %v2421_v29, -inf }
 0xd8b   :  { %2439 = vmax.xlane.f32.xlu0 %v2438_v30  ;;  %2436 = vmax.xlane.f32.xlu1 %v2435_v57 }
 0xd8f   :  { %2445 = vmax.xlane.f32.xlu0 %v2444_v44  ;;  %2442 = vmax.xlane.f32.xlu1 %v2441_v46 }
 0xda0   :  { %5278 = vrot.lane.b32.xlu1 %v6413_v27, %s5618_s15 }
 0xe10   :  { %v2428_v24 = vpop.xlane.xlu0 %2427  ;;  %v2425_v47 = vpop.xlane.xlu1 %2424 }
 0xe11   :  { %v2448_v53 = vsub.f32 %v2416_v63, %v2428_v24  ;;  %v2447_v17 = vsub.f32 %v2415_v5, %v2425_v47 }
 0xe13   :  { %v2457_v25 = vmul.f32 1.442695, %v2448_v53  ;;  %v2455_v22 = vmul.f32 1.442695, %v2447_v17 }
 0xe14   :  { %v2434_v52 = vpop.xlane.xlu0 %2433  ;;  %v2431_v61 = vpop.xlane.xlu1 %2430 }
 0xe15   :  { %5481 = vpow2.f32 %v2457_v25  ;;  %v2450_v62 = vsub.f32 %v2418_v10, %v2434_v52  ;;  %v2449_v26 = vsub.f32 %v2417_v8, %v2431_v61  ;;  %v4247_v25 = vld [vmem:[%s7002_s8 + $0x1] ss:$0 sm:$0xff] }
 0xe16   :  { %5483 = vpow2.f32 %v2455_v22 }
 0xe17   :  { %v2461_v6 = vmul.f32 1.442695, %v2450_v62  ;;  %v2459_v14 = vmul.f32 1.442695, %v2449_v26 }
 0xe18   :  { %v2440_v34 = vpop.xlane.xlu0 %2439  ;;  %v2437_v20 = vpop.xlane.xlu1 %2436 }
 0xe19   :  { %5485 = vpow2.f32 %v2461_v6  ;;  %v2452_v37 = vsub.f32 %v2420_v35, %v2440_v34  ;;  %v2451_v21 = vsub.f32 %v2419_v50, %v2437_v20 }
 0xe1a   :  { %5487 = vpow2.f32 %v2459_v14 }
 0xe1b   :  { %v2465_v9 = vmul.f32 1.442695, %v2452_v37  ;;  %v2463_v41 = vmul.f32 1.442695, %v2451_v21 }
 0xe1c   :  { %v2446_v63 = vpop.xlane.xlu0 %2445  ;;  %v2443_v5 = vpop.xlane.xlu1 %2442 }
 0xe1d   :  { %5489 = vpow2.f32 %v2465_v9  ;;  %v2454_v13 = vsub.f32 %v2422_v39, %v2446_v63  ;;  %v2453_v16 = vsub.f32 %v2421_v29, %v2443_v5 }
 0xe1e   :  { %5491 = vpow2.f32 %v2463_v41 }
 0xe1f   :  { %v5482_v36 = vpop.eup %5481  ;;  %v2467_v10 = vmul.f32 1.442695, %v2453_v16  ;;  %v2469_v4 = vmul.f32 1.442695, %v2454_v13 }
 0xe20   :  { %v5484_v8 = vpop.eup %5483  ;;  %v5279_v48 = vpop.permute.xlu1 %5278  ;;  %v2474_v56 = vsel %vm371_vm5, %v5482_v36, 0.0 }
 0xe21   :  { %v5281_v32 = vunpack.i.h.bf16 %v5279_v48  ;;  %v5280_v3 = vunpack.i.l.bf16 %v5279_v48  ;;  %2475 = vadd.xlane.f32.xlu0 %v2474_v56  ;;  %v2471_v35 = vsel %vm371_vm5, %v5484_v8, 0.0  ;;  %5493 = vpow2.f32 %v2467_v10 }
 0xe22   :  { %2472 = vadd.xlane.f32.xlu1 %v2471_v35  ;;  %5495 = vpow2.f32 %v2469_v4 }
 0xe23   :  { %v5486_v50 = vpop.eup %5485  ;;  %v5109_v40 = vpack.c.bf16 %v5281_v32, %v5280_v3 }
 0xe24   :  { %v5488_v19 = vpop.eup %5487  ;;  %v2480_v30 = vsel %vm371_vm5, %v5486_v50, 0.0 }
 0xe25   :  { %2481 = vadd.xlane.f32.xlu0 %v2480_v30  ;;  %v2477_v57 = vsel %vm371_vm5, %v5488_v19, 0.0  ;;  %5125 = vmatprep.subr.bf16.mxu1 %v5109_v40 }
 0xe26   :  { %2478 = vadd.xlane.f32.xlu1 %v2477_v57  ;;  %5127 = vmatpush3.bf16.msra.mxu1 %v5109_v40 }
 0xe27   :  { %v5490_v39 = vpop.eup %5489 }
 0xe28   :  { %v5492_v29 = vpop.eup %5491  ;;  %v2486_v44 = vsel %vm371_vm5, %v5490_v39, 0.0 }
 0xe29   :  { %2487 = vadd.xlane.f32.xlu0 %v2486_v44  ;;  %v2483_v46 = vsel %vm371_vm5, %v5492_v29, 0.0 }
 0xe2a   :  { %2484 = vadd.xlane.f32.xlu1 %v2483_v46 }
 0xe2b   :  { %v5494_v24 = vpop.eup %5493 }
 0xe2c   :  { %v2489_v47 = vsel %vm371_vm5, %v5494_v24, 0.0  ;;  %v6509_v53 = vpop.eup %5495 }
 0xe2d   :  { %2490 = vadd.xlane.f32.xlu0 %v2489_v47  ;;  %v2492_v17 = vsel %vm371_vm5, %v6509_v53, 0.0 }
 0xe31   :  { %2493 = vadd.xlane.f32.xlu0 %v2492_v17 }
 0xe3b   :  { %5288 = vrot.lane.b32.xlu1 %v6447_v28, %s5618_s15 }
 0xe3f   :  { %5293 = vrot.lane.b32.xlu1 %v6464_v18, %s5618_s15 }
 0xe43   :  { %2647 = vrot.lane.b32.xlu1 %v4247_v25, %s5619_s18 }
 0xe47   :  { %5283 = vrot.lane.b32.xlu0 %v6429_v7, %s5618_s15 }
 0xeae   :  { %v2476_v22 = vpop.xlane.xlu0 %2475 }
 0xeaf   :  { %5497 = vrcp.f32 %v2476_v22  ;;  %v2473_v52 = vpop.xlane.xlu1 %2472 }
 0xeb0   :  { %5499 = vrcp.f32 %v2473_v52 }
 0xeb2   :  { %v2482_v61 = vpop.xlane.xlu0 %2481 }
 0xeb3   :  { %5501 = vrcp.f32 %v2482_v61  ;;  %v2479_v62 = vpop.xlane.xlu1 %2478 }
 0xeb4   :  { %5503 = vrcp.f32 %v2479_v62 }
 0xeb6   :  { %v2488_v26 = vpop.xlane.xlu0 %2487 }
 0xeb7   :  { %5505 = vrcp.f32 %v2488_v26  ;;  %v2485_v6 = vpop.xlane.xlu1 %2484 }
 0xeb8   :  { %5507 = vrcp.f32 %v2485_v6  ;;  %v2640_v6 = vld [vmem:[%s7003_s7 + $0x1] sm:$0x1] }
 0xeb9   :  { %v5498_v14 = vpop.eup %5497 }
 0xeba   :  { %v5500_v34 = vpop.eup %5499  ;;  %v2498_v20 = vmul.f32 %v5498_v14, %v5482_v36  ;;  %v2491_v37 = vpop.xlane.xlu0 %2490 }
 0xebb   :  { %v5289_v21 = vpop.permute.xlu1 %5288  ;;  %v2496_v9 = vmul.f32 %v5500_v34, %v5484_v8  ;;  %5509 = vrcp.f32 %v2491_v37 }
 0xebc   :  { %v5291_v48 = vunpack.i.h.bf16 %v5289_v21  ;;  %v5290_v56 = vunpack.i.l.bf16 %v5289_v21 }
 0xebd   :  { %v5502_v41 = vpop.eup %5501  ;;  %4783 = vmatprep.mubr.msk.f32.mxu0 %vm371_vm5, %v2496_v9 }
 0xebe   :  { %v5504_v63 = vpop.eup %5503  ;;  %4784 = vmatmul.mubr.msk.f32.vlgmr.msra.gmra.mrb[36].mxu0 %vm371_vm5, %v2498_v20  ;;  %v2502_v5 = vmul.f32 %v5502_v41, %v5486_v50  ;;  %v2494_v13 = vpop.xlane.xlu0 %2493  ;;  %v5117_v17 = vpack.c.bf16 %v5291_v48, %v5290_v56 }
 0xebf   :  { %5111 = vmatpush3.bf16.xpose.msk.msra.mxu0 %vm6404_vm11, %v5109_v40  ;;  %v5294_v16 = vpop.permute.xlu1 %5293  ;;  %v2500_v10 = vmul.f32 %v5504_v63, %v5488_v19  ;;  %5511 = vrcp.f32 %v2494_v13 }
 0xec0   :  { %5112 = vmatprep.subr.bf16.mxu0 %v5609_v11  ;;  %v5296_v46 = vunpack.i.h.bf16 %v5294_v16  ;;  %v5295_v47 = vunpack.i.l.bf16 %v5294_v16 }
 0xec1   :  { %v5506_v36 = vpop.eup %5505  ;;  %4786 = vmatprep.mubr.msk.f32.mxu0 %vm371_vm5, %v2500_v10 }
 0xec2   :  { %v5508_v8 = vpop.eup %5507  ;;  %4787 = vmatmul.mubr.msk.f32.gmra.mrb[38].mxu0 %vm371_vm5, %v2502_v5  ;;  %v2506_v4 = vmul.f32 %v5506_v36, %v5490_v39  ;;  %v5284_v32 = vpop.permute.xlu0 %5283  ;;  %v5121_v61 = vpack.c.bf16 %v5296_v46, %v5295_v47 }
 0xec3   :  { %v2648_v3 = vpop.permute.xlu1 %2647  ;;  %v2504_v35 = vmul.f32 %v5508_v8, %v5492_v29  ;;  %v5286_v50 = vunpack.i.h.bf16 %v5284_v32  ;;  %v5285_v40 = vunpack.i.l.bf16 %v5284_v32 }
 0xec4   :  { %v2652_v30 = vmul.f32 %v2648_v3, %v6422_v42  ;;  %v2650_v19 = vmul.f32 %v2648_v3, %v6399_v38  ;;  %v2654_v29 = vmul.f32 %v2648_v3, %v6439_v23  ;;  %v2651_v25 = vmul.f32 %v6397_v2, %v2648_v3 }
 0xec5   :  { %4789 = vmatprep.mubr.msk.f32.mxu0 %vm371_vm5, %v2504_v35  ;;  %v5510_v57 = vpop.eup %5509  ;;  %v5113_v44 = vpack.c.bf16 %v5286_v50, %v5285_v40  ;;  %v2656_v52 = vmul.f32 %v2648_v3, %v6456_v49  ;;  %v2653_v62 = vmul.f32 %v6420_v15, %v2648_v3  ;;  %v2657_v26 = vmul.f32 %v6454_v51, %v2648_v3 }
 0xec6   :  { %4790 = vmatmul.mubr.msk.f32.gmra.mrb[40].mxu0 %vm371_vm5, %v2506_v4  ;;  %2670 = vrot.lane.b32.xlu0 %v2652_v30, %s5618_s15  ;;  %v2508_v39 = vmul.f32 %v5510_v57, %v5494_v24 }
 0xec7   :  { %2666 = vrot.lane.b32.xlu1 %v2650_v19, %s5618_s15  ;;  %5115 = vmatpush3.bf16.xpose.msk.msra.mxu0 %vm6404_vm11, %v5113_v44 }
 0xec8   :  { %5129 = vmatprep.subr.bf16.mxu1 %v5113_v44  ;;  %4792 = vmatprep.mubr.msk.f32.mxu0 %vm371_vm5, %v2508_v39 }
 0xec9   :  { %5131 = vmatpush3.bf16.msra.mxu1 %v5113_v44  ;;  %v5512_v22 = vpop.eup %5511  ;;  %5116 = vmatprep.subr.bf16.mxu0 %v5609_v11 }
 0xeca   :  { %2674 = vrot.lane.b32.xlu0 %v2654_v29, %s5618_s15  ;;  %5133 = vmatprep.subr.bf16.mxu1 %v5117_v17  ;;  %v2510_v24 = vmul.f32 %v5512_v22, %v6509_v53  ;;  %v2655_v53 = vmul.f32 %v6436_v1, %v2648_v3 }
 0xecb   :  { %2668 = vrot.lane.b32.xlu1 %v2651_v25, %s5618_s15 }
 0xecc   :  { %4793 = vmatmul.mubr.msk.f32.gmra.mrb[42].mxu0 %vm371_vm5, %v2510_v24 }
 0xecd   :  { %5135 = vmatpush3.bf16.msra.mxu1 %v5117_v17  ;;  %4811 = vmatprep.mubr.msk.f32.mxu0 %vm7023_vm2, %v7011_v12 }
 0xece   :  { %2678 = vrot.lane.b32.xlu0 %v2656_v52, %s5618_s15  ;;  %5137 = vmatprep.subr.bf16.mxu1 %v5121_v61 }
 0xecf   :  { %2672 = vrot.lane.b32.xlu1 %v2653_v62, %s5618_s15  ;;  %5119 = vmatpush3.bf16.xpose.msk.msra.mxu0 %vm6404_vm11, %v5117_v17 }
 0xed0   :  { %5120 = vmatprep.subr.bf16.mxu0 %v5609_v11 }
 0xed1   :  { %5139 = vmatpush3.bf16.msra.mxu1 %v5121_v61 }
 0xed2   :  { %5140 = vmatprep.subr.bf16.mxu1 %v5609_v11 }
 0xed3   :  { %2676 = vrot.lane.b32.xlu1 %v2655_v53, %s5618_s15 }
 0xed7   :  { %2680 = vrot.lane.b32.xlu1 %v2657_v26, %s5618_s15  ;;  %5123 = vmatpush3.bf16.xpose.msk.msra.mxu0 %vm6404_vm11, %v5121_v61 }
 0xede   :  { %4812 = vmatmul.mubr.msk.f32.vlgmr.msra.gmra.mrb[44].mxu0 %vm2257_vm10, %v2640_v6 }
 0xf38   :  { %v2671_v20 = vpop.permute.xlu0 %2670 }
 0xf39   :  { %v2667_v14 = vpop.permute.xlu1 %2666  ;;  %v2696_v21 = vsel %vm2257_vm10, %v2671_v20, 0.0 }
 0xf3a   :  { %v2690_v34 = vsel %vm2257_vm10, %v2667_v14, 0.0 }
 0xf3b   :  { %2691 = vadd.xlane.f32.xlu0 %v2690_v34 }
 0xf3c   :  { %v2675_v41 = vpop.permute.xlu0 %2674 }
 0xf3d   :  { %v2669_v37 = vpop.permute.xlu1 %2668  ;;  %v2702_v16 = vsel %vm2257_vm10, %v2675_v41, 0.0 }
 0xf3e   :  { %v2693_v9 = vsel %vm2257_vm10, %v2669_v37, 0.0 }
 0xf3f   :  { %2697 = vadd.xlane.f32.xlu0 %v2696_v21  ;;  %2694 = vadd.xlane.f32.xlu1 %v2693_v9 }
 0xf40   :  { %v2679_v36 = vpop.permute.xlu0 %2678 }
 0xf41   :  { %v2673_v63 = vpop.permute.xlu1 %2672  ;;  %v2708_v4 = vsel %vm2257_vm10, %v2679_v36, 0.0 }
 0xf42   :  { %v2699_v5 = vsel %vm2257_vm10, %v2673_v63, 0.0 }
 0xf43   :  { %2700 = vadd.xlane.f32.xlu0 %v2699_v5 }
 0xf45   :  { %v2677_v13 = vpop.permute.xlu1 %2676 }
 0xf46   :  { %v2705_v10 = vsel %vm2257_vm10, %v2677_v13, 0.0 }
 0xf47   :  { %2703 = vadd.xlane.f32.xlu0 %v2702_v16  ;;  %2706 = vadd.xlane.f32.xlu1 %v2705_v10 }
 0xf49   :  { %v2681_v8 = vpop.permute.xlu1 %2680 }
 0xf4a   :  { %v2711_v48 = vsel %vm2257_vm10, %v2681_v8, 0.0 }
 0xf4b   :  { %2709 = vadd.xlane.f32.xlu0 %v2708_v4  ;;  %2712 = vadd.xlane.f32.xlu1 %v2711_v48 }
 0xf91   :  { %v6574_v56 = vpop.f32.mrb[36].mxu0 }
 0xf92   :  { %v6576_v32 = vpop.f32.mrb[37].mxu0 }
 0xf95   :  { %v6578_v3 = vpop.f32.mrb[38].mxu0 }
 0xf96   :  { %v6580_v35 = vpop.f32.mrb[39].mxu0 }
 0xf99   :  { %v6582_v50 = vpop.f32.mrb[40].mxu0 }
 0xf9a   :  { %v6584_v40 = vpop.f32.mrb[41].mxu0 }
 0xf9f   :  { %v6586_v30 = vpop.f32.mrb[42].mxu0 }
 0xfa0   :  { %v6588_v19 = vpop.f32.mrb[43].mxu0 }
 0xfb1   :  { %v2815_v57 = vpop.f32.mrb[44].mxu0 }
 0xfb2   :  { %v4813_v44 = vpop.f32.mrb[45].mxu0  ;;  %v2822_v39 = vrot.slane %v2815_v57, %v5799_v54 }
 0xfc8   :  { %v2692_v46 = vpop.xlane.xlu0 %2691 }
 0xfc9   :  { %v2823_v47 = vadd.f32 %v2822_v39, %v2692_v46 }
 0xfcb   :  { %v2839_v29 = vmul.f32 0.2, %v2823_v47  ;;  %vm2831_vm4 = vcmp.gt.f32.partialorder %v2823_v47, 0.0 }
 0xfcc   :  { %v2698_v17 = vpop.xlane.xlu0 %2697  ;;  %v2695_v25 = vpop.xlane.xlu1 %2694 }
 0xfcd   :  { %v2825_v22 = vadd.f32 %v2822_v39, %v2698_v17  ;;  %v2824_v24 = vadd.f32 %v2822_v39, %v2695_v25  ;;  %v2847_v52 = vsel %vm2831_vm4, %v2823_v47, %v2839_v29 }
 0xfce   :  { %v2855_v61 = vsel %vm355_vm6, %v2847_v52, -1e+30 }
 0xfcf   :  { %v2841_v62 = vmul.f32 0.2, %v2825_v22  ;;  %v2840_v53 = vmul.f32 0.2, %v2824_v24  ;;  %v2863_v26 = vsel %vm371_vm5, %v2855_v61, -inf  ;;  %vm2832_vm3 = vcmp.gt.f32.partialorder %v2824_v24, 0.0 }
 0xfd0   :  { %v2701_v6 = vpop.xlane.xlu0 %2700  ;;  %2864 = vmax.xlane.f32.xlu0 %v2863_v26  ;;  %vm2833_vm1 = vcmp.gt.f32.partialorder %v2825_v22, 0.0 }
 0xfd1   :  { %v2826_v14 = vadd.f32 %v2822_v39, %v2701_v6  ;;  %v2848_v34 = vsel %vm2832_vm3, %v2824_v24, %v2840_v53  ;;  %v2849_v20 = vsel %vm2833_vm1, %v2825_v22, %v2841_v62 }
 0xfd2   :  { %v2856_v37 = vsel %vm7024_vm0, %v2848_v34, -1e+30  ;;  %v6598_v21 = vsel %vm357_vm8, %v2849_v20, -1e+30 }
 0xfd3   :  { %v2842_v9 = vmul.f32 0.2, %v2826_v14  ;;  %v2866_v41 = vsel %vm371_vm5, %v2856_v37, -inf  ;;  %v2869_v63 = vsel %vm371_vm5, %v6598_v21, -inf  ;;  %vm2834_vm14 = vcmp.gt.f32.partialorder %v2826_v14, 0.0 }
 0xfd4   :  { %v2704_v5 = vpop.xlane.xlu0 %2703  ;;  %v2707_v13 = vpop.xlane.xlu1 %2706  ;;  %2867 = vmax.xlane.f32.xlu1 %v2866_v41  ;;  %2870 = vmax.xlane.f32.xlu0 %v2869_v63 }
 0xfd5   :  { %v2827_v16 = vadd.f32 %v2822_v39, %v2704_v5  ;;  %v2828_v10 = vadd.f32 %v2822_v39, %v2707_v13  ;;  %v2850_v36 = vsel %vm2834_vm14, %v2826_v14, %v2842_v9 }
 0xfd6   :  { %v2858_v8 = vsel %vm358_vm7, %v2850_v36, -1e+30 }
 0xfd7   :  { %v2843_v4 = vmul.f32 0.2, %v2827_v16  ;;  %v2844_v48 = vmul.f32 0.2, %v2828_v10  ;;  %v2872_v57 = vsel %vm371_vm5, %v2858_v8, -inf  ;;  %vm2836_vm4 = vcmp.gt.f32.partialorder %v2828_v10, 0.0 }
 0xfd8   :  { %v2710_v44 = vpop.xlane.xlu0 %2709  ;;  %v2713_v46 = vpop.xlane.xlu1 %2712  ;;  %2873 = vmax.xlane.f32.xlu1 %v2872_v57  ;;  %vm2835_vm3 = vcmp.gt.f32.partialorder %v2827_v16, 0.0 }
 0xfd9   :  { %v2829_v47 = vadd.f32 %v2822_v39, %v2710_v44  ;;  %v2830_v29 = vadd.f32 %v2822_v39, %v2713_v46  ;;  %v2852_v17 = vsel %vm2836_vm4, %v2828_v10, %v2844_v48  ;;  %v2851_v25 = vsel %vm2835_vm3, %v2827_v16, %v2843_v4 }
 0xfda   :  { %v2860_v22 = vsel %vm360_vm15, %v2852_v17, -1e+30  ;;  %v6610_v24 = vsel %vm359_vm9, %v2851_v25, -1e+30  ;;  %vm7025_vm3 = vcmp.gt.f32.partialorder %v5804_v55, 0.0 }
 0xfdb   :  { %v2845_v52 = vmul.f32 0.2, %v2829_v47  ;;  %v2846_v62 = vmul.f32 0.2, %v2830_v29  ;;  %v2878_v53 = vsel %vm371_vm5, %v2860_v22, -inf  ;;  %v2875_v26 = vsel %vm371_vm5, %v6610_v24, -inf }
 0xfdc   :  { %2879 = vmax.xlane.f32.xlu1 %v2878_v53  ;;  %2876 = vmax.xlane.f32.xlu0 %v2875_v26  ;;  %vm2838_vm1 = vcmp.gt.f32.partialorder %v2830_v29, 0.0  ;;  %vm2837_vm0 = vcmp.gt.f32.partialorder %v2829_v47, 0.0 }
 0xfdd   :  { %v2854_v39 = vsel %vm2838_vm1, %v2830_v29, %v2846_v62  ;;  %v2853_v6 = vsel %vm2837_vm0, %v2829_v47, %v2845_v52 }
 0xfde   :  { %v2862_v14 = vsel %vm362_vm12, %v2854_v39, -1e+30  ;;  %v2861_v34 = vsel %vm361_vm13, %v2853_v6, -1e+30 }
 0xfdf   :  { %v2884_v20 = vsel %vm371_vm5, %v2862_v14, -inf  ;;  %v2881_v9 = vsel %vm371_vm5, %v2861_v34, -inf }
 0xfe0   :  { %2885 = vmax.xlane.f32.xlu1 %v2884_v20  ;;  %2882 = vmax.xlane.f32.xlu0 %v2881_v9 }
 0xff1   :  { %5303 = vrot.lane.b32.xlu1 %v6429_v7, %s5612_s1 }
0x105d   :  { %v2865_v41 = vpop.xlane.xlu0 %2864 }
0x105e   :  { %v2887_v63 = vsub.f32 %v2855_v61, %v2865_v41 }
0x1060   :  { %v2895_v5 = vmul.f32 1.442695, %v2887_v63 }
0x1061   :  { %v2868_v13 = vpop.xlane.xlu1 %2867  ;;  %v2871_v36 = vpop.xlane.xlu0 %2870 }
0x1062   :  { %5513 = vpow2.f32 %v2895_v5  ;;  %v2888_v16 = vsub.f32 %v2856_v37, %v2868_v13  ;;  %v2889_v5 = vsub.f32 %v6598_v21, %v2871_v36  ;;  %v4265_v21 = vld [vmem:[%s7002_s8 + $0x2] ss:$0 sm:$0xff] }
0x1064   :  { %v2897_v10 = vmul.f32 1.442695, %v2888_v16  ;;  %v2899_v13 = vmul.f32 1.442695, %v2889_v5 }
0x1065   :  { %v2874_v4 = vpop.xlane.xlu1 %2873 }
0x1066   :  { %5515 = vpow2.f32 %v2897_v10  ;;  %v2890_v48 = vsub.f32 %v2858_v8, %v2874_v4 }
0x1068   :  { %v2901_v57 = vmul.f32 1.442695, %v2890_v48 }
0x1069   :  { %v2880_v44 = vpop.xlane.xlu1 %2879  ;;  %v2877_v46 = vpop.xlane.xlu0 %2876 }
0x106a   :  { %5517 = vpow2.f32 %v2901_v57  ;;  %v2892_v47 = vsub.f32 %v2860_v22, %v2880_v44  ;;  %v2891_v16 = vsub.f32 %v6610_v24, %v2877_v46 }
0x106c   :  { %v5514_v29 = vpop.eup %5513  ;;  %v2905_v17 = vmul.f32 1.442695, %v2892_v47  ;;  %v2903_v10 = vmul.f32 1.442695, %v2891_v16 }
0x106d   :  { %v2886_v25 = vpop.xlane.xlu1 %2885  ;;  %v2883_v52 = vpop.xlane.xlu0 %2882  ;;  %v2911_v61 = vsel %vm371_vm5, %v5514_v29, 0.0 }
0x106e   :  { %5519 = vpow2.f32 %v2905_v17  ;;  %v2894_v62 = vsub.f32 %v2862_v14, %v2886_v25  ;;  %v2893_v53 = vsub.f32 %v2861_v34, %v2883_v52  ;;  %2912 = vadd.xlane.f32.xlu0 %v2911_v61 }
0x1070   :  { %v5516_v37 = vpop.eup %5515  ;;  %v2907_v26 = vmul.f32 1.442695, %v2893_v53  ;;  %v2909_v39 = vmul.f32 1.442695, %v2894_v62 }
0x1071   :  { %v2914_v8 = vsel %vm371_vm5, %v5516_v37, 0.0  ;;  %v5304_v24 = vpop.permute.xlu1 %5303 }
0x1072   :  { %2915 = vadd.xlane.f32.xlu1 %v2914_v8  ;;  %5521 = vpow2.f32 %v2907_v26  ;;  %v5306_v46 = vunpack.i.h.bf16 %v5304_v24  ;;  %v5305_v25 = vunpack.i.l.bf16 %v5304_v24 }
0x1073   :  { %5523 = vpow2.f32 %v2909_v39 }
0x1074   :  { %v6625_v6 = vpop.eup %5517  ;;  %5525 = vpow2.f32 %v2899_v13  ;;  %v5145_v53 = vpack.c.bf16 %v5306_v46, %v5305_v25 }
0x1075   :  { %v2920_v22 = vsel %vm371_vm5, %v6625_v6, 0.0  ;;  %5527 = vpow2.f32 %v2903_v10 }
0x1076   :  { %2921 = vadd.xlane.f32.xlu1 %v2920_v22 }
0x1078   :  { %v6629_v20 = vpop.eup %5519 }
0x1079   :  { %v2926_v14 = vsel %vm371_vm5, %v6629_v20, 0.0 }
0x107a   :  { %2927 = vadd.xlane.f32.xlu1 %v2926_v14 }
0x107c   :  { %v6633_v34 = vpop.eup %5521 }
0x107d   :  { %v2929_v9 = vsel %vm371_vm5, %v6633_v34, 0.0  ;;  %v6637_v41 = vpop.eup %5523 }
0x107e   :  { %2930 = vadd.xlane.f32.xlu1 %v2929_v9  ;;  %v2932_v63 = vsel %vm371_vm5, %v6637_v41, 0.0  ;;  %v5526_v4 = vpop.eup %5525 }
0x107f   :  { %v2917_v48 = vsel %vm371_vm5, %v5526_v4, 0.0  ;;  %v6648_v57 = vpop.eup %5527 }
0x1080   :  { %v2923_v44 = vsel %vm371_vm5, %v6648_v57, 0.0 }
0x1082   :  { %2933 = vadd.xlane.f32.xlu1 %v2932_v63 }
0x1084   :  { %5298 = vrot.lane.b32.xlu0 %v6413_v27, %s5612_s1 }
0x1093   :  { %5313 = vrot.lane.b32.xlu1 %v6464_v18, %s5612_s1 }
0x10a3   :  { %2918 = vadd.xlane.f32.xlu0 %v2917_v48 }
0x10a7   :  { %2924 = vadd.xlane.f32.xlu0 %v2923_v44 }
0x10bd   :  { %5308 = vrot.lane.b32.xlu0 %v6447_v28, %s5612_s1 }
0x10c1   :  { %3095 = vrot.lane.b32.xlu0 %v4265_v21, %s5613_s12 }
0x10fb   :  { %v2913_v36 = vpop.xlane.xlu0 %2912 }
0x10fc   :  { %5529 = vrcp.f32 %v2913_v36 }
0x10ff   :  { %v2916_v47 = vpop.xlane.xlu1 %2915  ;;  %v5299_v17 = vpop.permute.xlu0 %5298 }
0x1100   :  { %5531 = vrcp.f32 %v2916_v47  ;;  %v5301_v52 = vunpack.i.h.bf16 %v5299_v17  ;;  %v5300_v61 = vunpack.i.l.bf16 %v5299_v17 }
0x1102   :  { %v5141_v62 = vpack.c.bf16 %v5301_v52, %v5300_v61 }
0x1103   :  { %v2922_v14 = vpop.xlane.xlu1 %2921 }
0x1104   :  { %5157 = vmatprep.subr.bf16.mxu0 %v5141_v62  ;;  %5533 = vrcp.f32 %v2922_v14 }
0x1105   :  { %5159 = vmatpush3.bf16.msra.mxu0 %v5141_v62 }
0x1106   :  { %v5530_v26 = vpop.eup %5529  ;;  %5161 = vmatprep.subr.bf16.mxu0 %v5145_v53 }
0x1107   :  { %v2936_v39 = vmul.f32 %v5530_v26, %v5514_v29  ;;  %v2928_v9 = vpop.xlane.xlu1 %2927 }
0x1109   :  { %4830 = vmatprep.mubr.msk.f32.mxu1 %vm371_vm5, %v2936_v39  ;;  %5163 = vmatpush3.bf16.msra.mxu0 %v5145_v53 }
0x110a   :  { %v5532_v8 = vpop.eup %5531 }
0x110b   :  { %v2938_v22 = vmul.f32 %v5532_v8, %v5516_v37  ;;  %v2931_v29 = vpop.xlane.xlu1 %2930 }
0x110d   :  { %4831 = vmatmul.mubr.msk.f32.vlgmr.msra.gmra.mrb[22].mxu1 %vm371_vm5, %v2938_v22 }
0x110e   :  { %5143 = vmatpush3.bf16.xpose.msk.msra.mxu1 %vm6404_vm11, %v5141_v62  ;;  %v5534_v44 = vpop.eup %5533 }
0x110f   :  { %5144 = vmatprep.subr.bf16.mxu1 %v5609_v11  ;;  %v2934_v5 = vpop.xlane.xlu1 %2933  ;;  %v2942_v52 = vmul.f32 %v5534_v44, %v6625_v6 }
0x1113   :  { %v5314_v13 = vpop.permute.xlu1 %5313 }
0x1114   :  { %v5316_v21 = vunpack.i.h.bf16 %v5314_v13  ;;  %v5315_v24 = vunpack.i.l.bf16 %v5314_v13 }
0x1116   :  { %5147 = vmatpush3.bf16.xpose.msk.msra.mxu1 %vm6404_vm11, %v5145_v53  ;;  %v5153_v26 = vpack.c.bf16 %v5316_v21, %v5315_v24 }
0x1117   :  { %5148 = vmatprep.subr.bf16.mxu1 %v5609_v11 }
0x1130   :  { %v2919_v63 = vpop.xlane.xlu0 %2918 }
0x1131   :  { %5535 = vrcp.f32 %v2919_v63 }
0x1132   :  { %5537 = vrcp.f32 %v2928_v9 }
0x1133   :  { %5539 = vrcp.f32 %v2931_v29 }
0x1134   :  { %v2925_v37 = vpop.xlane.xlu0 %2924 }
0x1135   :  { %5541 = vrcp.f32 %v2925_v37 }
0x1136   :  { %5543 = vrcp.f32 %v2934_v5 }
0x1138   :  { %v5309_v16 = vpop.permute.xlu0 %5308 }
0x1139   :  { %v5311_v10 = vunpack.i.h.bf16 %v5309_v16  ;;  %v5310_v48 = vunpack.i.l.bf16 %v5309_v16 }
0x113b   :  { %v5536_v36 = vpop.eup %5535  ;;  %v5149_v46 = vpack.c.bf16 %v5311_v10, %v5310_v48 }
0x113c   :  { %v3096_v47 = vpop.permute.xlu0 %3095  ;;  %v2940_v17 = vmul.f32 %v5536_v36, %v5526_v4  ;;  %v5538_v25 = vpop.eup %5537 }
0x113d   :  { %5151 = vmatpush3.bf16.xpose.msk.msra.mxu1 %vm6404_vm11, %v5149_v46  ;;  %5165 = vmatprep.subr.bf16.mxu0 %v5149_v46  ;;  %v3099_v61 = vmul.f32 %v6397_v2, %v3096_v47  ;;  %v3098_v62 = vmul.f32 %v3096_v47, %v6399_v38  ;;  %v5540_v53 = vpop.eup %5539  ;;  %v2946_v6 = vmul.f32 %v5538_v25, %v6629_v20 }
0x113e   :  { %4833 = vmatprep.mubr.msk.f32.mxu1 %vm371_vm5, %v2940_v17  ;;  %5167 = vmatpush3.bf16.msra.mxu0 %v5149_v46  ;;  %v3101_v8 = vmul.f32 %v6420_v15, %v3096_v47  ;;  %v3100_v14 = vmul.f32 %v3096_v47, %v6422_v42  ;;  %v2948_v9 = vmul.f32 %v5540_v53, %v6633_v34 }
0x113f   :  { %v5542_v39 = vpop.eup %5541  ;;  %4834 = vmatmul.mubr.msk.f32.gmra.mrb[24].mxu1 %vm371_vm5, %v2942_v52  ;;  %3116 = vrot.lane.b32.xlu0 %v3099_v61, %s5612_s1  ;;  %v3102_v29 = vmul.f32 %v3096_v47, %v6439_v23  ;;  %v3105_v34 = vmul.f32 %v6454_v51, %v3096_v47  ;;  %v3104_v63 = vmul.f32 %v3096_v47, %v6456_v49 }
0x1140   :  { %3114 = vrot.lane.b32.xlu1 %v3098_v62, %s5612_s1  ;;  %5169 = vmatprep.subr.bf16.mxu0 %v5153_v26  ;;  %v2944_v4 = vmul.f32 %v5542_v39, %v6648_v57  ;;  %v5544_v22 = vpop.eup %5543  ;;  %v3103_v57 = vmul.f32 %v6436_v1, %v3096_v47 }
0x1141   :  { %5152 = vmatprep.subr.bf16.mxu1 %v5609_v11  ;;  %v2950_v20 = vmul.f32 %v5544_v22, %v6637_v41  ;;  %v3088_v41 = vld [vmem:[%s7003_s7 + $0x2] sm:$0x1] }
0x1142   :  { %4836 = vmatprep.mubr.msk.f32.mxu1 %vm371_vm5, %v2944_v4  ;;  %5171 = vmatpush3.bf16.msra.mxu0 %v5153_v26 }
0x1143   :  { %4837 = vmatmul.mubr.msk.f32.gmra.mrb[26].mxu1 %vm371_vm5, %v2946_v6  ;;  %3120 = vrot.lane.b32.xlu0 %v3101_v8, %s5612_s1 }
0x1144   :  { %3118 = vrot.lane.b32.xlu1 %v3100_v14, %s5612_s1  ;;  %4839 = vmatprep.mubr.msk.f32.mxu1 %vm371_vm5, %v2948_v9 }
0x1145   :  { %5155 = vmatpush3.bf16.xpose.msk.msra.mxu1 %vm6404_vm11, %v5153_v26  ;;  %5172 = vmatprep.subr.bf16.mxu0 %v5609_v11 }
0x1147   :  { %4840 = vmatmul.mubr.msk.f32.gmra.mrb[28].mxu1 %vm371_vm5, %v2950_v20  ;;  %3124 = vrot.lane.b32.xlu0 %v3103_v57, %s5612_s1 }
0x1148   :  { %3122 = vrot.lane.b32.xlu1 %v3102_v29, %s5612_s1  ;;  %4858 = vmatprep.mubr.msk.f32.mxu1 %vm7023_vm2, %v7011_v12 }
0x114b   :  { %3128 = vrot.lane.b32.xlu0 %v3105_v34, %s5612_s1 }
0x114c   :  { %3126 = vrot.lane.b32.xlu1 %v3104_v63, %s5612_s1  ;;  %4859 = vmatmul.mubr.msk.f32.vlgmr.msra.gmra.mrb[30].mxu1 %vm2257_vm10, %v3088_v41  ;;  %s5620_s1 = smov 116  }
0x11b1   :  { %v3117_v5 = vpop.permute.xlu0 %3116 }
0x11b2   :  { %v3141_v37 = vsel %vm2257_vm10, %v3117_v5, 0.0  ;;  %v3115_v13 = vpop.permute.xlu1 %3114 }
0x11b3   :  { %v3138_v16 = vsel %vm2257_vm10, %v3115_v13, 0.0  ;;  %3142 = vadd.xlane.f32.xlu0 %v3141_v37 }
0x11b4   :  { %3139 = vadd.xlane.f32.xlu1 %v3138_v16 }
0x11b5   :  { %v3121_v10 = vpop.permute.xlu0 %3120 }
0x11b6   :  { %v3119_v48 = vpop.permute.xlu1 %3118  ;;  %v3147_v36 = vsel %vm2257_vm10, %v3121_v10, 0.0 }
0x11b7   :  { %v3144_v44 = vsel %vm2257_vm10, %v3119_v48, 0.0 }
0x11b8   :  { %3145 = vadd.xlane.f32.xlu0 %v3144_v44 }
0x11b9   :  { %v3125_v21 = vpop.permute.xlu0 %3124 }
0x11ba   :  { %v3123_v24 = vpop.permute.xlu1 %3122  ;;  %v3153_v17 = vsel %vm2257_vm10, %v3125_v21, 0.0 }
0x11bb   :  { %v3150_v46 = vsel %vm2257_vm10, %v3123_v24, 0.0 }
0x11bc   :  { %3148 = vadd.xlane.f32.xlu0 %v3147_v36  ;;  %3151 = vadd.xlane.f32.xlu1 %v3150_v46 }
0x11bd   :  { %v3129_v52 = vpop.permute.xlu0 %3128 }
0x11be   :  { %v3127_v47 = vpop.permute.xlu1 %3126  ;;  %v3159_v61 = vsel %vm2257_vm10, %v3129_v52, 0.0 }
0x11bf   :  { %v3156_v25 = vsel %vm2257_vm10, %v3127_v47, 0.0 }
0x11c0   :  { %3154 = vadd.xlane.f32.xlu0 %v3153_v17  ;;  %3157 = vadd.xlane.f32.xlu1 %v3156_v25 }
0x11c4   :  { %3160 = vadd.xlane.f32.xlu0 %v3159_v61 }
0x11e0   :  { %v6713_v62 = vpop.f32.mrb[22].mxu1 }
0x11e1   :  { %v6715_v53 = vpop.f32.mrb[23].mxu1 }
0x1212   :  { %v6717_v26 = vpop.f32.mrb[24].mxu1 }
0x1213   :  { %v6719_v39 = vpop.f32.mrb[25].mxu1 }
0x1216   :  { %v6721_v4 = vpop.f32.mrb[26].mxu1 }
0x1217   :  { %v6723_v6 = vpop.f32.mrb[27].mxu1 }
0x121a   :  { %v6725_v8 = vpop.f32.mrb[28].mxu1 }
0x121b   :  { %v6727_v22 = vpop.f32.mrb[29].mxu1 }
0x121f   :  { %v3263_v14 = vpop.f32.mrb[30].mxu1 }
0x1220   :  { %v4860_v9 = vpop.f32.mrb[31].mxu1  ;;  %v3270_v20 = vrot.slane %v3263_v14, %v5799_v54 }
0x1240   :  { %v3143_v57 = vpop.xlane.xlu0 %3142 }
0x1241   :  { %v3272_v29 = vadd.f32 %v3270_v20, %v3143_v57  ;;  %v3140_v34 = vpop.xlane.xlu1 %3139 }
0x1242   :  { %v3271_v41 = vadd.f32 %v3270_v20, %v3140_v34 }
0x1243   :  { %vm3280_vm14 = vcmp.gt.f32.partialorder %v3272_v29, 0.0  ;;  %v3288_v63 = vmul.f32 0.2, %v3272_v29 }
0x1244   :  { %vm3279_vm4 = vcmp.gt.f32.partialorder %v3271_v41, 0.0  ;;  %v3287_v5 = vmul.f32 0.2, %v3271_v41 }
0x1245   :  { %v3146_v37 = vpop.xlane.xlu0 %3145  ;;  %v3296_v13 = vsel %vm3280_vm14, %v3272_v29, %v3288_v63 }
0x1246   :  { %v3273_v16 = vadd.f32 %v3270_v20, %v3146_v37  ;;  %v3304_v10 = vsel %vm7025_vm3, %v3296_v13, -1e+30  ;;  %v3295_v48 = vsel %vm3279_vm4, %v3271_v41, %v3287_v5 }
0x1247   :  { %v3314_v44 = vsel %vm371_vm5, %v3304_v10, -inf  ;;  %v3303_v21 = vsel %vm355_vm6, %v3295_v48, -1e+30 }
0x1248   :  { %vm3281_vm1 = vcmp.gt.f32.partialorder %v3273_v16, 0.0  ;;  %v3289_v24 = vmul.f32 0.2, %v3273_v16  ;;  %3315 = vmax.xlane.f32.xlu0 %v3314_v44  ;;  %v3311_v36 = vsel %vm371_vm5, %v3303_v21, -inf }
0x1249   :  { %v3149_v46 = vpop.xlane.xlu0 %3148  ;;  %v3152_v47 = vpop.xlane.xlu1 %3151  ;;  %3312 = vmax.xlane.f32.xlu1 %v3311_v36 }
0x124a   :  { %v3274_v17 = vadd.f32 %v3270_v20, %v3149_v46  ;;  %v3275_v25 = vadd.f32 %v3270_v20, %v3152_v47  ;;  %v3297_v52 = vsel %vm3281_vm1, %v3273_v16, %v3289_v24 }
0x124b   :  { %v3305_v61 = vsel %vm357_vm8, %v3297_v52, -1e+30 }
0x124c   :  { %vm3282_vm0 = vcmp.gt.f32.partialorder %v3274_v17, 0.0  ;;  %v3290_v14 = vmul.f32 0.2, %v3274_v17  ;;  %vm3283_vm14 = vcmp.gt.f32.partialorder %v3275_v25, 0.0  ;;  %v3291_v9 = vmul.f32 0.2, %v3275_v25 }
0x124d   :  { %v3155_v57 = vpop.xlane.xlu0 %3154  ;;  %v3158_v29 = vpop.xlane.xlu1 %3157  ;;  %v3317_v34 = vsel %vm371_vm5, %v3305_v61, -inf }
0x124e   :  { %v3276_v41 = vadd.f32 %v3270_v20, %v3155_v57  ;;  %v3277_v63 = vadd.f32 %v3270_v20, %v3158_v29  ;;  %3318 = vmax.xlane.f32.xlu1 %v3317_v34  ;;  %v3298_v5 = vsel %vm3282_vm0, %v3274_v17, %v3290_v14  ;;  %v3299_v37 = vsel %vm3283_vm14, %v3275_v25, %v3291_v9 }
0x124f   :  { %v3306_v13 = vsel %vm358_vm7, %v3298_v5, -1e+30  ;;  %v3307_v16 = vsel %vm359_vm9, %v3299_v37, -1e+30  ;;  %vm7027_vm14 = vcmp.gt.f32.partialorder %v5804_v55, 0.0 }
0x1250   :  { %vm3284_vm4 = vcmp.gt.f32.partialorder %v3276_v41, 0.0  ;;  %v3292_v48 = vmul.f32 0.2, %v3276_v41  ;;  %vm3285_vm3 = vcmp.gt.f32.partialorder %v3277_v63, 0.0  ;;  %v3293_v44 = vmul.f32 0.2, %v3277_v63 }
0x1251   :  { %v3161_v24 = vpop.xlane.xlu0 %3160  ;;  %v3320_v36 = vsel %vm371_vm5, %v3306_v13, -inf  ;;  %v3323_v46 = vsel %vm371_vm5, %v3307_v16, -inf }
0x1252   :  { %v3278_v47 = vadd.f32 %v3270_v20, %v3161_v24  ;;  %3321 = vmax.xlane.f32.xlu0 %v3320_v36  ;;  %3324 = vmax.xlane.f32.xlu1 %v3323_v46  ;;  %v3300_v17 = vsel %vm3284_vm4, %v3276_v41, %v3292_v48  ;;  %v3301_v25 = vsel %vm3285_vm3, %v3277_v63, %v3293_v44 }
0x1253   :  { %v3308_v52 = vsel %vm360_vm15, %v3300_v17, -1e+30  ;;  %v3309_v14 = vsel %vm361_vm13, %v3301_v25, -1e+30 }
0x1254   :  { %vm3286_vm1 = vcmp.gt.f32.partialorder %v3278_v47, 0.0  ;;  %v3294_v9 = vmul.f32 0.2, %v3278_v47  ;;  %v3326_v57 = vsel %vm371_vm5, %v3308_v52, -inf  ;;  %v3329_v29 = vsel %vm371_vm5, %v3309_v14, -inf }
0x1256   :  { %3327 = vmax.xlane.f32.xlu0 %v3326_v57  ;;  %3330 = vmax.xlane.f32.xlu1 %v3329_v29  ;;  %v3302_v34 = vsel %vm3286_vm1, %v3278_v47, %v3294_v9 }
0x1257   :  { %v3310_v20 = vsel %vm362_vm12, %v3302_v34, -1e+30 }
0x1258   :  { %v3332_v41 = vsel %vm371_vm5, %v3310_v20, -inf }
0x125a   :  { %3333 = vmax.xlane.f32.xlu0 %v3332_v41 }
0x1267   :  { %5318 = vrot.lane.b32.xlu1 %v6413_v27, %s5620_s1 }
0x12d5   :  { %v3316_v63 = vpop.xlane.xlu0 %3315 }
0x12d6   :  { %v3336_v5 = vsub.f32 %v3304_v10, %v3316_v63  ;;  %v3313_v37 = vpop.xlane.xlu1 %3312 }
0x12d7   :  { %v3335_v48 = vsub.f32 %v3303_v21, %v3313_v37 }
0x12d8   :  { %v3345_v44 = vmul.f32 1.442695, %v3336_v5 }
0x12d9   :  { %v3343_v24 = vmul.f32 1.442695, %v3335_v48 }
0x12da   :  { %5545 = vpow2.f32 %v3345_v44 }
0x12db   :  { %5547 = vpow2.f32 %v3343_v24  ;;  %v3319_v36 = vpop.xlane.xlu1 %3318 }
0x12dc   :  { %v3337_v46 = vsub.f32 %v3305_v61, %v3319_v36 }
0x12de   :  { %v3347_v47 = vmul.f32 1.442695, %v3337_v46 }
0x12df   :  { %v3322_v17 = vpop.xlane.xlu0 %3321  ;;  %v3325_v25 = vpop.xlane.xlu1 %3324 }
0x12e0   :  { %5549 = vpow2.f32 %v3347_v47  ;;  %v3338_v9 = vsub.f32 %v3306_v13, %v3322_v17  ;;  %v3339_v57 = vsub.f32 %v3307_v16, %v3325_v25 }
0x12e2   :  { %v3349_v29 = vmul.f32 1.442695, %v3338_v9  ;;  %v3351_v34 = vmul.f32 1.442695, %v3339_v57 }
0x12e3   :  { %v3328_v41 = vpop.xlane.xlu0 %3327  ;;  %v3331_v27 = vpop.xlane.xlu1 %3330 }
0x12e4   :  { %v5546_v12 = vpop.eup %5545  ;;  %5551 = vpow2.f32 %v3349_v29  ;;  %v3340_v10 = vsub.f32 %v3308_v52, %v3328_v41  ;;  %v3341_v21 = vsub.f32 %v3309_v14, %v3331_v27 }
0x12e5   :  { %v5548_v63 = vpop.eup %5547  ;;  %5553 = vpow2.f32 %v3351_v34  ;;  %v3362_v5 = vsel %vm371_vm5, %v5546_v12, 0.0 }
0x12e6   :  { %v3353_v37 = vmul.f32 1.442695, %v3340_v10  ;;  %v3355_v61 = vmul.f32 1.442695, %v3341_v21  ;;  %3363 = vadd.xlane.f32.xlu0 %v3362_v5  ;;  %v3359_v48 = vsel %vm371_vm5, %v5548_v63, 0.0 }
0x12e7   :  { %v3334_v44 = vpop.xlane.xlu0 %3333  ;;  %v5319_v13 = vpop.permute.xlu1 %5318  ;;  %3360 = vadd.xlane.f32.xlu1 %v3359_v48  ;;  %v4283_v21 = vld [vmem:[%s7002_s8 + $0x3] ss:$0 sm:$0xff] }
0x12e8   :  { %5555 = vpow2.f32 %v3353_v37  ;;  %v3342_v16 = vsub.f32 %v3310_v20, %v3334_v44  ;;  %v5321_v24 = vunpack.i.h.bf16 %v5319_v13  ;;  %v5320_v36 = vunpack.i.l.bf16 %v5319_v13 }
0x12e9   :  { %5557 = vpow2.f32 %v3355_v61 }
0x12ea   :  { %v5550_v46 = vpop.eup %5549  ;;  %v3357_v52 = vmul.f32 1.442695, %v3342_v16  ;;  %v5173_v14 = vpack.c.bf16 %v5321_v24, %v5320_v36 }
0x12eb   :  { %v3365_v47 = vsel %vm371_vm5, %v5550_v46, 0.0 }
0x12ec   :  { %3366 = vadd.xlane.f32.xlu1 %v3365_v47  ;;  %5189 = vmatprep.subr.bf16.mxu1 %v5173_v14  ;;  %5559 = vpow2.f32 %v3357_v52 }
0x12ed   :  { %5191 = vmatpush3.bf16.msra.mxu1 %v5173_v14 }
0x12ee   :  { %v5552_v17 = vpop.eup %5551 }
0x12ef   :  { %v5554_v25 = vpop.eup %5553  ;;  %v3368_v9 = vsel %vm371_vm5, %v5552_v17, 0.0 }
0x12f0   :  { %3369 = vadd.xlane.f32.xlu0 %v3368_v9  ;;  %v3371_v57 = vsel %vm371_vm5, %v5554_v25, 0.0 }
0x12f1   :  { %3372 = vadd.xlane.f32.xlu1 %v3371_v57 }
0x12f2   :  { %v5556_v20 = vpop.eup %5555 }
0x12f3   :  { %v3374_v29 = vsel %vm371_vm5, %v5556_v20, 0.0  ;;  %v6762_v34 = vpop.eup %5557 }
0x12f4   :  { %3375 = vadd.xlane.f32.xlu0 %v3374_v29  ;;  %v3377_v41 = vsel %vm371_vm5, %v6762_v34, 0.0 }
0x12f6   :  { %v6766_v27 = vpop.eup %5559 }
0x12f7   :  { %v3380_v10 = vsel %vm371_vm5, %v6766_v27, 0.0 }
0x12f8   :  { %3378 = vadd.xlane.f32.xlu0 %v3377_v41 }
0x12fc   :  { %3381 = vadd.xlane.f32.xlu0 %v3380_v10 }
0x1302   :  { %5328 = vrot.lane.b32.xlu1 %v6447_v28, %s5620_s1 }
0x1306   :  { %5333 = vrot.lane.b32.xlu1 %v6464_v18, %s5620_s1 }
0x130a   :  { %3543 = vrot.lane.b32.xlu1 %v4283_v21, %s5621_s24 }
0x1312   :  { %5323 = vrot.lane.b32.xlu0 %v6429_v7, %s5620_s1 }
0x1373   :  { %v3364_v5 = vpop.xlane.xlu0 %3363 }
0x1374   :  { %5561 = vrcp.f32 %v3364_v5  ;;  %v3361_v37 = vpop.xlane.xlu1 %3360 }
0x1375   :  { %5563 = vrcp.f32 %v3361_v37 }
0x1379   :  { %v3367_v61 = vpop.xlane.xlu1 %3366 }
0x137a   :  { %5565 = vrcp.f32 %v3367_v61 }
0x137d   :  { %v3370_v28 = vpop.xlane.xlu0 %3369 }
0x137e   :  { %v5562_v48 = vpop.eup %5561  ;;  %5567 = vrcp.f32 %v3370_v28  ;;  %v3373_v18 = vpop.xlane.xlu1 %3372 }
0x137f   :  { %v5564_v44 = vpop.eup %5563  ;;  %v3386_v13 = vmul.f32 %v5562_v48, %v5546_v12  ;;  %5569 = vrcp.f32 %v3373_v18 }
0x1380   :  { %v3384_v16 = vmul.f32 %v5564_v44, %v5548_v63 }
0x1381   :  { %v3376_v24 = vpop.xlane.xlu0 %3375 }
0x1382   :  { %5571 = vrcp.f32 %v3376_v24  ;;  %v5329_v36 = vpop.permute.xlu1 %5328  ;;  %4877 = vmatprep.mubr.msk.f32.mxu0 %vm371_vm5, %v3384_v16 }
0x1383   :  { %4878 = vmatmul.mubr.msk.f32.vlgmr.msra.gmra.mrb[46].mxu0 %vm371_vm5, %v3386_v13  ;;  %v5331_v61 = vunpack.i.h.bf16 %v5329_v36 }
0x1384   :  { %v5566_v7 = vpop.eup %5565  ;;  %5175 = vmatpush3.bf16.xpose.msk.msra.mxu0 %vm6404_vm11, %v5173_v14 }
0x1385   :  { %v3379_v52 = vpop.xlane.xlu0 %3378  ;;  %v3388_v47 = vmul.f32 %v5566_v7, %v5550_v46  ;;  %5176 = vmatprep.subr.bf16.mxu0 %v5609_v11 }
0x1386   :  { %5573 = vrcp.f32 %v3379_v52  ;;  %v5334_v9 = vpop.permute.xlu1 %5333 }
0x1387   :  { %4880 = vmatprep.mubr.msk.f32.mxu0 %vm371_vm5, %v3388_v47  ;;  %v5335_v16 = vunpack.i.l.bf16 %v5334_v9 }
0x1388   :  { %v5568_v12 = vpop.eup %5567 }
0x1389   :  { %v5570_v63 = vpop.eup %5569  ;;  %v3382_v57 = vpop.xlane.xlu0 %3381  ;;  %v3390_v29 = vmul.f32 %v5568_v12, %v5552_v17  ;;  %v5330_v17 = vunpack.i.l.bf16 %v5329_v36 }
0x138a   :  { %5575 = vrcp.f32 %v3382_v57  ;;  %v3544_v41 = vpop.permute.xlu1 %3543  ;;  %v3392_v10 = vmul.f32 %v5570_v63, %v5554_v25 }
0x138b   :  { %4881 = vmatmul.mubr.msk.f32.gmra.mrb[48].mxu0 %vm371_vm5, %v3390_v29  ;;  %v3548_v21 = vmul.f32 %v3544_v41, %v6422_v42  ;;  %v3546_v14 = vmul.f32 %v3544_v41, %v6399_v38  ;;  %v3550_v25 = vmul.f32 %v3544_v41, %v6439_v23  ;;  %v3547_v42 = vmul.f32 %v6397_v2, %v3544_v41 }
0x138c   :  { %v5572_v46 = vpop.eup %5571  ;;  %4883 = vmatprep.mubr.msk.f32.mxu0 %vm371_vm5, %v3392_v10  ;;  %v5181_v13 = vpack.c.bf16 %v5331_v61, %v5330_v17  ;;  %v3552_v2 = vmul.f32 %v3544_v41, %v6456_v49  ;;  %v3549_v23 = vmul.f32 %v6420_v15, %v3544_v41  ;;  %v3551_v7 = vmul.f32 %v6436_v1, %v3544_v41  ;;  %v3536_v1 = vld [vmem:[%s7003_s7 + $0x3] sm:$0x1] }
0x138d   :  { %3566 = vrot.lane.b32.xlu0 %v3548_v21, %s5620_s1  ;;  %3562 = vrot.lane.b32.xlu1 %v3546_v14, %s5620_s1  ;;  %v5324_v5 = vpop.permute.xlu0 %5323  ;;  %v3394_v37 = vmul.f32 %v5572_v46, %v5556_v20  ;;  %v5336_v20 = vunpack.i.h.bf16 %v5334_v9  ;;  %v7026_v49 = vmov 0.0   ;;  %v3553_v15 = vmul.f32 %v6454_v51, %v3544_v41 }
0x138e   :  { %v5326_v28 = vunpack.i.h.bf16 %v5324_v5  ;;  %v5325_v48 = vunpack.i.l.bf16 %v5324_v5 }
0x138f   :  { %4884 = vmatmul.mubr.msk.f32.gmra.mrb[50].mxu0 %vm371_vm5, %v3394_v37  ;;  %v5185_v36 = vpack.c.bf16 %v5336_v20, %v5335_v16 }
0x1390   :  { %v5574_v38 = vpop.eup %5573  ;;  %v5177_v18 = vpack.c.bf16 %v5326_v28, %v5325_v48 }
0x1391   :  { %3570 = vrot.lane.b32.xlu0 %v3550_v25, %s5620_s1  ;;  %3564 = vrot.lane.b32.xlu1 %v3547_v42, %s5620_s1  ;;  %v3396_v44 = vmul.f32 %v5574_v38, %v6762_v34 }
0x1392   :  { %5179 = vmatpush3.bf16.xpose.msk.msra.mxu0 %vm6404_vm11, %v5177_v18  ;;  %5193 = vmatprep.subr.bf16.mxu1 %v5177_v18 }
0x1393   :  { %4886 = vmatprep.mubr.msk.f32.mxu0 %vm371_vm5, %v3396_v44  ;;  %5195 = vmatpush3.bf16.msra.mxu1 %v5177_v18 }
0x1394   :  { %v5576_v24 = vpop.eup %5575  ;;  %5197 = vmatprep.subr.bf16.mxu1 %v5181_v13  ;;  %5180 = vmatprep.subr.bf16.mxu0 %v5609_v11 }
0x1395   :  { %3574 = vrot.lane.b32.xlu0 %v3552_v2, %s5620_s1  ;;  %3568 = vrot.lane.b32.xlu1 %v3549_v23, %s5620_s1  ;;  %v3398_v34 = vmul.f32 %v5576_v24, %v6766_v27 }
0x1397   :  { %4887 = vmatmul.mubr.msk.f32.gmra.mrb[52].mxu0 %vm371_vm5, %v3398_v34  ;;  %5199 = vmatpush3.bf16.msra.mxu1 %v5181_v13 }
0x1398   :  { %5201 = vmatprep.subr.bf16.mxu1 %v5185_v36  ;;  %4905 = vmatprep.mubr.msk.f32.mxu0 %vm7023_vm2, %v7026_v49 }
0x1399   :  { %3572 = vrot.lane.b32.xlu1 %v3551_v7, %s5620_s1 }
0x139a   :  { %5183 = vmatpush3.bf16.xpose.msk.msra.mxu0 %vm6404_vm11, %v5181_v13 }
0x139b   :  { %5203 = vmatpush3.bf16.msra.mxu1 %v5185_v36  ;;  %5184 = vmatprep.subr.bf16.mxu0 %v5609_v11 }
0x139d   :  { %3576 = vrot.lane.b32.xlu1 %v3553_v15, %s5620_s1 }
0x13a2   :  { %5187 = vmatpush3.bf16.xpose.msk.msra.mxu0 %vm6404_vm11, %v5185_v36 }
0x13a9   :  { %4906 = vmatmul.mubr.msk.f32.vlgmr.msra.gmra.mrb[54].mxu0 %vm2257_vm10, %v3536_v1 }
0x13ff   :  { %v3563_v27 = vpop.permute.xlu1 %3562  ;;  %v3567_v47 = vpop.permute.xlu0 %3566 }
0x1400   :  { %v3586_v52 = vsel %vm2257_vm10, %v3563_v27, 0.0  ;;  %v3592_v51 = vsel %vm2257_vm10, %v3567_v47, 0.0 }
0x1401   :  { %3587 = vadd.xlane.f32.xlu0 %v3586_v52 }
0x1403   :  { %v3565_v9 = vpop.permute.xlu1 %3564  ;;  %v3571_v0 = vpop.permute.xlu0 %3570 }
0x1404   :  { %v3589_v11 = vsel %vm2257_vm10, %v3565_v9, 0.0  ;;  %v3598_v29 = vsel %vm2257_vm10, %v3571_v0, 0.0 }
0x1405   :  { %3593 = vadd.xlane.f32.xlu0 %v3592_v51  ;;  %3590 = vadd.xlane.f32.xlu1 %v3589_v11 }
0x1407   :  { %v3569_v12 = vpop.permute.xlu1 %3568  ;;  %v3575_v10 = vpop.permute.xlu0 %3574 }
0x1408   :  { %v3595_v63 = vsel %vm2257_vm10, %v3569_v12, 0.0  ;;  %v3604_v14 = vsel %vm2257_vm10, %v3575_v10, 0.0 }
0x1409   :  { %3596 = vadd.xlane.f32.xlu0 %v3595_v63 }
0x140b   :  { %v3573_v57 = vpop.permute.xlu1 %3572 }
0x140c   :  { %v3601_v41 = vsel %vm2257_vm10, %v3573_v57, 0.0 }
0x140d   :  { %3599 = vadd.xlane.f32.xlu0 %v3598_v29  ;;  %3602 = vadd.xlane.f32.xlu1 %v3601_v41 }
0x140f   :  { %v3577_v21 = vpop.permute.xlu1 %3576 }
0x1410   :  { %v3607_v46 = vsel %vm2257_vm10, %v3577_v21, 0.0 }
0x1411   :  { %3605 = vadd.xlane.f32.xlu0 %v3604_v14  ;;  %3608 = vadd.xlane.f32.xlu1 %v3607_v46 }
0x1456   :  { %v6831_v5 = vpop.f32.mrb[46].mxu0 }
0x1457   :  { %v6833_v37 = vpop.f32.mrb[47].mxu0 }
0x145e   :  { %v6835_v61 = vpop.f32.mrb[48].mxu0 }
0x145f   :  { %v6837_v17 = vpop.f32.mrb[49].mxu0 }
0x1462   :  { %v6839_v28 = vpop.f32.mrb[50].mxu0 }
0x1463   :  { %v6841_v48 = vpop.f32.mrb[51].mxu0 }
0x146a   :  { %v6843_v25 = vpop.f32.mrb[52].mxu0 }
0x146b   :  { %v6845_v42 = vpop.f32.mrb[53].mxu0 }
0x147c   :  { %v3711_v38 = vpop.f32.mrb[54].mxu0 }
0x147d   :  { %v4907_v18 = vpop.f32.mrb[55].mxu0  ;;  %v3718_v44 = vrot.slane %v3711_v38, %v5799_v54 }
0x148e   :  { %v3588_v13 = vpop.xlane.xlu0 %3587 }
0x148f   :  { %v3719_v20 = vadd.f32 %v3718_v44, %v3588_v13 }
0x1491   :  { %vm3727_vm11 = vcmp.gt.f32.partialorder %v3719_v20, 0.0  ;;  %v3735_v16 = vmul.f32 0.2, %v3719_v20 }
0x1492   :  { %v3594_v2 = vpop.xlane.xlu0 %3593  ;;  %v3591_v23 = vpop.xlane.xlu1 %3590 }
0x1493   :  { %v3721_v24 = vadd.f32 %v3718_v44, %v3594_v2  ;;  %v3720_v34 = vadd.f32 %v3718_v44, %v3591_v23  ;;  %v3743_v36 = vsel %vm3727_vm11, %v3719_v20, %v3735_v16 }
0x1494   :  { %v3751_v7 = vsel %vm355_vm6, %v3743_v36, -1e+30 }
0x1495   :  { %vm3729_vm2 = vcmp.gt.f32.partialorder %v3721_v24, 0.0  ;;  %v3737_v49 = vmul.f32 0.2, %v3721_v24  ;;  %vm3728_vm0 = vcmp.gt.f32.partialorder %v3720_v34, 0.0  ;;  %v3736_v15 = vmul.f32 0.2, %v3720_v34 }
0x1496   :  { %v3597_v1 = vpop.xlane.xlu0 %3596  ;;  %v3759_v27 = vsel %vm371_vm5, %v3751_v7, -inf }
0x1497   :  { %v3722_v54 = vadd.f32 %v3718_v44, %v3597_v1  ;;  %3760 = vmax.xlane.f32.xlu0 %v3759_v27  ;;  %v3744_v52 = vsel %vm3728_vm0, %v3720_v34, %v3736_v15  ;;  %v3745_v47 = vsel %vm3729_vm2, %v3721_v24, %v3737_v49 }
0x1498   :  { %v3752_v9 = vsel %vm7027_vm14, %v3744_v52, -1e+30  ;;  %v3753_v51 = vsel %vm357_vm8, %v3745_v47, -1e+30 }
0x1499   :  { %vm3730_vm4 = vcmp.gt.f32.partialorder %v3722_v54, 0.0  ;;  %v3738_v58 = vmul.f32 0.2, %v3722_v54  ;;  %v3762_v11 = vsel %vm371_vm5, %v3752_v9, -inf  ;;  %v3765_v0 = vsel %vm371_vm5, %v3753_v51, -inf }
0x149a   :  { %v3600_v12 = vpop.xlane.xlu0 %3599  ;;  %v3603_v63 = vpop.xlane.xlu1 %3602  ;;  %3763 = vmax.xlane.f32.xlu1 %v3762_v11 }
0x149b   :  { %v3723_v57 = vadd.f32 %v3718_v44, %v3600_v12  ;;  %v3724_v29 = vadd.f32 %v3718_v44, %v3603_v63  ;;  %3766 = vmax.xlane.f32.xlu0 %v3765_v0  ;;  %v3746_v41 = vsel %vm3730_vm4, %v3722_v54, %v3738_v58 }
0x149c   :  { %v3754_v55 = vsel %vm358_vm7, %v3746_v41, -1e+30 }
0x149d   :  { %vm3731_vm6 = vcmp.gt.f32.partialorder %v3723_v57, 0.0  ;;  %v3739_v10 = vmul.f32 0.2, %v3723_v57  ;;  %vm3732_vm3 = vcmp.gt.f32.partialorder %v3724_v29, 0.0  ;;  %v3740_v60 = vmul.f32 0.2, %v3724_v29 }
0x149e   :  { %v3606_v21 = vpop.xlane.xlu0 %3605  ;;  %v3609_v14 = vpop.xlane.xlu1 %3608  ;;  %v3768_v46 = vsel %vm371_vm5, %v3754_v55, -inf }
0x149f   :  { %v3725_v38 = vadd.f32 %v3718_v44, %v3606_v21  ;;  %v3726_v18 = vadd.f32 %v3718_v44, %v3609_v14  ;;  %3769 = vmax.xlane.f32.xlu1 %v3768_v46  ;;  %v3748_v13 = vsel %vm3732_vm3, %v3724_v29, %v3740_v60  ;;  %v3747_v20 = vsel %vm3731_vm6, %v3723_v57, %v3739_v10 }
0x14a0   :  { %v3756_v16 = vsel %vm360_vm15, %v3748_v13, -1e+30  ;;  %v3755_v59 = vsel %vm359_vm9, %v3747_v20, -1e+30  ;;  %vm7028_vm15 = vcmask 64512  }
0x14a1   :  { %vm3733_vm7 = vcmp.gt.f32.partialorder %v3725_v38, 0.0  ;;  %v3741_v2 = vmul.f32 0.2, %v3725_v38  ;;  %vm3734_vm8 = vcmp.gt.f32.partialorder %v3726_v18, 0.0  ;;  %v3742_v23 = vmul.f32 0.2, %v3726_v18  ;;  %vm7029_vm9 = vmmov %vm7028_vm15 }
0x14a2   :  { %v3774_v24 = vsel %vm371_vm5, %v3756_v16, -inf  ;;  %v3771_v34 = vsel %vm371_vm5, %v3755_v59, -inf  ;;  %vm7033_vm11 = vmmov %vm7029_vm9 }
0x14a3   :  { %3775 = vmax.xlane.f32.xlu1 %v3774_v24  ;;  %3772 = vmax.xlane.f32.xlu0 %v3771_v34  ;;  %v3750_v44 = vsel %vm3734_vm8, %v3726_v18, %v3742_v23  ;;  %v3749_v36 = vsel %vm3733_vm7, %v3725_v38, %v3741_v2  ;;  %vm7036_vm14 = vmmov %vm7029_vm9 }
0x14a4   :  { %v3758_v49 = vsel %vm362_vm12, %v3750_v44, -1e+30  ;;  %v3757_v31 = vsel %vm361_vm13, %v3749_v36, -1e+30  ;;  %vm7030_vm12 = vcmask 130048   ;;  %vm7031_vm13 = vmmov %vm7029_vm9 }
0x14a5   :  { %v3780_v33 = vsel %vm371_vm5, %v3758_v49, -inf  ;;  %v3777_v15 = vsel %vm371_vm5, %v3757_v31, -inf  ;;  %vm7032_vm1 = vmmov %vm7030_vm12 }
0x14a6   :  { %vm7034_vm2 = vmmov %vm7032_vm1 }
0x14a7   :  { %3781 = vmax.xlane.f32.xlu1 %v3780_v33  ;;  %3778 = vmax.xlane.f32.xlu0 %v3777_v15  ;;  %vm7035_vm0 = vmmov %vm7032_vm1 }
0x14a8   :  { %vm7037_vm4 = vmmov %vm7029_vm9 }
0x14a9   :  { %vm7038_vm6 = vmmov %vm7037_vm4 }
0x14aa   :  { %vm7039_vm3 = vmmov %vm7035_vm0 }
0x14ab   :  { %vm7040_vm7 = vmmov %vm7037_vm4 }
0x14ac   :  { %vm7041_vm8 = vmmov %vm7035_vm0 }
0x1524   :  { %v3761_v1 = vpop.xlane.xlu0 %3760 }
0x1525   :  { %v3783_v27 = vsub.f32 %v3751_v7, %v3761_v1 }
0x1527   :  { %v3791_v54 = vmul.f32 1.442695, %v3783_v27  ;;  %v3764_v52 = vpop.xlane.xlu1 %3763 }
0x1528   :  { %v3784_v47 = vsub.f32 %v3752_v9, %v3764_v52  ;;  %v3767_v58 = vpop.xlane.xlu0 %3766 }
0x1529   :  { %5577 = vpow2.f32 %v3791_v54  ;;  %v3785_v11 = vsub.f32 %v3753_v51, %v3767_v58 }
0x152a   :  { %v3793_v0 = vmul.f32 1.442695, %v3784_v47 }
0x152b   :  { %v3795_v43 = vmul.f32 1.442695, %v3785_v11 }
0x152c   :  { %5579 = vpow2.f32 %v3793_v0  ;;  %v3770_v12 = vpop.xlane.xlu1 %3769 }
0x152d   :  { %5581 = vpow2.f32 %v3795_v43  ;;  %v3786_v45 = vsub.f32 %v3754_v55, %v3770_v12 }
0x152f   :  { %v3797_v63 = vmul.f32 1.442695, %v3786_v45 }
0x1530   :  { %v3776_v57 = vpop.xlane.xlu1 %3775  ;;  %v3773_v29 = vpop.xlane.xlu0 %3772 }
0x1531   :  { %5583 = vpow2.f32 %v3797_v63  ;;  %v3788_v41 = vsub.f32 %v3756_v16, %v3776_v57  ;;  %v3787_v10 = vsub.f32 %v3755_v59, %v3773_v29 }
0x1533   :  { %v5578_v60 = vpop.eup %5577  ;;  %v3801_v7 = vmul.f32 1.442695, %v3788_v41  ;;  %v3799_v21 = vmul.f32 1.442695, %v3787_v10 }
0x1534   :  { %v3782_v14 = vpop.xlane.xlu1 %3781  ;;  %v3779_v9 = vpop.xlane.xlu0 %3778  ;;  %v3807_v46 = vsel %vm371_vm5, %v5578_v60, 0.0 }
0x1535   :  { %5585 = vpow2.f32 %v3801_v7  ;;  %v3790_v51 = vsub.f32 %v3758_v49, %v3782_v14  ;;  %v3789_v38 = vsub.f32 %v3757_v31, %v3779_v9  ;;  %3808 = vadd.xlane.f32.xlu0 %v3807_v46 }
0x1536   :  { %v5580_v18 = vpop.eup %5579  ;;  %5587 = vpow2.f32 %v3799_v21 }
0x1537   :  { %v5582_v55 = vpop.eup %5581  ;;  %v3805_v13 = vmul.f32 1.442695, %v3790_v51  ;;  %v3803_v20 = vmul.f32 1.442695, %v3789_v38  ;;  %v3810_v2 = vsel %vm371_vm5, %v5580_v18, 0.0 }
0x1538   :  { %3811 = vadd.xlane.f32.xlu1 %v3810_v2  ;;  %v3813_v16 = vsel %vm371_vm5, %v5582_v55, 0.0 }
0x1539   :  { %5589 = vpow2.f32 %v3805_v13  ;;  %3814 = vadd.xlane.f32.xlu0 %v3813_v16 }
0x153a   :  { %5591 = vpow2.f32 %v3803_v20 }
0x153b   :  { %v5584_v59 = vpop.eup %5583 }
0x153c   :  { %v3816_v23 = vsel %vm371_vm5, %v5584_v59, 0.0 }
0x153d   :  { %3817 = vadd.xlane.f32.xlu1 %v3816_v23 }
0x153f   :  { %v5586_v24 = vpop.eup %5585 }
0x1540   :  { %v5588_v34 = vpop.eup %5587  ;;  %v3822_v44 = vsel %vm371_vm5, %v5586_v24, 0.0 }
0x1541   :  { %3823 = vadd.xlane.f32.xlu1 %v3822_v44  ;;  %v3819_v36 = vsel %vm371_vm5, %v5588_v34, 0.0 }
0x1542   :  { %3820 = vadd.xlane.f32.xlu0 %v3819_v36 }
0x1543   :  { %v5590_v49 = vpop.eup %5589 }
0x1544   :  { %v5592_v31 = vpop.eup %5591  ;;  %v3828_v33 = vsel %vm371_vm5, %v5590_v49, 0.0 }
0x1545   :  { %3829 = vadd.xlane.f32.xlu1 %v3828_v33  ;;  %v3825_v15 = vsel %vm371_vm5, %v5592_v31, 0.0 }
0x1546   :  { %3826 = vadd.xlane.f32.xlu0 %v3825_v15 }
0x1556   :  { %3994 = vrot.lane.b32.xlu1 %v6713_v62, %s5619_s18 }
0x155a   :  { %3996 = vrot.lane.b32.xlu1 %v6719_v39, %s5619_s18 }
0x155c   :  { %3992 = vrot.lane.b32.xlu0 %v6715_v53, %s5619_s18 }
0x155e   :  { %3998 = vrot.lane.b32.xlu1 %v6717_v26, %s5619_s18 }
0x1560   :  { %4000 = vrot.lane.b32.xlu0 %v6723_v6, %s5619_s18 }
0x1562   :  { %4002 = vrot.lane.b32.xlu1 %v6721_v4, %s5619_s18 }
0x1564   :  { %4004 = vrot.lane.b32.xlu0 %v6727_v22, %s5619_s18 }
0x1566   :  { %4006 = vrot.lane.b32.xlu1 %v6725_v8, %s5619_s18 }
0x1568   :  { %4024 = vrot.lane.b32.xlu0 %v6833_v37, %s5613_s12 }
0x156a   :  { %4026 = vrot.lane.b32.xlu1 %v6831_v5, %s5613_s12 }
0x156c   :  { %4028 = vrot.lane.b32.xlu0 %v6837_v17, %s5613_s12 }
0x156e   :  { %4030 = vrot.lane.b32.xlu1 %v6835_v61, %s5613_s12 }
0x1570   :  { %4032 = vrot.lane.b32.xlu0 %v6841_v48, %s5613_s12 }
0x1572   :  { %4034 = vrot.lane.b32.xlu1 %v6839_v28, %s5613_s12 }
0x1574   :  { %4036 = vrot.lane.b32.xlu0 %v6845_v42, %s5613_s12 }
0x1576   :  { %4038 = vrot.lane.b32.xlu1 %v6843_v25, %s5613_s12 }
0x15c2   :  { %v3809_v62 = vpop.xlane.xlu0 %3808 }
0x15c3   :  { %5593 = vrcp.f32 %v3809_v62 }
0x15c5   :  { %v3812_v53 = vpop.xlane.xlu1 %3811 }
0x15c6   :  { %5595 = vrcp.f32 %v3812_v53  ;;  %v3815_v26 = vpop.xlane.xlu0 %3814 }
0x15c7   :  { %5597 = vrcp.f32 %v3815_v26 }
0x15ca   :  { %v3818_v39 = vpop.xlane.xlu1 %3817 }
0x15cb   :  { %5599 = vrcp.f32 %v3818_v39 }
0x15cd   :  { %v5594_v4 = vpop.eup %5593 }
0x15ce   :  { %v3824_v6 = vpop.xlane.xlu1 %3823  ;;  %v3832_v8 = vmul.f32 %v5594_v4, %v5578_v60 }
0x15cf   :  { %5601 = vrcp.f32 %v3824_v6  ;;  %v3821_v22 = vpop.xlane.xlu0 %3820 }
0x15d0   :  { %v5596_v5 = vpop.eup %5595  ;;  %5603 = vrcp.f32 %v3821_v22  ;;  %4924 = vmatprep.mubr.msk.f32.mxu1 %vm371_vm5, %v3832_v8 }
0x15d1   :  { %v5598_v37 = vpop.eup %5597  ;;  %v3834_v61 = vmul.f32 %v5596_v5, %v5580_v18 }
0x15d2   :  { %v3830_v17 = vpop.xlane.xlu1 %3829  ;;  %v3836_v28 = vmul.f32 %v5598_v37, %v5582_v55 }
0x15d3   :  { %5605 = vrcp.f32 %v3830_v17  ;;  %v3827_v48 = vpop.xlane.xlu0 %3826  ;;  %4925 = vmatmul.mubr.msk.f32.vlgmr.msra.gmra.mrb[32].mxu1 %vm371_vm5, %v3834_v61 }
0x15d4   :  { %5607 = vrcp.f32 %v3827_v48  ;;  %4927 = vmatprep.mubr.msk.f32.mxu1 %vm371_vm5, %v3836_v28 }
0x15d5   :  { %v5600_v25 = vpop.eup %5599 }
0x15d6   :  { %v3838_v42 = vmul.f32 %v5600_v25, %v5584_v59  ;;  %v3995_v60 = vpop.permute.xlu1 %3994 }
0x15d7   :  { %v3993_v14 = vpop.permute.xlu0 %3992 }
0x15d8   :  { %4928 = vmatmul.mubr.msk.f32.gmra.mrb[34].mxu1 %vm371_vm5, %v3838_v42  ;;  %v4080_v44 = vsel %vm2257_vm10, %v6576_v32, %v3993_v14 }
0x15d9   :  { %v5602_v1 = vpop.eup %5601 }
0x15da   :  { %v5604_v27 = vpop.eup %5603  ;;  %v3842_v54 = vmul.f32 %v5602_v1, %v5586_v24  ;;  %v3997_v7 = vpop.permute.xlu1 %3996  ;;  %v4081_v24 = vsel %vm2257_vm10, %v6574_v56, %v3995_v60 }
0x15db   :  { %v3840_v52 = vmul.f32 %v5604_v27, %v5588_v34  ;;  %v4001_v46 = vpop.permute.xlu0 %4000  ;;  %v4301_v34 = vld [vmem:[%s7004_s9] ss:$0 sm:$0xff]  ;;  %v4082_v32 = vsel %vm2257_vm10, %v6580_v35, %v3997_v7 }
0x15dc   :  { %v4084_v61 = vsel %vm2257_vm10, %v6584_v40, %v4001_v46 }
0x15dd   :  { %v5606_v47 = vpop.eup %5605  ;;  %4930 = vmatprep.mubr.msk.f32.mxu1 %vm371_vm5, %v3840_v52 }
0x15de   :  { %v5608_v58 = vpop.eup %5607  ;;  %4931 = vmatmul.mubr.msk.f32.gmra.mrb[36].mxu1 %vm371_vm5, %v3842_v54  ;;  %v3846_v11 = vmul.f32 %v5606_v47, %v5590_v49  ;;  %v3999_v21 = vpop.permute.xlu1 %3998 }
0x15df   :  { %v3844_v0 = vmul.f32 %v5608_v58, %v5592_v31  ;;  %v4005_v38 = vpop.permute.xlu0 %4004  ;;  %v4083_v56 = vsel %vm2257_vm10, %v6578_v3, %v3999_v21 }
0x15e0   :  { %v4086_v52 = vsel %vm2257_vm10, %v6588_v19, %v4005_v38 }
0x15e1   :  { %4933 = vmatprep.mubr.msk.f32.mxu1 %vm371_vm5, %v3844_v0 }
0x15e2   :  { %4934 = vmatmul.mubr.msk.f32.gmra.mrb[38].mxu1 %vm371_vm5, %v3846_v11  ;;  %v4003_v9 = vpop.permute.xlu1 %4002  ;;  %vm4096_vm5 = vcmask 97280  }
0x15e3   :  { %v4025_v55 = vpop.permute.xlu0 %4024  ;;  %v4085_v35 = vsel %vm2257_vm10, %v6582_v50, %v4003_v9 }
0x15e4   :  { %v4088_v31 = vsel %vm7029_vm9, %v4080_v44, %v4025_v55 }
0x15e6   :  { %v4007_v51 = vpop.permute.xlu1 %4006 }
0x15e7   :  { %v4029_v20 = vpop.permute.xlu0 %4028  ;;  %v4087_v50 = vsel %vm2257_vm10, %v6586_v30, %v4007_v51  ;;  %vm7042_vm10 = vmmov %vm7035_vm0 }
0x15e8   :  { %v4090_v6 = vsel %vm7033_vm11, %v4082_v32, %v4029_v20 }
0x15ea   :  { %v4027_v18 = vpop.permute.xlu1 %4026 }
0x15eb   :  { %v4033_v16 = vpop.permute.xlu0 %4032  ;;  %v4089_v36 = vsel %vm7028_vm15, %v4081_v24, %v4027_v18  ;;  %vm7043_vm15 = vmmov %vm7035_vm0 }
0x15ec   :  { %v4092_v48 = vsel %vm7037_vm4, %v4084_v61, %v4033_v16 }
0x15ee   :  { %v4031_v13 = vpop.permute.xlu1 %4030 }
0x15ef   :  { %v4037_v23 = vpop.permute.xlu0 %4036  ;;  %v4091_v39 = vsel %vm7031_vm13, %v4083_v56, %v4031_v13 }
0x15f0   :  { %v4094_v58 = vsel %vm7040_vm7, %v4086_v52, %v4037_v23 }
0x15f2   :  { %v4035_v2 = vpop.permute.xlu1 %4034 }
0x15f3   :  { %v4093_v17 = vsel %vm7036_vm14, %v4085_v35, %v4035_v2 }
0x15f6   :  { %v4039_v59 = vpop.permute.xlu1 %4038 }
0x15f7   :  { %v4095_v40 = vsel %vm7038_vm6, %v4087_v50, %v4039_v59 }
0x16a6   :  { %v4926_v43 = vpop.f32.mrb[32].mxu1 }
0x16a7   :  { %4058 = vrot.lane.b32.xlu1 %v4926_v43, %s5621_s24  ;;  %v3945_v12 = vpop.f32.mrb[33].mxu1 }
0x16a8   :  { %4056 = vrot.lane.b32.xlu0 %v3945_v12, %s5621_s24 }
0x16ab   :  { %v4929_v45 = vpop.f32.mrb[34].mxu1 }
0x16ac   :  { %4062 = vrot.lane.b32.xlu1 %v4929_v45, %s5621_s24  ;;  %v3955_v63 = vpop.f32.mrb[35].mxu1 }
0x16ad   :  { %4060 = vrot.lane.b32.xlu0 %v3955_v63, %s5621_s24 }
0x16b1   :  { %v4932_v57 = vpop.f32.mrb[36].mxu1 }
0x16b2   :  { %4066 = vrot.lane.b32.xlu1 %v4932_v57, %s5621_s24  ;;  %v3965_v29 = vpop.f32.mrb[37].mxu1 }
0x16b3   :  { %4064 = vrot.lane.b32.xlu0 %v3965_v29, %s5621_s24 }
0x16b5   :  { %v4935_v41 = vpop.f32.mrb[38].mxu1 }
0x16b6   :  { %4070 = vrot.lane.b32.xlu1 %v4935_v41, %s5621_s24  ;;  %v3975_v10 = vpop.f32.mrb[39].mxu1 }
0x16b7   :  { %4068 = vrot.lane.b32.xlu0 %v3975_v10, %s5621_s24 }
0x1719   :  { %v4059_v49 = vpop.permute.xlu1 %4058 }
0x171a   :  { %v4098_v33 = vsel %vm4096_vm5, %v4089_v36, %v4059_v49  ;;  %v4057_v15 = vpop.permute.xlu0 %4056 }
0x171b   :  { %v4113_v62 = vadd.f32 %v4301_v34, %v4098_v33  ;;  %v4097_v53 = vsel %vm4096_vm5, %v4088_v31, %v4057_v15 }
0x171c   :  { %v4112_v26 = vadd.f32 %v4301_v34, %v4097_v53 }
0x171d   :  { %4121 = vst.msk [vmem:[%s7005_s10 + $0x8] sm:$0xff] %vm7030_vm12, %v4113_v62 }
0x171e   :  { %4120 = vst.msk [vmem:[%s7005_s10] sm:$0xff] %vm7032_vm1, %v4112_v26  ;;  %v4063_v4 = vpop.permute.xlu1 %4062 }
0x171f   :  { %v4100_v3 = vsel %vm4096_vm5, %v4091_v39, %v4063_v4  ;;  %v4061_v8 = vpop.permute.xlu0 %4060 }
0x1720   :  { %v4115_v22 = vadd.f32 %v4301_v34, %v4100_v3  ;;  %v4099_v5 = vsel %vm4096_vm5, %v4090_v6, %v4061_v8 }
0x1721   :  { %v4114_v37 = vadd.f32 %v4301_v34, %v4099_v5 }
0x1722   :  { %4123 = vst.msk [vmem:[%s7005_s10 + $0x18] sm:$0xff] %vm7034_vm2, %v4115_v22 }
0x1723   :  { %4122 = vst.msk [vmem:[%s7005_s10 + $0x10] sm:$0xff] %vm7035_vm0, %v4114_v37 }
0x1724   :  { %v4067_v28 = vpop.permute.xlu1 %4066 }
0x1725   :  { %v4102_v25 = vsel %vm4096_vm5, %v4093_v17, %v4067_v28  ;;  %v4065_v42 = vpop.permute.xlu0 %4064 }
0x1726   :  { %v4117_v1 = vadd.f32 %v4301_v34, %v4102_v25  ;;  %v4101_v27 = vsel %vm4096_vm5, %v4092_v48, %v4065_v42 }
0x1727   :  { %v4116_v54 = vadd.f32 %v4301_v34, %v4101_v27 }
0x1728   :  { %4125 = vst.msk [vmem:[%s7005_s10 + $0x28] sm:$0xff] %vm7039_vm3, %v4117_v1  ;;  %v4071_v47 = vpop.permute.xlu1 %4070 }
0x1729   :  { %4124 = vst.msk [vmem:[%s7005_s10 + $0x20] sm:$0xff] %vm7041_vm8, %v4116_v54  ;;  %v4104_v30 = vsel %vm4096_vm5, %v4095_v40, %v4071_v47  ;;  %v4069_v11 = vpop.permute.xlu0 %4068 }
0x172a   :  { %v4119_v0 = vadd.f32 %v4301_v34, %v4104_v30  ;;  %v4103_v19 = vsel %vm4096_vm5, %v4094_v58, %v4069_v11 }
0x172b   :  { %v4118_v43 = vadd.f32 %v4301_v34, %v4103_v19 }
0x172c   :  { %4127 = vst.msk [vmem:[%s7005_s10 + $0x38] sm:$0xff] %vm7042_vm10, %v4119_v0 }
0x172d   :  { %4126 = vst.msk [vmem:[%s7005_s10 + $0x30] sm:$0xff] %vm7043_vm15, %v4118_v43 }

</bundles_post_ra>
